<compile_context>
chip_gen: v7x
topology: tpu7x:2x2x1
jax: 0.10.0
libtpu: 0.0.40
codegen_flags: <defaults>
</compile_context>

<pallas_src>
import jax
import jax.numpy as jnp
from jax.experimental import pallas as pl
from jax.experimental.pallas import tpu as pltpu


def _inceptv3_encoder_kernel(x_ref, wstem_ref, bstem_ref,
                             w1_ref, b1_ref, w2_ref, b2_ref, w3_ref, b3_ref,
                             out_ref):
    # x_ref: (fpad, C, HW) f32 -- this grid step's frames, pixels on the lanes.
    x = x_ref[...]
    w_stem = wstem_ref[...]                                   # (F, C)
    n_ch = x.shape[1]

    # --- backbone stand-in: 1x1 conv channel mix.  K=C is tiny, so do it on
    #     the VPU as per-channel broadcast multiply-adds (keeps the MXU free).
    feat = x[:, 0, None, :] * w_stem[None, :, 0, None]        # (fpad, F, HW)
    for c in range(1, n_ch):                                  # static loop, C=3
        feat = feat + x[:, c, None, :] * w_stem[None, :, c, None]
    feat = jnp.maximum(feat + bstem_ref[...][None], 0.0)      # + (1, F, 1) bias

    # --- global average pool: lane reduce over pixels (1/(H*W) folded in w1).
    pooled = jnp.sum(feat, axis=-1)                           # (fpad, F)

    # --- fc1 + bn1 (folded) + relu
    h1 = jnp.dot(pooled, w1_ref[...], preferred_element_type=jnp.float32)
    h1 = jnp.maximum(h1 + b1_ref[...], 0.0)                   # (fpad, H1)

    # --- fc2 + bn2 (folded) + relu
    h2 = jnp.dot(h1, w2_ref[...], preferred_element_type=jnp.float32)
    h2 = jnp.maximum(h2 + b2_ref[...], 0.0)                   # (fpad, H2)

    # --- dropout: eval mode -> identity (no-op)

    # --- fc3 (embed dim padded to a lane-dense multiple of 128)
    out = jnp.dot(h2, w3_ref[...], preferred_element_type=jnp.float32)
    out_ref[...] = (out + b3_ref[...]).astype(out_ref.dtype)  # (fpad, E_pad)


def inceptv3_encoder_forward(x_3d, params, *, embed_dim, num_steps=1):
    """x_3d: (B, T, C, H, W) float32 (PyTorch layout). Returns (B, T, embed_dim)."""
    B, T, C, H, W = x_3d.shape
    wstem, bstem, w1f, b1f, w2f, b2f, w3p, b3p = params
    e_pad = w3p.shape[1]
    BT, HW = B * T, H * W

    # Each frame is already a contiguous C*H*W slab -> pure-view reshape, no
    # host transpose / extra HBM pass.
    x_flat = x_3d.reshape(BT, C, HW)

    fps = -(-BT // num_steps)                 # frames per grid step
    fpad = max(8, -(-fps // 8) * 8)           # sublane-aligned block rows
    total = num_steps * fpad
    if total != BT:                           # pad trailing frames only (no-op here)
        x_flat = jnp.concatenate(
            [x_flat, jnp.zeros((total - BT, C, HW), x_flat.dtype)], axis=0)

    def const_spec(a):
        nd = a.ndim
        return pl.BlockSpec(a.shape, lambda i, _nd=nd: (0,) * _nd)

    out = pl.pallas_call(
        _inceptv3_encoder_kernel,
        out_shape=jax.ShapeDtypeStruct((total, e_pad), jnp.float32),
        grid_spec=pltpu.PrefetchScalarGridSpec(
            num_scalar_prefetch=0,
            grid=(num_steps,),
            in_specs=[
                pl.BlockSpec((fpad, C, HW), lambda i: (i, 0, 0)),
                const_spec(wstem), const_spec(bstem),
                const_spec(w1f), const_spec(b1f),
                const_spec(w2f), const_spec(b2f),
                const_spec(w3p), const_spec(b3p),
            ],
            out_specs=pl.BlockSpec((fpad, e_pad), lambda i: (i, 0)),
        ),
        compiler_params=pltpu.CompilerParams(
            dimension_semantics=("parallel",)),
    )(x_flat, wstem, bstem, w1f, b1f, w2f, b2f, w3p, b3p)

    # Frames are (b, t)-major -> drop padding, slice real embed dim, reshape.
    return out[:BT, :embed_dim].reshape(B, T, embed_dim)


def make_params(key, C, F, H1, H2, E, HW, e_pad):
    """Deterministic parameters (shapes follow the module __init__ at reduced
    scale).  BatchNorm and the 1/(H*W) pooling scale are folded host-side."""
    ks = jax.random.split(key, 16)
    eps = 1e-5

    # backbone stand-in (1x1 conv channel mix): weight (F, C), bias (F,)
    wstem = jax.random.normal(ks[0], (F, C), jnp.float32) * 0.1
    bstem = jax.random.normal(ks[1], (F,), jnp.float32) * 0.01

    # fc1: Linear(F, H1) -> torch weight (H1, F), bias (H1,)
    w1 = jax.random.normal(ks[2], (H1, F), jnp.float32) * 0.05
    b1 = jax.random.normal(ks[3], (H1,), jnp.float32) * 0.01
    g1 = 1.0 + 0.1 * jax.random.normal(ks[4], (H1,), jnp.float32)
    be1 = 0.1 * jax.random.normal(ks[5], (H1,), jnp.float32)
    mu1 = 0.1 * jax.random.normal(ks[6], (H1,), jnp.float32)
    var1 = 1.0 + 0.1 * jax.random.uniform(ks[7], (H1,), jnp.float32)

    # fc2: Linear(H1, H2)
    w2 = jax.random.normal(ks[8], (H2, H1), jnp.float32) * 0.05
    b2 = jax.random.normal(ks[9], (H2,), jnp.float32) * 0.01
    g2 = 1.0 + 0.1 * jax.random.normal(ks[10], (H2,), jnp.float32)
    be2 = 0.1 * jax.random.normal(ks[11], (H2,), jnp.float32)
    mu2 = 0.1 * jax.random.normal(ks[12], (H2,), jnp.float32)
    var2 = 1.0 + 0.1 * jax.random.uniform(ks[13], (H2,), jnp.float32)

    # fc3: Linear(H2, E)
    w3 = jax.random.normal(ks[14], (E, H2), jnp.float32) * 0.05
    b3 = jax.random.normal(ks[15], (E,), jnp.float32) * 0.01

    # fold bn into linear:  bn(x @ W^T + b) = x @ (W^T * s) + ((b - mu) * s + beta)
    s1 = g1 / jnp.sqrt(var1 + eps)
    w1f = (w1.T * s1) / HW                               # pool 1/(H*W) folded in
    b1f = ((b1 - mu1) * s1 + be1)[None, :]               # (1, H1)
    s2 = g2 / jnp.sqrt(var2 + eps)
    w2f = w2.T * s2                                      # (H1, H2)
    b2f = ((b2 - mu2) * s2 + be2)[None, :]               # (1, H2)

    # fc3 padded to a lane-dense embed dim
    w3p = jnp.zeros((H2, e_pad), jnp.float32).at[:, :E].set(w3.T)
    b3p = jnp.zeros((1, e_pad), jnp.float32).at[0, :E].set(b3)

    bstem2 = bstem[:, None]                              # (F, 1)
    return (wstem, bstem2, w1f, b1f, w2f, b2f, w3p, b3p)


def reference_forward(x_3d, params, *, embed_dim):
    """Plain-JAX reference mirroring the kernel's f32 numerics."""
    wstem, bstem, w1f, b1f, w2f, b2f, w3p, b3p = params
    B, T, C, H, W = x_3d.shape
    x = x_3d.reshape(B * T, C, H * W)                                 # (N, C, HW)
    # stem as elementwise multiply-add (mirrors the kernel's VPU path)
    feat = jnp.sum(x[:, :, None, :] * wstem.T[None, :, :, None], axis=1)
    feat = jnp.maximum(feat + bstem[None], 0.0)                       # (N, F, HW)
    pooled = jnp.sum(feat, axis=-1)                                   # (N, F)
    h1 = jnp.maximum(jnp.dot(pooled, w1f) + b1f, 0.0)
    h2 = jnp.maximum(jnp.dot(h1, w2f) + b2f, 0.0)
    out = jnp.dot(h2, w3p) + b3p
    return out.reshape(B, T, -1)[..., :embed_dim]


if __name__ == "__main__":
    # small shapes consistent with the forward:
    #   batch=2, seq=4, RGB 16x16 frames; reduced feature/hidden/embed dims
    B, T, C, H, W = 2, 4, 3, 16, 16
    F_DIM, H1, H2, E = 128, 128, 128, 64   # stand-ins for 2048/512/512/300
    E_PAD = -(-E // 128) * 128             # lane-dense padded embed dim

    key = jax.random.PRNGKey(0)
    kx, kp = jax.random.split(key)
    # PyTorch input x_3d is (B, T, C, H, W)
    x_3d = jax.random.normal(kx, (B, T, C, H, W), jnp.float32)
    params = make_params(kp, C, F_DIM, H1, H2, E, H * W, E_PAD)

    out = jax.block_until_ready(
        inceptv3_encoder_forward(x_3d, params, embed_dim=E))
    assert out.shape == (B, T, E), out.shape

    ref = reference_forward(x_3d, params, embed_dim=E)
    max_err = float(jnp.max(jnp.abs(out - ref)))
    assert jnp.allclose(out, ref, atol=1e-2, rtol=1e-2), max_err

    print("KERNEL_OK")
</pallas_src>

<mosaic_0001>
module attributes {stable_mosaic.version = 11 : i64} {
  func.func @_inceptv3_encoder_kernel(%arg0: i32, %arg1: memref<8x3x256xf32, #tpu.memory_space<vmem>>, %arg2: memref<128x3xf32, #tpu.memory_space<vmem>>, %arg3: memref<128x1xf32, #tpu.memory_space<vmem>>, %arg4: memref<128x128xf32, #tpu.memory_space<vmem>>, %arg5: memref<1x128xf32, #tpu.memory_space<vmem>>, %arg6: memref<128x128xf32, #tpu.memory_space<vmem>>, %arg7: memref<1x128xf32, #tpu.memory_space<vmem>>, %arg8: memref<128x128xf32, #tpu.memory_space<vmem>>, %arg9: memref<1x128xf32, #tpu.memory_space<vmem>>, %arg10: memref<8x128xf32, #tpu.memory_space<vmem>>) attributes {dimension_semantics = [#tpu.dimension_semantics<parallel>], iteration_bounds = array<i64: 1>, scalar_prefetch = 0 : i64, scratch_operands = 0 : i64, tpu.core_type = #tpu.core_type<tc>, window_params = [{transform_indices = @transform_0, window_bounds = array<i64: 8, 3, 256>}, {pipeline_mode = #tpu.pipeline_mode<synchronous>, transform_indices = @transform_1, window_bounds = array<i64: 128, 3>}, {pipeline_mode = #tpu.pipeline_mode<synchronous>, transform_indices = @transform_2, window_bounds = array<i64: 128, 1>}, {pipeline_mode = #tpu.pipeline_mode<synchronous>, transform_indices = @transform_3, window_bounds = array<i64: 128, 128>}, {pipeline_mode = #tpu.pipeline_mode<synchronous>, transform_indices = @transform_4, window_bounds = array<i64: 1, 128>}, {pipeline_mode = #tpu.pipeline_mode<synchronous>, transform_indices = @transform_5, window_bounds = array<i64: 128, 128>}, {pipeline_mode = #tpu.pipeline_mode<synchronous>, transform_indices = @transform_6, window_bounds = array<i64: 1, 128>}, {pipeline_mode = #tpu.pipeline_mode<synchronous>, transform_indices = @transform_7, window_bounds = array<i64: 128, 128>}, {pipeline_mode = #tpu.pipeline_mode<synchronous>, transform_indices = @transform_8, window_bounds = array<i64: 1, 128>}, {transform_indices = @transform_9, window_bounds = array<i64: 8, 128>}]} {
    %c0 = arith.constant 0 : index
    %c0_0 = arith.constant 0 : index
    %c0_1 = arith.constant 0 : index
    %0 = vector.load %arg1[%c0, %c0_0, %c0_1] : memref<8x3x256xf32, #tpu.memory_space<vmem>>, vector<8x3x256xf32>
    %c0_2 = arith.constant 0 : index
    %c0_3 = arith.constant 0 : index
    %1 = vector.load %arg2[%c0_2, %c0_3] : memref<128x3xf32, #tpu.memory_space<vmem>>, vector<128x3xf32>
    %2 = vector.extract_strided_slice %0 {offsets = [0, 0, 0], sizes = [8, 1, 256], strides = [1, 1, 1]} : vector<8x3x256xf32> to vector<8x1x256xf32>
    %3 = vector.shape_cast %2 : vector<8x1x256xf32> to vector<8x256xf32>
    %4 = vector.shape_cast %3 : vector<8x256xf32> to vector<8x1x256xf32>
    %5 = vector.extract_strided_slice %1 {offsets = [0, 0], sizes = [128, 1], strides = [1, 1]} : vector<128x3xf32> to vector<128x1xf32>
    %6 = vector.shape_cast %5 : vector<128x1xf32> to vector<128xf32>
    %7 = vector.shape_cast %6 : vector<128xf32> to vector<1x128x1xf32>
    %8 = vector.broadcast %4 : vector<8x1x256xf32> to vector<8x128x256xf32>
    %9 = vector.broadcast %7 : vector<1x128x1xf32> to vector<8x128x256xf32>
    %10 = arith.mulf %8, %9 : vector<8x128x256xf32>
    %11 = vector.extract_strided_slice %0 {offsets = [0, 1, 0], sizes = [8, 1, 256], strides = [1, 1, 1]} : vector<8x3x256xf32> to vector<8x1x256xf32>
    %12 = vector.shape_cast %11 : vector<8x1x256xf32> to vector<8x256xf32>
    %13 = vector.shape_cast %12 : vector<8x256xf32> to vector<8x1x256xf32>
    %14 = vector.extract_strided_slice %1 {offsets = [0, 1], sizes = [128, 1], strides = [1, 1]} : vector<128x3xf32> to vector<128x1xf32>
    %15 = vector.shape_cast %14 : vector<128x1xf32> to vector<128xf32>
    %16 = vector.shape_cast %15 : vector<128xf32> to vector<1x128x1xf32>
    %17 = vector.broadcast %13 : vector<8x1x256xf32> to vector<8x128x256xf32>
    %18 = vector.broadcast %16 : vector<1x128x1xf32> to vector<8x128x256xf32>
    %19 = arith.mulf %17, %18 : vector<8x128x256xf32>
    %20 = arith.addf %10, %19 : vector<8x128x256xf32>
    %21 = vector.extract_strided_slice %0 {offsets = [0, 2, 0], sizes = [8, 1, 256], strides = [1, 1, 1]} : vector<8x3x256xf32> to vector<8x1x256xf32>
    %22 = vector.shape_cast %21 : vector<8x1x256xf32> to vector<8x256xf32>
    %23 = vector.shape_cast %22 : vector<8x256xf32> to vector<8x1x256xf32>
    %24 = vector.extract_strided_slice %1 {offsets = [0, 2], sizes = [128, 1], strides = [1, 1]} : vector<128x3xf32> to vector<128x1xf32>
    %25 = vector.shape_cast %24 : vector<128x1xf32> to vector<128xf32>
    %26 = vector.shape_cast %25 : vector<128xf32> to vector<1x128x1xf32>
    %27 = vector.broadcast %23 : vector<8x1x256xf32> to vector<8x128x256xf32>
    %28 = vector.broadcast %26 : vector<1x128x1xf32> to vector<8x128x256xf32>
    %29 = arith.mulf %27, %28 : vector<8x128x256xf32>
    %30 = arith.addf %20, %29 : vector<8x128x256xf32>
    %c0_4 = arith.constant 0 : index
    %c0_5 = arith.constant 0 : index
    %31 = vector.load %arg3[%c0_4, %c0_5] : memref<128x1xf32, #tpu.memory_space<vmem>>, vector<128x1xf32>
    %32 = vector.shape_cast %31 : vector<128x1xf32> to vector<1x128x1xf32>
    %33 = vector.broadcast %32 : vector<1x128x1xf32> to vector<8x128x256xf32>
    %34 = arith.addf %30, %33 : vector<8x128x256xf32>
    %cst = arith.constant 0.000000e+00 : f32
    %35 = vector.broadcast %cst : f32 to vector<8x128x256xf32>
    %36 = arith.maximumf %34, %35 : vector<8x128x256xf32>
    %cst_6 = arith.constant dense<0.000000e+00> : vector<8x128xf32>
    %37 = vector.multi_reduction <add>, %36, %cst_6 [2] : vector<8x128x256xf32> to vector<8x128xf32>
    %c0_7 = arith.constant 0 : index
    %c0_8 = arith.constant 0 : index
    %38 = vector.load %arg4[%c0_7, %c0_8] : memref<128x128xf32, #tpu.memory_space<vmem>>, vector<128x128xf32>
    %cst_9 = arith.constant dense<0.000000e+00> : vector<8x128xf32>
    %39 = tpu.matmul %37, %38, %cst_9 {dimension_numbers = #tpu.dot_dimension_numbers<[1], [0], [0], [1], [0, 0, 1, 1], [], []>} : vector<8x128xf32>, vector<128x128xf32>, vector<8x128xf32> -> vector<8x128xf32>
    %c0_10 = arith.constant 0 : index
    %c0_11 = arith.constant 0 : index
    %40 = vector.load %arg5[%c0_10, %c0_11] : memref<1x128xf32, #tpu.memory_space<vmem>>, vector<1x128xf32>
    %41 = vector.broadcast %40 : vector<1x128xf32> to vector<8x128xf32>
    %42 = arith.addf %39, %41 : vector<8x128xf32>
    %cst_12 = arith.constant 0.000000e+00 : f32
    %43 = vector.broadcast %cst_12 : f32 to vector<8x128xf32>
    %44 = arith.maximumf %42, %43 : vector<8x128xf32>
    %c0_13 = arith.constant 0 : index
    %c0_14 = arith.constant 0 : index
    %45 = vector.load %arg6[%c0_13, %c0_14] : memref<128x128xf32, #tpu.memory_space<vmem>>, vector<128x128xf32>
    %cst_15 = arith.constant dense<0.000000e+00> : vector<8x128xf32>
    %46 = tpu.matmul %44, %45, %cst_15 {dimension_numbers = #tpu.dot_dimension_numbers<[1], [0], [0], [1], [0, 0, 1, 1], [], []>} : vector<8x128xf32>, vector<128x128xf32>, vector<8x128xf32> -> vector<8x128xf32>
    %c0_16 = arith.constant 0 : index
    %c0_17 = arith.constant 0 : index
    %47 = vector.load %arg7[%c0_16, %c0_17] : memref<1x128xf32, #tpu.memory_space<vmem>>, vector<1x128xf32>
    %48 = vector.broadcast %47 : vector<1x128xf32> to vector<8x128xf32>
    %49 = arith.addf %46, %48 : vector<8x128xf32>
    %cst_18 = arith.constant 0.000000e+00 : f32
    %50 = vector.broadcast %cst_18 : f32 to vector<8x128xf32>
    %51 = arith.maximumf %49, %50 : vector<8x128xf32>
    %c0_19 = arith.constant 0 : index
    %c0_20 = arith.constant 0 : index
    %52 = vector.load %arg8[%c0_19, %c0_20] : memref<128x128xf32, #tpu.memory_space<vmem>>, vector<128x128xf32>
    %cst_21 = arith.constant dense<0.000000e+00> : vector<8x128xf32>
    %53 = tpu.matmul %51, %52, %cst_21 {dimension_numbers = #tpu.dot_dimension_numbers<[1], [0], [0], [1], [0, 0, 1, 1], [], []>} : vector<8x128xf32>, vector<128x128xf32>, vector<8x128xf32> -> vector<8x128xf32>
    %c0_22 = arith.constant 0 : index
    %c0_23 = arith.constant 0 : index
    %54 = vector.load %arg9[%c0_22, %c0_23] : memref<1x128xf32, #tpu.memory_space<vmem>>, vector<1x128xf32>
    %55 = vector.broadcast %54 : vector<1x128xf32> to vector<8x128xf32>
    %56 = arith.addf %53, %55 : vector<8x128xf32>
    %c0_24 = arith.constant 0 : index
    %c0_25 = arith.constant 0 : index
    %57 = vector.load %arg10[%c0_24, %c0_25] : memref<8x128xf32, #tpu.memory_space<vmem>>, vector<8x128xf32>
    tpu.vector_store %arg10[%c0_24, %c0_25], %56 {strides = array<i32>} : memref<8x128xf32, #tpu.memory_space<vmem>>, vector<8x128xf32>,
    return
  }
  func.func @transform_0(%arg0: i32) -> (i32, i32, i32) {
    %c0_i32 = arith.constant 0 : i32
    %c0_i32_0 = arith.constant 0 : i32
    %c0_i32_1 = arith.constant 0 : i32
    return %arg0, %c0_i32, %c0_i32_0 : i32, i32, i32
  }
  func.func @transform_1(%arg0: i32) -> (i32, i32) {
    %c0_i32 = arith.constant 0 : i32
    %c0_i32_0 = arith.constant 0 : i32
    %c0_i32_1 = arith.constant 0 : i32
    return %c0_i32, %c0_i32_0 : i32, i32
  }
  func.func @transform_2(%arg0: i32) -> (i32, i32) {
    %c0_i32 = arith.constant 0 : i32
    %c0_i32_0 = arith.constant 0 : i32
    %c0_i32_1 = arith.constant 0 : i32
    return %c0_i32, %c0_i32_0 : i32, i32
  }
  func.func @transform_3(%arg0: i32) -> (i32, i32) {
    %c0_i32 = arith.constant 0 : i32
    %c0_i32_0 = arith.constant 0 : i32
    %c0_i32_1 = arith.constant 0 : i32
    return %c0_i32, %c0_i32_0 : i32, i32
  }
  func.func @transform_4(%arg0: i32) -> (i32, i32) {
    %c0_i32 = arith.constant 0 : i32
    %c0_i32_0 = arith.constant 0 : i32
    %c0_i32_1 = arith.constant 0 : i32
    return %c0_i32, %c0_i32_0 : i32, i32
  }
  func.func @transform_5(%arg0: i32) -> (i32, i32) {
    %c0_i32 = arith.constant 0 : i32
    %c0_i32_0 = arith.constant 0 : i32
    %c0_i32_1 = arith.constant 0 : i32
    return %c0_i32, %c0_i32_0 : i32, i32
  }
  func.func @transform_6(%arg0: i32) -> (i32, i32) {
    %c0_i32 = arith.constant 0 : i32
    %c0_i32_0 = arith.constant 0 : i32
    %c0_i32_1 = arith.constant 0 : i32
    return %c0_i32, %c0_i32_0 : i32, i32
  }
  func.func @transform_7(%arg0: i32) -> (i32, i32) {
    %c0_i32 = arith.constant 0 : i32
    %c0_i32_0 = arith.constant 0 : i32
    %c0_i32_1 = arith.constant 0 : i32
    return %c0_i32, %c0_i32_0 : i32, i32
  }
  func.func @transform_8(%arg0: i32) -> (i32, i32) {
    %c0_i32 = arith.constant 0 : i32
    %c0_i32_0 = arith.constant 0 : i32
    %c0_i32_1 = arith.constant 0 : i32
    return %c0_i32, %c0_i32_0 : i32, i32
  }
  func.func @transform_9(%arg0: i32) -> (i32, i32) {
    %c0_i32 = arith.constant 0 : i32
    %c0_i32_0 = arith.constant 0 : i32
    return %arg0, %c0_i32 : i32, i32
  }
}

</mosaic_0001>

<bundles_post_ra>
// kernel: tpu_custom_call.1
= control target key start
LH: loop header
LB: loop body
LE: loop exit
PB: predicated region body
PF: predicated region fallthrough
CT: control target
= control target key end

     0   :  { %v8211_v2 = vmov 1   ;;  %s8200_s0 = inlined_call_operand.vmem [shape: f32[8,3,256], index: 0, kind: input, shape index: {}]   ;;  %s8201_s1 = inlined_call_operand.vmem [shape: f32[128,3], index: 1, kind: input, shape index: {}]   ;;  %s8202_s2 = inlined_call_operand.vmem [shape: f32[128,1], index: 2, kind: input, shape index: {}]   ;;  %s8203_s3 = inlined_call_operand.vmem [shape: f32[128,128], index: 3, kind: input, shape index: {}]   ;;  %s8204_s4 = inlined_call_operand.vmem [shape: f32[1,128], index: 4, kind: input, shape index: {}]   ;;  %s8205_s5 = inlined_call_operand.vmem [shape: f32[128,128], index: 5, kind: input, shape index: {}]   ;;  %s8206_s6 = inlined_call_operand.vmem [shape: f32[1,128], index: 6, kind: input, shape index: {}]   ;;  %s8207_s7 = inlined_call_operand.vmem [shape: f32[128,128], index: 7, kind: input, shape index: {}]   ;;  %s8208_s8 = inlined_call_operand.vmem [shape: f32[1,128], index: 8, kind: input, shape index: {}]   ;;  %s8209_s9 = inlined_call_operand.hbm [shape: f32[8,128], index: 9, kind: output, shape index: {}]  }
   0x1   :  { %v45_v0 = vld [vmem:[%s8201_s1 + $0x20] sm:$0xff]  ;;  %4321 = vset.pattern.permute.xlu0 %v8211_v2  ;;  %4318 = vset.pattern.permute.xlu1 %v8211_v2  ;;  %v46_v3 = vld [vmem:[%s8201_s1 + $0x28] sm:$0xff]  ;;  %v43_v6 = vld [vmem:[%s8201_s1 + $0x10] sm:$0xff] }
   0x2   :  { %v41_v1 = vld [vmem:[%s8201_s1] sm:$0xff]  ;;  %706 = vperm.xlu0 %4321, %v45_v0   ;;  %v42_v4 = vld [vmem:[%s8201_s1 + $0x8] sm:$0xff] }
   0x3   :  { %690 = vperm.xlu1 %4318, %v41_v1   ;;  %v4451_v5 = vld [vmem:[%s8201_s1 + $0x48] sm:$0xff] }
   0x6   :  { %710 = vperm.xlu0 %4321, %v46_v3  }
   0x7   :  { %694 = vperm.xlu1 %4318, %v42_v4  }
   0xa   :  { %726 = vperm.xlu0 %4321, %v4451_v5  }
   0xb   :  { %698 = vperm.xlu1 %4318, %v43_v6  }
   0xc   :  { %14 = vsyncpa [#allocation3], 0  ;;  %v4460_v7 = vld [vmem:[%s8201_s1 + $0x58] sm:$0xff]  ;;  %v4469_v9 = vld [vmem:[%s8201_s1 + $0x68] sm:$0xff]  ;;  %v8212_v10 = vmov 2   ;;  %v8214_v12 = vmov 0   ;;  %v8210_v26 = vlaneseq }
   0xd   :  { %v44_v8 = vld [vmem:[%s8201_s1 + $0x18] sm:$0xff]  ;;  %v4485_v13 = vld [vmem:[%s8201_s1 + $0x70] sm:$0xff]  ;;  %v1985_v16 = vld [vmem:[%s8202_s2] sm:$0xff]  ;;  %vm3139_vm0 = vcmask 130112   ;;  %vm3146_vm1 = vcmask 195712   ;;  %vm3153_vm2 = vcmask 261312  }
   0xe   :  { %734 = vperm.xlu0 %4321, %v4460_v7   ;;  %v4476_v11 = vld [vmem:[%s8201_s1 + $0x78] sm:$0xff]  ;;  %v47_v14 = vld [vmem:[%s8201_s1 + $0x30] sm:$0xff]  ;;  %v1986_v17 = vld [vmem:[%s8202_s2 + $0x8] sm:$0xff]  ;;  %v4550_v28 = vshrl.u32 %v8210_v26, 7  ;;  %vm3160_vm3 = vcmask 326912   ;;  %vm3167_vm4 = vcmask 392512  }
   0xf   :  { %702 = vperm.xlu1 %4318, %v44_v8   ;;  %v48_v15 = vld [vmem:[%s8201_s1 + $0x38] sm:$0xff]  ;;  %v49_v18 = vld [vmem:[%s8201_s1 + $0x40] sm:$0xff]  ;;  %v1987_v19 = vld [vmem:[%s8202_s2 + $0x10] sm:$0xff]  ;;  %vm3174_vm5 = vcmask 458112   ;;  %vm3181_vm6 = vcmask 523712   ;;  %vm3188_vm7 = vcmask 589312  }
  0x10   :  { %v4517_v20 = vld [vmem:[%s8201_s1 + $0x50] sm:$0xff]  ;;  %v1989_v21 = vld [vmem:[%s8202_s2 + $0x20] sm:$0xff]  ;;  %v1988_v24 = vld [vmem:[%s8202_s2 + $0x18] sm:$0xff]  ;;  %8544 = vst [vmem:[#allocation5_spill] sm:$0xff] %v4550_v28  ;;  %v4557_v30 = vsub.s32 1, %v4550_v28  ;;  %v4560_v31 = vsub.s32 5, %v4550_v28 }
  0x11   :  { %v4528_v22 = vld [vmem:[%s8201_s1 + $0x60] sm:$0xff]  ;;  %v1991_v23 = vld [vmem:[%s8202_s2 + $0x30] sm:$0xff]  ;;  %v1996_v27 = vld [vmem:[%s8202_s2 + $0x58] sm:$0xff]  ;;  %v4584_v37 = vsub.s32 2, %v4550_v28  ;;  %v4587_v38 = vsub.s32 6, %v4550_v28  ;;  %v4623_v52 = vsub.s32 0, %v4550_v28 }
  0x12   :  { %742 = vperm.xlu0 %4321, %v4469_v9   ;;  %v1993_v25 = vld [vmem:[%s8202_s2 + $0x40] sm:$0xff]  ;;  %v1999_v29 = vld [vmem:[%s8202_s2 + $0x70] sm:$0xff]  ;;  %v4576_v35 = vld [vmem:[%s8200_s0 + $0x8] sm:$0x77]  ;;  %v4626_v53 = vsub.s32 4, %v4550_v28  ;;  %vm3195_vm8 = vcmask 654912  }
  0x13   :  { %4319 = vset.pattern.permute.xlu1 %v8212_v10  ;;  %v4565_v32 = vld [vmem:[%s8200_s0] sm:$0x77]  ;;  %v4581_v36 = vld [vmem:[%s8200_s0 + $0x10] sm:$0x77]  ;;  %v4592_v39 = vld [vmem:[%s8200_s0 + $0x18] sm:$0x77]  ;;  %v556_v40 = vrot.slane %v4576_v35, %v4557_v30  ;;  %v560_v41 = vrot.slane %v4576_v35, %v4560_v31  ;;  %v1276_v50 = vrot.slane %v4576_v35, %v4584_v37  ;;  %v1280_v51 = vrot.slane %v4576_v35, %v4587_v38 }
  0x14   :  { %1414 = vperm.xlu1 %4319, %v42_v4   ;;  %v548_v33 = vrot.slane %v4565_v32, %v4557_v30  ;;  %v552_v34 = vrot.slane %v4565_v32, %v4560_v31  ;;  %v564_v42 = vrot.slane %v4581_v36, %v4557_v30  ;;  %v568_v43 = vrot.slane %v4581_v36, %v4560_v31  ;;  %v1990_v56 = vld [vmem:[%s8202_s2 + $0x28] sm:$0xff]  ;;  %s4383_s23 = smov [#allocation2]  }
  0x15   :  { %v572_v46 = vrot.slane %v4592_v39, %v4557_v30  ;;  %v576_v47 = vrot.slane %v4592_v39, %v4560_v31  ;;  %v1268_v48 = vrot.slane %v4565_v32, %v4584_v37  ;;  %v1272_v49 = vrot.slane %v4565_v32, %v4587_v38  ;;  %s4072_s24 = sshll.u32 %s4383_s23, 4  ;;  %s4073_s24 = int_to_ptr.vmem [resolvable:$true] %s4072_s24 }
  0x16   :  { %750 = vperm.xlu0 %4321, %v4476_v11   ;;  %v4604_v44 = vrot.slane %v548_v33, %v4557_v30  ;;  %v4607_v45 = vrot.slane %v552_v34, %v4557_v30  ;;  %v1284_v54 = vrot.slane %v4581_v36, %v4584_v37  ;;  %v1288_v55 = vrot.slane %v4581_v36, %v4587_v38  ;;  %p4358_p1 = scmp.lt.s32.totalorder %s4073_s24, %s4073_s24 }
  0x17   :  { %v4636_v57 = vrot.slane %v556_v40, %v4557_v30  ;;  %v4639_v58 = vrot.slane %v560_v41, %v4557_v30  ;;  %v4642_v59 = vrot.slane %v564_v42, %v4557_v30  ;;  %v4645_v60 = vrot.slane %v568_v43, %v4557_v30 }
  0x18   :  { %4320 = vset.pattern.permute.xlu1 %v8214_v12  ;;  %8545 = vst [vmem:[#allocation6_spill] sm:$0xff] %v4604_v44  ;;  %8546 = vst [vmem:[#allocation7_spill] sm:$0xff] %v4607_v45  ;;  %v4648_v61 = vrot.slane %v572_v46, %v4557_v30  ;;  %v4651_v62 = vrot.slane %v576_v47, %v4557_v30  ;;  %v1292_v63 = vrot.slane %v4592_v39, %v4584_v37  ;;  %vm3202_vm9 = vcmask 720512  }
  0x19   :  { %231 = vperm.xlu1 %4320, %v45_v0   ;;  %8547 = vst [vmem:[#allocation8_spill] sm:$0xff] %v4636_v57  ;;  %8548 = vst [vmem:[#allocation9_spill] sm:$0xff] %v4639_v58  ;;  %vm3209_vm10 = vcmask 786112   ;;  %vm3216_vm11 = vcmask 851712   ;;  %vm3223_vm12 = vcmask 917312   ;;  %vm3230_vm13 = vcmask 982912  }
  0x1a   :  { %4347 = vset.pattern.permute.xlu0 %v8212_v10  ;;  %8549 = vst [vmem:[#allocation10_spill] sm:$0xff] %v4642_v59  ;;  %8550 = vst [vmem:[#allocation11_spill] sm:$0xff] %v4645_v60  ;;  %vm8543_vm14 = vmmov 0   ;;  %vm3237_vm15 = vcmask 1048512  }
  0x1b   :  { %1410 = vperm.xlu0 %4347, %v41_v1   ;;  %8551 = vst [vmem:[#allocation12_spill] sm:$0xff] %v4648_v61  ;;  %8552 = vst [vmem:[#allocation13_spill] sm:$0xff] %v4651_v62 }
  0x1d   :  { %4322 = vset.pattern.permute.xlu1 %v8212_v10 }
  0x1e   :  { %1418 = vperm.xlu1 %4322, %v43_v6  }
  0x1f   :  { %1430 = vperm.xlu0 %4347, %v46_v3  }
  0x22   :  { %4323 = vset.pattern.permute.xlu1 %v8214_v12 }
  0x23   :  { %236 = vperm.xlu1 %4323, %v46_v3   ;;  %1466 = vperm.xlu0 %4347, %v4485_v13   ;;  %v4662_v3 = vrot.slane %v1272_v49, %v4584_v37 }
  0x25   :  { %8554 = vst [vmem:[#allocation15_spill] sm:$0xff] %v4662_v3 }
  0x27   :  { %4324 = vset.pattern.permute.xlu1 %v8212_v10  ;;  %4350 = vset.pattern.permute.xlu0 %v8214_v12 }
  0x28   :  { %1422 = vperm.xlu1 %4324, %v44_v8   ;;  %211 = vperm.xlu0 %4350, %v41_v1   ;;  %v4659_v1 = vrot.slane %v1268_v48, %v4584_v37 }
  0x2a   :  { %8553 = vst [vmem:[#allocation14_spill] sm:$0xff] %v4659_v1 }
  0x2c   :  { %4325 = vset.pattern.permute.xlu1 %v8211_v2  ;;  %216 = vperm.xlu0 %4350, %v42_v4   ;;  %v4665_v4 = vrot.slane %v1276_v50, %v4584_v37 }
  0x2d   :  { %714 = vperm.xlu1 %4325, %v47_v14  }
  0x2e   :  { %8555 = vst [vmem:[#allocation16_spill] sm:$0xff] %v4665_v4 }
  0x30   :  { %221 = vperm.xlu0 %4350, %v43_v6   ;;  %v68_v6 = vrot.slane %v4565_v32, %v4623_v52 }
  0x31   :  { %4326 = vset.pattern.permute.xlu1 %v8212_v10 }
  0x32   :  { %1426 = vperm.xlu1 %4326, %v45_v0   ;;  %v1296_v0 = vrot.slane %v4592_v39, %v4587_v38  ;;  %v4715_v42 = vrot.slane %v68_v6, %v4623_v52 }
  0x34   :  { %226 = vperm.xlu0 %4350, %v44_v8   ;;  %v72_v8 = vrot.slane %v4565_v32, %v4626_v53  ;;  %8561 = vst [vmem:[#allocation22_spill] sm:$0xff] %v4715_v42 }
  0x36   :  { %4327 = vset.pattern.permute.xlu1 %v8211_v2  ;;  %v4718_v43 = vrot.slane %v72_v8, %v4623_v52 }
  0x37   :  { %718 = vperm.xlu1 %4327, %v48_v15  }
  0x38   :  { %241 = vperm.xlu0 %4350, %v47_v14   ;;  %8562 = vst [vmem:[#allocation23_spill] sm:$0xff] %v4718_v43 }
  0x3b   :  { %4328 = vset.pattern.permute.xlu1 %v8214_v12 }
  0x3c   :  { %2003 = vperm.xlu1 %4328, %v1985_v16   ;;  %246 = vperm.xlu0 %4350, %v48_v15   ;;  %v37_v16 = vld [vmem:[%s8200_s0 + $0x20] sm:$0x77] }
  0x3d   :  { %v100_v32 = vrot.slane %v37_v16, %v4623_v52  ;;  %v104_v33 = vrot.slane %v37_v16, %v4626_v53  ;;  %v580_v34 = vrot.slane %v37_v16, %v4557_v30 }
  0x40   :  { %2008 = vperm.xlu1 %4328, %v1986_v17   ;;  %251 = vperm.xlu0 %4350, %v49_v18   ;;  %v76_v17 = vrot.slane %v4576_v35, %v4623_v52 }
  0x42   :  { %v4721_v46 = vrot.slane %v76_v17, %v4623_v52 }
  0x44   :  { %4329 = vset.pattern.permute.xlu1 %v8211_v2  ;;  %2013 = vperm.xlu0 %4350, %v1987_v19   ;;  %v84_v19 = vrot.slane %v4581_v36, %v4623_v52 }
  0x45   :  { %722 = vperm.xlu1 %4329, %v49_v18  }
  0x46   :  { %v4727_v48 = vrot.slane %v84_v19, %v4623_v52 }
  0x48   :  { %261 = vperm.xlu0 %4350, %v4517_v20   ;;  %8564 = vst [vmem:[#allocation25_spill] sm:$0xff] %v4727_v48 }
  0x49   :  { %4330 = vset.pattern.permute.xlu1 %v8212_v10 }
  0x4a   :  { %1434 = vperm.xlu1 %4330, %v47_v14   ;;  %v4675_v14 = vrot.slane %v1284_v54, %v4584_v37  ;;  %v4739_v54 = vrot.slane %v100_v32, %v4623_v52 }
  0x4c   :  { %2023 = vperm.xlu0 %4350, %v1989_v21   ;;  %8557 = vst [vmem:[#allocation18_spill] sm:$0xff] %v4675_v14  ;;  %v88_v21 = vrot.slane %v4581_v36, %v4626_v53  ;;  %v1300_v36 = vrot.slane %v37_v16, %v4584_v37  ;;  %8568 = vst [vmem:[#allocation29_spill] sm:$0xff] %v4739_v54 }
  0x4e   :  { %4331 = vset.pattern.permute.xlu1 %v8214_v12  ;;  %v4730_v49 = vrot.slane %v88_v21, %v4623_v52  ;;  %v4754_v6 = vrot.slane %v1300_v36, %v4584_v37 }
  0x4f   :  { %256 = vperm.xlu1 %4331, %v4451_v5  }
  0x50   :  { %271 = vperm.xlu0 %4350, %v4528_v22   ;;  %8565 = vst [vmem:[#allocation26_spill] sm:$0xff] %v4730_v49  ;;  %8572 = vst [vmem:[#allocation33_spill] sm:$0xff] %v4754_v6 }
  0x53   :  { %4332 = vset.pattern.permute.xlu1 %v8212_v10 }
  0x54   :  { %1438 = vperm.xlu1 %4332, %v48_v15   ;;  %2033 = vperm.xlu0 %4350, %v1991_v23   ;;  %v4678_v15 = vrot.slane %v1288_v55, %v4584_v37  ;;  %v38_v23 = vld [vmem:[%s8200_s0 + $0x28] sm:$0x77]  ;;  %v4742_v55 = vrot.slane %v104_v33, %v4623_v52 }
  0x55   :  { %v588_v40 = vrot.slane %v38_v23, %v4557_v30  ;;  %v592_v41 = vrot.slane %v38_v23, %v4560_v31  ;;  %v108_v19 = vrot.slane %v38_v23, %v4623_v52  ;;  %v112_v21 = vrot.slane %v38_v23, %v4626_v53 }
  0x56   :  { %8558 = vst [vmem:[#allocation19_spill] sm:$0xff] %v4678_v15  ;;  %8569 = vst [vmem:[#allocation30_spill] sm:$0xff] %v4742_v55 }
  0x57   :  { %v4763_v17 = vrot.slane %v592_v41, %v4557_v30 }
  0x58   :  { %4333 = vset.pattern.permute.xlu1 %v8214_v12  ;;  %281 = vperm.xlu0 %4350, %v4485_v13  }
  0x59   :  { %2018 = vperm.xlu1 %4333, %v1988_v24   ;;  %v92_v24 = vrot.slane %v4592_v39, %v4623_v52  ;;  %8575 = vst [vmem:[#allocation36_spill] sm:$0xff] %v4763_v17 }
  0x5b   :  { %v4733_v50 = vrot.slane %v92_v24, %v4623_v52  ;;  %v1308_v24 = vrot.slane %v38_v23, %v4584_v37 }
  0x5c   :  { %2043 = vperm.xlu0 %4350, %v1993_v25   ;;  %v96_v25 = vrot.slane %v4592_v39, %v4626_v53  ;;  %v1304_v39 = vrot.slane %v37_v16, %v4587_v38 }
  0x5d   :  { %4334 = vset.pattern.permute.xlu1 %v8211_v2  ;;  %8566 = vst [vmem:[#allocation27_spill] sm:$0xff] %v4733_v50 }
  0x5e   :  { %730 = vperm.xlu1 %4334, %v4517_v20   ;;  %v4757_v8 = vrot.slane %v1304_v39, %v4584_v37 }
  0x60   :  { %2058 = vperm.xlu0 %4350, %v1996_v27   ;;  %v4699_v27 = vrot.slane %v1292_v63, %v4584_v37  ;;  %8573 = vst [vmem:[#allocation34_spill] sm:$0xff] %v4757_v8 }
  0x62   :  { %4335 = vset.pattern.permute.xlu1 %v8212_v10  ;;  %8559 = vst [vmem:[#allocation20_spill] sm:$0xff] %v4699_v27 }
  0x63   :  { %1442 = vperm.xlu1 %4335, %v49_v18   ;;  %v80_v18 = vrot.slane %v4576_v35, %v4626_v53  ;;  %v584_v35 = vrot.slane %v37_v16, %v4560_v31  ;;  %v4760_v16 = vrot.slane %v588_v40, %v4557_v30 }
  0x64   :  { %2073 = vperm.xlu0 %4350, %v1999_v29   ;;  %v4702_v29 = vrot.slane %v1296_v0, %v4584_v37  ;;  %v39_v0 = vld [vmem:[%s8200_s0 + $0x30] sm:$0x77] }
  0x65   :  { %v4724_v47 = vrot.slane %v80_v18, %v4623_v52  ;;  %v4748_v63 = vrot.slane %v584_v35, %v4557_v30  ;;  %8574 = vst [vmem:[#allocation35_spill] sm:$0xff] %v4760_v16  ;;  %v40_v18 = vld [vmem:[%s8200_s0 + $0x38] sm:$0x77]  ;;  %v596_v32 = vrot.slane %v39_v0, %v4557_v30  ;;  %v600_v33 = vrot.slane %v39_v0, %v4560_v31 }
  0x66   :  { %8560 = vst [vmem:[#allocation21_spill] sm:$0xff] %v4702_v29  ;;  %v1320_v35 = vrot.slane %v39_v0, %v4587_v38  ;;  %v116_v36 = vrot.slane %v39_v0, %v4623_v52  ;;  %v120_v39 = vrot.slane %v39_v0, %v4626_v53  ;;  %v604_v40 = vrot.slane %v40_v18, %v4557_v30 }
  0x67   :  { %4336 = vset.pattern.permute.xlu1 %v8214_v12  ;;  %8563 = vst [vmem:[#allocation24_spill] sm:$0xff] %v4724_v47  ;;  %8571 = vst [vmem:[#allocation32_spill] sm:$0xff] %v4748_v63  ;;  %v608_v41 = vrot.slane %v40_v18, %v4560_v31  ;;  %v1324_v26 = vrot.slane %v40_v18, %v4584_v37  ;;  %v8580_v31 = vmov 0   ;;  %v4803_v55 = vrot.slane %v600_v33, %v4557_v30 }
  0x68   :  { %266 = vperm.xlu1 %4336, %v4460_v7  }
  0x69   :  { %8582 = vst [vmem:[#allocation42_spill] sm:$0xff] %v4803_v55 }
  0x6c   :  { %4337 = vset.pattern.permute.xlu1 %v8212_v10 }
  0x6d   :  { %1446 = vperm.xlu1 %4337, %v4451_v5   ;;  %v4668_v5 = vrot.slane %v1280_v51, %v4584_v37  ;;  %v4736_v51 = vrot.slane %v96_v25, %v4623_v52  ;;  %v1312_v25 = vrot.slane %v38_v23, %v4587_v38  ;;  %v124_v23 = vrot.slane %v40_v18, %v4623_v52 }
  0x6f   :  { %8556 = vst [vmem:[#allocation17_spill] sm:$0xff] %v4668_v5  ;;  %8567 = vst [vmem:[#allocation28_spill] sm:$0xff] %v4736_v51  ;;  %v4796_v28 = vrot.slane %v1312_v25, %v4584_v37  ;;  %v4822_v25 = vrot.slane %v608_v41, %v4557_v30 }
  0x71   :  { %4338 = vset.pattern.permute.xlu1 %v8214_v12  ;;  %v4790_v12 = vrot.slane %v112_v21, %v4623_v52  ;;  %8579 = vst [vmem:[#allocation40_spill] sm:$0xff] %v4796_v28  ;;  %v4816_v21 = vrot.slane %v120_v39, %v4623_v52  ;;  %8588 = vst [vmem:[#allocation48_spill] sm:$0xff] %v4822_v25 }
  0x72   :  { %2028 = vperm.xlu1 %4338, %v1990_v56   ;;  %v4745_v56 = vrot.slane %v580_v34, %v4557_v30  ;;  %v1316_v34 = vrot.slane %v39_v0, %v4584_v37  ;;  %v4793_v0 = vrot.slane %v1308_v24, %v4584_v37  ;;  %v4819_v24 = vrot.slane %v604_v40, %v4557_v30 }
  0x73   :  { %8577 = vst [vmem:[#allocation38_spill] sm:$0xff] %v4790_v12  ;;  %8586 = vst [vmem:[#allocation46_spill] sm:$0xff] %v4816_v21 }
  0x74   :  { %8570 = vst [vmem:[#allocation31_spill] sm:$0xff] %v4745_v56  ;;  %8578 = vst [vmem:[#allocation39_spill] sm:$0xff] %v4793_v0 }
  0x75   :  { %8587 = vst [vmem:[#allocation47_spill] sm:$0xff] %v4819_v24 }
  0x76   :  { %4339 = vset.pattern.permute.xlu1 %v8211_v2  ;;  %v1328_v2 = vrot.slane %v40_v18, %v4587_v38  ;;  %v4806_v38 = vrot.slane %v1316_v34, %v4584_v37  ;;  %v4829_v34 = vrot.slane %v124_v23, %v4623_v52 }
  0x77   :  { %738 = vperm.xlu1 %4339, %v4528_v22  }
  0x78   :  { %8583 = vst [vmem:[#allocation43_spill] sm:$0xff] %v4806_v38  ;;  %8590 = vst [vmem:[#allocation50_spill] sm:$0xff] %v4829_v34  ;;  %v4838_v39 = vrot.slane %v1328_v2, %v4584_v37 }
  0x7a   :  { %8593 = vst [vmem:[#allocation53_spill] sm:$0xff] %v4838_v39 }
  0x7b   :  { %4340 = vset.pattern.permute.xlu1 %v8212_v10  ;;  %v4787_v10 = vrot.slane %v108_v19, %v4623_v52  ;;  %v4813_v19 = vrot.slane %v116_v36, %v4623_v52  ;;  %v4835_v36 = vrot.slane %v1324_v26, %v4584_v37 }
  0x7c   :  { %1450 = vperm.xlu1 %4340, %v4517_v20   ;;  %v128_v20 = vrot.slane %v40_v18, %v4626_v53  ;;  %v4800_v53 = vrot.slane %v596_v32, %v4557_v30  ;;  %v4809_v18 = vrot.slane %v1320_v35, %v4584_v37 }
  0x7d   :  { %8576 = vst [vmem:[#allocation37_spill] sm:$0xff] %v4787_v10  ;;  %8585 = vst [vmem:[#allocation45_spill] sm:$0xff] %v4813_v19 }
  0x7e   :  { %8581 = vst [vmem:[#allocation41_spill] sm:$0xff] %v4800_v53  ;;  %8584 = vst [vmem:[#allocation44_spill] sm:$0xff] %v4809_v18  ;;  %v4832_v35 = vrot.slane %v128_v20, %v4623_v52  ;;  %v8602_v20 = vmov 2  }
  0x7f   :  { %8592 = vst [vmem:[#allocation52_spill] sm:$0xff] %v4835_v36 }
  0x80   :  { %4341 = vset.pattern.permute.xlu1 %v8580_v31  ;;  %8591 = vst [vmem:[#allocation51_spill] sm:$0xff] %v4832_v35 }
  0x81   :  { %276 = vperm.xlu1 %4341, %v4469_v9   ;;  %v4826_v33 = vpop.permute.xlu0 %706 }
  0x82   :  { %v4824_v32 = vpop.permute.xlu1 %690  ;;  %8589 = vst [vmem:[#allocation49_spill] sm:$0xff] %v4826_v33  ;;  %v4875_v39 = vmul.f32 %v4826_v33, %v4604_v44  ;;  %v4879_v36 = vmul.f32 %v4826_v33, %v4607_v45  ;;  %v4896_v12 = vmul.f32 %v4826_v33, %v4636_v57  ;;  %v4900_v10 = vmul.f32 %v4826_v33, %v4639_v58 }
  0x83   :  { %v4842_v30 = vmul.f32 %v4824_v32, %v4604_v44  ;;  %v4846_v40 = vmul.f32 %v4824_v32, %v4607_v45  ;;  %v4850_v41 = vmul.f32 %v4824_v32, %v4636_v57  ;;  %v4854_v52 = vmul.f32 %v4824_v32, %v4639_v58 }
  0x84   :  { %v4858_v2 = vmul.f32 %v4824_v32, %v4648_v61  ;;  %v4862_v26 = vmul.f32 %v4824_v32, %v4651_v62  ;;  %v4866_v37 = vmul.f32 %v4824_v32, %v4642_v59  ;;  %v4870_v23 = vmul.f32 %v4824_v32, %v4645_v60 }
  0x85   :  { %8594 = vst [vmem:[#allocation54_spill] sm:$0xff] %v4842_v30  ;;  %8595 = vst [vmem:[#allocation55_spill] sm:$0xff] %v4846_v40  ;;  %4342 = vset.pattern.permute.xlu1 %v8602_v20  ;;  %v4883_v35 = vmul.f32 %v4824_v32, %v4745_v56  ;;  %v4887_v34 = vmul.f32 %v4824_v32, %v4748_v63  ;;  %v4892_v19 = vpop.permute.xlu0 %710 }
  0x86   :  { %8596 = vst [vmem:[#allocation56_spill] sm:$0xff] %v4850_v41  ;;  %8597 = vst [vmem:[#allocation57_spill] sm:$0xff] %v4854_v52  ;;  %1454 = vperm.xlu1 %4342, %v4460_v7   ;;  %v4890_v21 = vpop.permute.xlu1 %694  ;;  %v4951_v52 = vmul.f32 %v4892_v19, %v4607_v45  ;;  %v4968_v41 = vmul.f32 %v4892_v19, %v4636_v57  ;;  %v4972_v40 = vmul.f32 %v4892_v19, %v4639_v58 }
  0x87   :  { %8598 = vst [vmem:[#allocation58_spill] sm:$0xff] %v4858_v2  ;;  %8599 = vst [vmem:[#allocation59_spill] sm:$0xff] %v4862_v26  ;;  %v4912_v7 = vmul.f32 %v4890_v21, %v4636_v57  ;;  %v4916_v54 = vmul.f32 %v4890_v21, %v4639_v58  ;;  %v1992_v26 = vld [vmem:[%s8202_s2 + $0x38] sm:$0xff]  ;;  %v4931_v2 = vmul.f32 %v4890_v21, %v4604_v44 }
  0x88   :  { %8600 = vst [vmem:[#allocation60_spill] sm:$0xff] %v4866_v37  ;;  %8601 = vst [vmem:[#allocation61_spill] sm:$0xff] %v4870_v23  ;;  %v4920_v23 = vmul.f32 %v4890_v21, %v4642_v59  ;;  %v4924_v37 = vmul.f32 %v4890_v21, %v4645_v60 }
  0x89   :  { %8603 = vst [vmem:[#allocation62_spill] sm:$0xff] %v4883_v35  ;;  %8604 = vst [vmem:[#allocation63_spill] sm:$0xff] %v4887_v34  ;;  %v4904_v35 = vmul.f32 %v4826_v33, %v4642_v59  ;;  %v4908_v34 = vmul.f32 %v4826_v33, %v4645_v60 }
  0x8a   :  { %8605 = vst [vmem:[#allocation64_spill] sm:$0xff] %v4890_v21  ;;  %8606 = vst [vmem:[#allocation65_spill] sm:$0xff] %v4892_v19  ;;  %4343 = vset.pattern.permute.xlu1 %v8580_v31 }
  0x8b   :  { %8607 = vst [vmem:[#allocation66_spill] sm:$0xff] %v4912_v7  ;;  %8608 = vst [vmem:[#allocation67_spill] sm:$0xff] %v4916_v54  ;;  %v4935_v7 = vmul.f32 %v4890_v21, %v4607_v45  ;;  %v4939_v54 = vmul.f32 %v4890_v21, %v4648_v61  ;;  %2038 = vperm.xlu1 %4343, %v1992_v26  }
  0x8c   :  { %8609 = vst [vmem:[#allocation68_spill] sm:$0xff] %v4920_v23  ;;  %8610 = vst [vmem:[#allocation69_spill] sm:$0xff] %v4924_v37  ;;  %v4943_v23 = vmul.f32 %v4890_v21, %v4651_v62  ;;  %v4947_v37 = vmul.f32 %v4892_v19, %v4604_v44 }
  0x8d   :  { %8611 = vst [vmem:[#allocation70_spill] sm:$0xff] %v4931_v2  ;;  %8612 = vst [vmem:[#allocation71_spill] sm:$0xff] %v4935_v7  ;;  %v4955_v2 = vmul.f32 %v4890_v21, %v4745_v56  ;;  %v4959_v7 = vmul.f32 %v4890_v21, %v4748_v63 }
  0x8e   :  { %8613 = vst [vmem:[#allocation72_spill] sm:$0xff] %v4939_v54  ;;  %8614 = vst [vmem:[#allocation73_spill] sm:$0xff] %v4943_v23  ;;  %v4962_v54 = vpop.permute.xlu1 %698  ;;  %v4964_v23 = vpop.permute.xlu0 %726 }
  0x8f   :  { %8615 = vst [vmem:[#allocation74_spill] sm:$0xff] %v4947_v37  ;;  %8616 = vst [vmem:[#allocation75_spill] sm:$0xff] %v4951_v52  ;;  %v4988_v30 = vmul.f32 %v4962_v54, %v4639_v58  ;;  %v5004_v26 = vmul.f32 %v4962_v54, %v4645_v60 }
  0x90   :  { %8617 = vst [vmem:[#allocation76_spill] sm:$0xff] %v4955_v2  ;;  %8618 = vst [vmem:[#allocation77_spill] sm:$0xff] %v4959_v7  ;;  %v4976_v2 = vmul.f32 %v4890_v21, %v4760_v16  ;;  %v4980_v7 = vmul.f32 %v4890_v21, %v4763_v17 }
  0x91   :  { %8619 = vst [vmem:[#allocation78_spill] sm:$0xff] %v4962_v54  ;;  %8620 = vst [vmem:[#allocation79_spill] sm:$0xff] %v4964_v23  ;;  %v4984_v23 = vmul.f32 %v4962_v54, %v4636_v57 }
  0x92   :  { %8621 = vst [vmem:[#allocation80_spill] sm:$0xff] %v4968_v41  ;;  %8622 = vst [vmem:[#allocation81_spill] sm:$0xff] %v4972_v40  ;;  %v4992_v40 = vmul.f32 %v4962_v54, %v4604_v44  ;;  %v5032_v41 = vpop.permute.xlu0 %734 }
  0x93   :  { %8623 = vst [vmem:[#allocation82_spill] sm:$0xff] %v4976_v2  ;;  %8624 = vst [vmem:[#allocation83_spill] sm:$0xff] %v4980_v7  ;;  %v4996_v2 = vmul.f32 %v4962_v54, %v4607_v45  ;;  %v5000_v7 = vmul.f32 %v4962_v54, %v4642_v59 }
  0x94   :  { %8625 = vst [vmem:[#allocation84_spill] sm:$0xff] %v4984_v23  ;;  %8626 = vst [vmem:[#allocation85_spill] sm:$0xff] %v4988_v30  ;;  %v5008_v23 = vmul.f32 %v4962_v54, %v4648_v61  ;;  %v5012_v30 = vmul.f32 %v4962_v54, %v4651_v62 }
  0x95   :  { %8627 = vst [vmem:[#allocation86_spill] sm:$0xff] %v4992_v40  ;;  %8628 = vst [vmem:[#allocation87_spill] sm:$0xff] %v4996_v2  ;;  %v5016_v40 = vmul.f32 %v4962_v54, %v4745_v56  ;;  %v5020_v2 = vmul.f32 %v4962_v54, %v4748_v63 }
  0x96   :  { %8629 = vst [vmem:[#allocation88_spill] sm:$0xff] %v5000_v7  ;;  %8630 = vst [vmem:[#allocation89_spill] sm:$0xff] %v5004_v26  ;;  %v5024_v7 = vmul.f32 %v4824_v32, %v4760_v16  ;;  %v5028_v26 = vmul.f32 %v4824_v32, %v4763_v17 }
  0x97   :  { %8631 = vst [vmem:[#allocation90_spill] sm:$0xff] %v5008_v23  ;;  %8632 = vst [vmem:[#allocation91_spill] sm:$0xff] %v5012_v30  ;;  %v5030_v23 = vpop.permute.xlu1 %702  ;;  %v5036_v30 = vmul.f32 %v4826_v33, %v4648_v61 }
  0x98   :  { %8633 = vst [vmem:[#allocation92_spill] sm:$0xff] %v5016_v40  ;;  %8634 = vst [vmem:[#allocation93_spill] sm:$0xff] %v5020_v2  ;;  %v5040_v40 = vmul.f32 %v4826_v33, %v4651_v62  ;;  %v5044_v2 = vmul.f32 %v4962_v54, %v4760_v16  ;;  %v5057_v52 = vmul.f32 %v5030_v23, %v4639_v58 }
  0x99   :  { %8635 = vst [vmem:[#allocation94_spill] sm:$0xff] %v5024_v7  ;;  %8636 = vst [vmem:[#allocation95_spill] sm:$0xff] %v5028_v26  ;;  %v5048_v7 = vmul.f32 %v4962_v54, %v4763_v17  ;;  %v8641_v26 = vmov 1   ;;  %v5061_v37 = vmul.f32 %v5030_v23, %v4604_v44  ;;  %v5078_v58 = vmul.f32 %v5030_v23, %v4648_v61 }
  0x9a   :  { %8637 = vst [vmem:[#allocation96_spill] sm:$0xff] %v5030_v23  ;;  %8638 = vst [vmem:[#allocation97_spill] sm:$0xff] %v5032_v41  ;;  %4344 = vset.pattern.permute.xlu1 %v8641_v26  ;;  %v5053_v41 = vmul.f32 %v5030_v23, %v4636_v57  ;;  %v5070_v26 = vmul.f32 %v5030_v23, %v4642_v59  ;;  %v5082_v44 = vmul.f32 %v5030_v23, %v4651_v62 }
  0x9b   :  { %8639 = vst [vmem:[#allocation98_spill] sm:$0xff] %v5044_v2  ;;  %8640 = vst [vmem:[#allocation99_spill] sm:$0xff] %v5048_v7  ;;  %v5065_v2 = vmul.f32 %v5030_v23, %v4607_v45  ;;  %746 = vperm.xlu1 %4344, %v4485_v13   ;;  %v5074_v7 = vmul.f32 %v5030_v23, %v4645_v60  ;;  %v5086_v45 = vmul.f32 %v4892_v19, %v4642_v59 }
  0x9c   :  { %8642 = vst [vmem:[#allocation100_spill] sm:$0xff] %v5061_v37  ;;  %8644 = vst [vmem:[#allocation102_spill] sm:$0xff] %v5070_v26  ;;  %v5090_v13 = vmul.f32 %v4892_v19, %v4645_v60  ;;  %v5094_v57 = vmul.f32 %v4890_v21, %v4800_v53  ;;  %v5108_v59 = vmul.f32 %v5030_v23, %v4748_v63 }
  0x9d   :  { %8643 = vst [vmem:[#allocation101_spill] sm:$0xff] %v5065_v2  ;;  %8645 = vst [vmem:[#allocation103_spill] sm:$0xff] %v5074_v7  ;;  %v5098_v7 = vmul.f32 %v4890_v21, %v4803_v55  ;;  %v5112_v60 = vmul.f32 %v4824_v32, %v4800_v53  ;;  %v5118_v21 = vpop.permute.xlu1 %1414 }
  0x9e   :  { %8646 = vst [vmem:[#allocation104_spill] sm:$0xff] %v5078_v58  ;;  %8647 = vst [vmem:[#allocation105_spill] sm:$0xff] %v5082_v44  ;;  %v5100_v58 = vpop.permute.xlu0 %742  ;;  %v5104_v44 = vmul.f32 %v5030_v23, %v4745_v56 }
  0x9f   :  { %8648 = vst [vmem:[#allocation106_spill] sm:$0xff] %v5086_v45  ;;  %8649 = vst [vmem:[#allocation107_spill] sm:$0xff] %v5090_v13  ;;  %4345 = vset.pattern.permute.xlu1 %v8602_v20  ;;  %v5190_v13 = vmul.f32 %v5118_v21, %v4806_v38  ;;  %v5198_v45 = vmul.f32 %v4824_v32, %v4819_v24  ;;  %v5212_v38 = vmul.f32 %v4826_v33, %v4748_v63 }
  0xa0   :  { %8650 = vst [vmem:[#allocation108_spill] sm:$0xff] %v5094_v57  ;;  %8651 = vst [vmem:[#allocation109_spill] sm:$0xff] %v5098_v7  ;;  %v5116_v57 = vmul.f32 %v4824_v32, %v4803_v55  ;;  %1458 = vperm.xlu1 %4345, %v4528_v22   ;;  %v5174_v22 = vmul.f32 %v5118_v21, %v4754_v6  ;;  %v5186_v7 = vmul.f32 %v5118_v21, %v4796_v28 }
  0xa1   :  { %8652 = vst [vmem:[#allocation110_spill] sm:$0xff] %v5100_v58  ;;  %8653 = vst [vmem:[#allocation111_spill] sm:$0xff] %v5104_v44  ;;  %v5122_v58 = vmul.f32 %v4892_v19, %v4648_v61  ;;  %v5126_v44 = vmul.f32 %v4892_v19, %v4651_v62  ;;  %v5143_v61 = vmul.f32 %v5118_v21, %v4668_v5 }
  0xa2   :  { %8654 = vst [vmem:[#allocation112_spill] sm:$0xff] %v5108_v59  ;;  %8655 = vst [vmem:[#allocation113_spill] sm:$0xff] %v5112_v60  ;;  %v5130_v59 = vmul.f32 %v5030_v23, %v4760_v16  ;;  %v5134_v60 = vmul.f32 %v5030_v23, %v4763_v17  ;;  %v5147_v62 = vmul.f32 %v5118_v21, %v4675_v14 }
  0xa3   :  { %8656 = vst [vmem:[#allocation114_spill] sm:$0xff] %v5116_v57  ;;  %8657 = vst [vmem:[#allocation115_spill] sm:$0xff] %v5118_v21  ;;  %v5139_v57 = vmul.f32 %v5118_v21, %v4665_v4  ;;  %v5151_v16 = vmul.f32 %v5118_v21, %v4678_v15  ;;  %v5156_v17 = vmul.f32 %v5118_v21, %v4659_v1 }
  0xa4   :  { %8658 = vst [vmem:[#allocation116_spill] sm:$0xff] %v5122_v58  ;;  %8659 = vst [vmem:[#allocation117_spill] sm:$0xff] %v5126_v44  ;;  %v5160_v23 = vmul.f32 %v5118_v21, %v4662_v3  ;;  %v5164_v19 = vmul.f32 %v5118_v21, %v4699_v27  ;;  %v5178_v44 = vmul.f32 %v5118_v21, %v4757_v8  ;;  %4346 = vset.pattern.permute.xlu1 %v8580_v31 }
  0xa5   :  { %8660 = vst [vmem:[#allocation118_spill] sm:$0xff] %v5130_v59  ;;  %8661 = vst [vmem:[#allocation119_spill] sm:$0xff] %v5134_v60  ;;  %v5168_v60 = vmul.f32 %v5118_v21, %v4702_v29  ;;  %v5170_v59 = vpop.permute.xlu0 %750  ;;  %v5182_v58 = vmul.f32 %v5118_v21, %v4793_v0  ;;  %v5220_v24 = vmul.f32 %v4962_v54, %v4803_v55  ;;  %286 = vperm.xlu1 %4346, %v4476_v11  }
  0xa6   :  { %8662 = vst [vmem:[#allocation120_spill] sm:$0xff] %v5164_v19  ;;  %8664 = vst [vmem:[#allocation122_spill] sm:$0xff] %v5170_v59  ;;  %v5194_v59 = vmul.f32 %v5118_v21, %v4809_v18  ;;  %v5216_v21 = vmul.f32 %v4962_v54, %v4800_v53 }
  0xa7   :  { %8663 = vst [vmem:[#allocation121_spill] sm:$0xff] %v5168_v60  ;;  %8665 = vst [vmem:[#allocation123_spill] sm:$0xff] %v5174_v22 }
  0xa8   :  { %8666 = vst [vmem:[#allocation124_spill] sm:$0xff] %v5178_v44  ;;  %8667 = vst [vmem:[#allocation125_spill] sm:$0xff] %v5182_v58  ;;  %v5202_v44 = vmul.f32 %v4824_v32, %v4822_v25  ;;  %v5204_v58 = vpop.permute.xlu1 %231 }
  0xa9   :  { %8668 = vst [vmem:[#allocation126_spill] sm:$0xff] %v5186_v7  ;;  %8669 = vst [vmem:[#allocation127_spill] sm:$0xff] %v5190_v13  ;;  %v5208_v7 = vmul.f32 %v4826_v33, %v4745_v56  ;;  %v297_v32 = vmul.f32 %v5204_v58, %v4715_v42  ;;  %v298_v56 = vmul.f32 %v5204_v58, %v4718_v43  ;;  %4348 = vset.pattern.permute.xlu1 %v8602_v20 }
  0xaa   :  { %8670 = vst [vmem:[#allocation128_spill] sm:$0xff] %v5194_v59  ;;  %8671 = vst [vmem:[#allocation129_spill] sm:$0xff] %v5198_v45  ;;  %v329_v33 = vmul.f32 %v5204_v58, %v4721_v46  ;;  %v330_v63 = vmul.f32 %v5204_v58, %v4724_v47  ;;  %v361_v54 = vmul.f32 %v5204_v58, %v4727_v48  ;;  %1462 = vperm.xlu1 %4348, %v4469_v9  }
  0xab   :  { %8672 = vst [vmem:[#allocation130_spill] sm:$0xff] %v5202_v44  ;;  %8673 = vst [vmem:[#allocation131_spill] sm:$0xff] %v5204_v58  ;;  %v362_v55 = vmul.f32 %v5204_v58, %v4730_v49  ;;  %v393_v53 = vmul.f32 %v5204_v58, %v4733_v50  ;;  %v394_v25 = vmul.f32 %v5204_v58, %v4736_v51 }
  0xac   :  { %8674 = vst [vmem:[#allocation132_spill] sm:$0xff] %v5208_v7  ;;  %8675 = vst [vmem:[#allocation133_spill] sm:$0xff] %v5212_v38  ;;  %v5246_v38 = vadd.f32 %v4879_v36, %v298_v56  ;;  %v5249_v7 = vadd.f32 %v4896_v12, %v329_v33  ;;  %v5252_v44 = vadd.f32 %v4900_v10, %v330_v63  ;;  %v5270_v12 = vpop.permute.xlu1 %1418 }
  0xad   :  { %8676 = vst [vmem:[#allocation134_spill] sm:$0xff] %v5216_v21  ;;  %8677 = vst [vmem:[#allocation135_spill] sm:$0xff] %v5220_v24  ;;  %v5240_v24 = vpop.permute.xlu0 %1410  ;;  %v5243_v21 = vadd.f32 %v4875_v39, %v297_v32  ;;  %v5291_v32 = vmul.f32 %v5270_v12, %v4665_v4  ;;  %v5295_v18 = vmul.f32 %v5270_v12, %v4668_v5 }
  0xae   :  { %8678 = vst [vmem:[#allocation136_spill] sm:$0xff] %v5240_v24  ;;  %8679 = vst [vmem:[#allocation137_spill] sm:$0xff] %v5249_v7  ;;  %v5256_v45 = vmul.f32 %v5240_v24, %v4659_v1  ;;  %v5260_v58 = vmul.f32 %v5240_v24, %v4662_v3  ;;  %v5264_v39 = vmul.f32 %v5240_v24, %v4665_v4  ;;  %4349 = vset.pattern.permute.xlu1 %v8580_v31 }
  0xaf   :  { %8680 = vst [vmem:[#allocation138_spill] sm:$0xff] %v5252_v44  ;;  %v5268_v56 = vmul.f32 %v5240_v24, %v4668_v5  ;;  %8681 = vst [vmem:[#allocation139_spill] sm:$0xff] %v5270_v12  ;;  %v5274_v10 = vmul.f32 %v5240_v24, %v4699_v27  ;;  %v5278_v63 = vmul.f32 %v5240_v24, %v4702_v29 }
  0xb0   :  { %v5282_v33 = vmul.f32 %v5240_v24, %v4675_v14  ;;  %v5286_v36 = vmul.f32 %v5240_v24, %v4678_v15  ;;  %v5299_v59 = vmul.f32 %v5270_v12, %v4659_v1  ;;  %v5303_v13 = vmul.f32 %v5270_v12, %v4662_v3 }
  0xb1   :  { %v5306_v22 = vpop.permute.xlu0 %1430  ;;  %v5310_v44 = vmul.f32 %v5270_v12, %v4675_v14  ;;  %v5314_v7 = vmul.f32 %v5270_v12, %v4678_v15  ;;  %v5318_v60 = vmul.f32 %v5240_v24, %v4754_v6  ;;  %v5322_v19 = vmul.f32 %v5240_v24, %v4757_v8 }
  0xb2   :  { %8682 = vst [vmem:[#allocation140_spill] sm:$0xff] %v5306_v22  ;;  %v1483_v9 = vmul.f32 %v5306_v22, %v4659_v1  ;;  %v1484_v26 = vmul.f32 %v5306_v22, %v4662_v3  ;;  %v5343_v2 = vadd.f32 %v4908_v34, %v362_v55  ;;  %v5347_v37 = vmul.f32 %v5270_v12, %v4754_v6 }
  0xb3   :  { %8683 = vst [vmem:[#allocation141_spill] sm:$0xff] %v5310_v44  ;;  %8684 = vst [vmem:[#allocation142_spill] sm:$0xff] %v5314_v7  ;;  %v5330_v44 = vmul.f32 %v5270_v12, %v4699_v27  ;;  %v5334_v7 = vmul.f32 %v5270_v12, %v4702_v29  ;;  %v5351_v27 = vmul.f32 %v5270_v12, %v4757_v8  ;;  %v5353_v29 = vpop.permute.xlu1 %236 }
  0xb4   :  { %8685 = vst [vmem:[#allocation143_spill] sm:$0xff] %v5318_v60  ;;  %8686 = vst [vmem:[#allocation144_spill] sm:$0xff] %v5322_v19  ;;  %v1994_v60 = vld [vmem:[%s8202_s2 + $0x48] sm:$0xff]  ;;  %v5340_v19 = vadd.f32 %v4904_v35, %v361_v54  ;;  %v1516_v54 = vmul.f32 %v5306_v22, %v4668_v5  ;;  %v5361_v55 = vmul.f32 %v5240_v24, %v4793_v0 }
  0xb5   :  { %8687 = vst [vmem:[#allocation145_spill] sm:$0xff] %v5330_v44  ;;  %8688 = vst [vmem:[#allocation146_spill] sm:$0xff] %v5334_v7  ;;  %v1515_v7 = vmul.f32 %v5306_v22, %v4665_v4  ;;  %v5365_v34 = vmul.f32 %v5240_v24, %v4796_v28  ;;  %v5368_v35 = vpop.permute.xlu0 %1466  ;;  %v299_v8 = vmul.f32 %v5353_v29, %v4715_v42  ;;  %2048 = vperm.xlu1 %4349, %v1994_v60   ;;  %v8702_v44 = vld [vmem:[#allocation75_spill] sm:$0xff] }
  0xb6   :  { %8689 = vst [vmem:[#allocation147_spill] sm:$0xff] %v5340_v19  ;;  %8690 = vst [vmem:[#allocation148_spill] sm:$0xff] %v5343_v2  ;;  %v300_v6 = vmul.f32 %v5353_v29, %v4718_v43  ;;  %v5379_v24 = vadd.f32 %v5036_v30, %v393_v53  ;;  %v1995_v2 = vld [vmem:[%s8202_s2 + $0x50] sm:$0xff]  ;;  %v8703_v30 = vld [vmem:[#allocation80_spill] sm:$0xff] }
  0xb7   :  { %8691 = vst [vmem:[#allocation149_spill] sm:$0xff] %v5347_v37  ;;  %8692 = vst [vmem:[#allocation150_spill] sm:$0xff] %v5351_v27  ;;  %v331_v27 = vmul.f32 %v5353_v29, %v4721_v46  ;;  %v5390_v37 = vmul.f32 %v5270_v12, %v4796_v28  ;;  %v8701_v19 = vld [vmem:[#allocation74_spill] sm:$0xff]  ;;  %v5409_v28 = vmul.f32 %v5306_v22, %v4675_v14 }
  0xb8   :  { %8693 = vst [vmem:[#allocation151_spill] sm:$0xff] %v5353_v29  ;;  %8694 = vst [vmem:[#allocation152_spill] sm:$0xff] %v5361_v55  ;;  %v332_v55 = vmul.f32 %v5353_v29, %v4724_v47  ;;  %v1019_v60 = vadd.f32 %v8701_v19, %v299_v8  ;;  %v1020_v53 = vadd.f32 %v8702_v44, %v300_v6  ;;  %v5415_v44 = vpop.permute.xlu1 %1422 }
  0xb9   :  { %8695 = vst [vmem:[#allocation153_spill] sm:$0xff] %v5365_v34  ;;  %8696 = vst [vmem:[#allocation154_spill] sm:$0xff] %v5368_v35  ;;  %v5382_v34 = vadd.f32 %v5040_v40, %v394_v25  ;;  %v5386_v35 = vmul.f32 %v5270_v12, %v4793_v0  ;;  %v8704_v25 = vld [vmem:[#allocation81_spill] sm:$0xff]  ;;  %v5401_v0 = vmul.f32 %v5353_v29, %v4727_v48  ;;  %2053 = vperm.xlu1 %4349, %v1995_v2  }
  0xba   :  { %8697 = vst [vmem:[#allocation155_spill] sm:$0xff] %v5379_v24  ;;  %8700 = vst [vmem:[#allocation158_spill] sm:$0xff] %v5390_v37  ;;  %v1051_v24 = vadd.f32 %v8703_v30, %v331_v27  ;;  %v1052_v40 = vadd.f32 %v8704_v25, %v332_v55  ;;  %v5405_v12 = vmul.f32 %v5353_v29, %v4730_v49  ;;  %v5425_v30 = vpop.permute.xlu0 %211  ;;  %v8716_v37 = vld [vmem:[#allocation54_spill] sm:$0xff] }
  0xbb   :  { %8698 = vst [vmem:[#allocation156_spill] sm:$0xff] %v5382_v34  ;;  %8699 = vst [vmem:[#allocation157_spill] sm:$0xff] %v5386_v35  ;;  %v5413_v8 = vmul.f32 %v5306_v22, %v4678_v15  ;;  %v5417_v27 = vadd.f32 %v1483_v9, %v1019_v60  ;;  %v5419_v6 = vadd.f32 %v1484_v26, %v1020_v53  ;;  %v8722_v34 = vld [vmem:[#allocation58_spill] sm:$0xff] }
  0xbc   :  { %8705 = vst [vmem:[#allocation74_spill] sm:$0xff] %v5401_v0  ;;  %8706 = vst [vmem:[#allocation75_spill] sm:$0xff] %v5405_v12  ;;  %v5421_v19 = vadd.f32 %v1515_v7, %v1051_v24  ;;  %v5423_v55 = vadd.f32 %v1516_v54, %v1052_v40  ;;  %v5429_v25 = vmul.f32 %v5415_v44, %v4665_v4  ;;  %v8718_v12 = vld [vmem:[#allocation56_spill] sm:$0xff]  ;;  %v8723_v4 = vld [vmem:[#allocation59_spill] sm:$0xff] }
  0xbd   :  { %8707 = vst [vmem:[#allocation80_spill] sm:$0xff] %v5409_v28  ;;  %8708 = vst [vmem:[#allocation81_spill] sm:$0xff] %v5413_v8  ;;  %v5433_v22 = vmul.f32 %v5415_v44, %v4668_v5  ;;  %v5437_v9 = vmul.f32 %v5415_v44, %v4659_v1  ;;  %v5441_v24 = vmul.f32 %v5415_v44, %v4662_v3  ;;  %v8717_v8 = vld [vmem:[#allocation55_spill] sm:$0xff]  ;;  %4351 = vset.pattern.permute.xlu1 %v8602_v20 }
  0xbe   :  { %8709 = vst [vmem:[#allocation159_spill] sm:$0xff] %v5415_v44  ;;  %8710 = vst [vmem:[#allocation160_spill] sm:$0xff] %v5417_v27  ;;  %v289_v7 = vmul.f32 %v5425_v30, %v4715_v42  ;;  %v290_v2 = vmul.f32 %v5425_v30, %v4718_v43  ;;  %v321_v26 = vmul.f32 %v5425_v30, %v4721_v46  ;;  %v5466_v27 = vpop.permute.xlu1 %714  ;;  %1470 = vperm.xlu1 %4351, %v4476_v11  }
  0xbf   :  { %8711 = vst [vmem:[#allocation161_spill] sm:$0xff] %v5419_v6  ;;  %8712 = vst [vmem:[#allocation162_spill] sm:$0xff] %v5421_v19  ;;  %v322_v54 = vmul.f32 %v5425_v30, %v4724_v47  ;;  %v385_v60 = vmul.f32 %v5425_v30, %v4733_v50  ;;  %v386_v53 = vmul.f32 %v5425_v30, %v4736_v51  ;;  %v5463_v6 = vpop.permute.xlu0 %216  ;;  %v8724_v50 = vld [vmem:[#allocation60_spill] sm:$0xff] }
  0xc0   :  { %8713 = vst [vmem:[#allocation163_spill] sm:$0xff] %v5423_v55  ;;  %8714 = vst [vmem:[#allocation164_spill] sm:$0xff] %v5425_v30  ;;  %v353_v40 = vmul.f32 %v5425_v30, %v4727_v48  ;;  %v354_v29 = vmul.f32 %v5425_v30, %v4730_v49  ;;  %v1009_v35 = vadd.f32 %v8716_v37, %v289_v7  ;;  %v8719_v55 = vld [vmem:[#allocation57_spill] sm:$0xff]  ;;  %v8729_v7 = vld [vmem:[#allocation68_spill] sm:$0xff] }
  0xc1   :  { %8715 = vst [vmem:[#allocation165_spill] sm:$0xff] %v5441_v24  ;;  %v1010_v28 = vadd.f32 %v8717_v8, %v290_v2  ;;  %v1041_v0 = vadd.f32 %v8718_v12, %v321_v26  ;;  %v1042_v19 = vadd.f32 %v8719_v55, %v322_v54  ;;  %8720 = vst [vmem:[#allocation54_spill] sm:$0xff] %v5463_v6  ;;  %v8725_v24 = vld [vmem:[#allocation61_spill] sm:$0xff] }
  0xc2   :  { %8721 = vst [vmem:[#allocation55_spill] sm:$0xff] %v5466_v27  ;;  %v1105_v5 = vadd.f32 %v8722_v34, %v385_v60  ;;  %v1106_v51 = vadd.f32 %v8723_v4, %v386_v53  ;;  %v1073_v30 = vadd.f32 %v8724_v50, %v353_v40  ;;  %v1074_v37 = vadd.f32 %v8725_v24, %v354_v29  ;;  %v8727_v34 = vld [vmem:[#allocation66_spill] sm:$0xff]  ;;  %v8730_v26 = vld [vmem:[#allocation69_spill] sm:$0xff]  ;;  %v5513_v60 = vpop.permute.xlu1 %1426  ;;  %v8733_v53 = vld [vmem:[#allocation71_spill] sm:$0xff] }
  0xc3   :  { %v5474_v12 = vadd.f32 %v5256_v45, %v1009_v35  ;;  %v5477_v8 = vadd.f32 %v5260_v58, %v1010_v28  ;;  %v5480_v20 = vadd.f32 %v5264_v39, %v1041_v0  ;;  %v5483_v55 = vadd.f32 %v5268_v56, %v1042_v19  ;;  %v1997_v28 = vld [vmem:[%s8202_s2 + $0x60] sm:$0xff]  ;;  %v5506_v56 = vpop.permute.xlu0 %221  ;;  %v8728_v19 = vld [vmem:[#allocation67_spill] sm:$0xff]  ;;  %4352 = vset.pattern.permute.xlu1 %v8580_v31 }
  0xc4   :  { %v323_v4 = vmul.f32 %v5463_v6, %v4721_v46  ;;  %v324_v29 = vmul.f32 %v5463_v6, %v4724_v47  ;;  %v355_v11 = vmul.f32 %v5463_v6, %v4727_v48  ;;  %v356_v45 = vmul.f32 %v5463_v6, %v4730_v49  ;;  %8726 = vst [vmem:[#allocation56_spill] sm:$0xff] %v5506_v56 }
  0xc5   :  { %v291_v58 = vmul.f32 %v5463_v6, %v4715_v42  ;;  %v292_v50 = vmul.f32 %v5463_v6, %v4718_v43  ;;  %v5501_v0 = vadd.f32 %v5274_v10, %v1105_v5  ;;  %v5504_v39 = vadd.f32 %v5278_v63, %v1106_v51  ;;  %8731 = vst [vmem:[#allocation57_spill] sm:$0xff] %v5513_v60  ;;  %v8732_v10 = vld [vmem:[#allocation70_spill] sm:$0xff] }
  0xc6   :  { %v1043_v35 = vadd.f32 %v8727_v34, %v323_v4  ;;  %v1044_v24 = vadd.f32 %v8728_v19, %v324_v29  ;;  %v1075_v2 = vadd.f32 %v8729_v7, %v355_v11  ;;  %v1076_v54 = vadd.f32 %v8730_v26, %v356_v45  ;;  %2063 = vperm.xlu1 %4352, %v1997_v28   ;;  %v1998_v45 = vld [vmem:[%s8202_s2 + $0x68] sm:$0xff]  ;;  %v5562_v26 = vpop.permute.xlu1 %718 }
  0xc7   :  { %v325_v5 = vmul.f32 %v5506_v56, %v4721_v46  ;;  %v326_v51 = vmul.f32 %v5506_v56, %v4724_v47  ;;  %v1011_v63 = vadd.f32 %v8732_v10, %v291_v58  ;;  %v1012_v40 = vadd.f32 %v8733_v53, %v292_v50  ;;  %v8734_v58 = vld [vmem:[#allocation84_spill] sm:$0xff]  ;;  %v8735_v50 = vld [vmem:[#allocation85_spill] sm:$0xff]  ;;  %8737 = vst [vmem:[#allocation59_spill] sm:$0xff] %v5562_v26 }
  0xc8   :  { %v5522_v4 = vadd.f32 %v5139_v57, %v1043_v35  ;;  %v5525_v29 = vadd.f32 %v5143_v61, %v1044_v24  ;;  %v5528_v31 = vadd.f32 %v5147_v62, %v1075_v2  ;;  %v5531_v11 = vadd.f32 %v5151_v16, %v1076_v54  ;;  %v5544_v35 = vpop.permute.xlu0 %226  ;;  %v8738_v54 = vld [vmem:[#allocation86_spill] sm:$0xff] }
  0xc9   :  { %v1045_v34 = vadd.f32 %v8734_v58, %v325_v5  ;;  %v1046_v28 = vadd.f32 %v8735_v50, %v326_v51  ;;  %v5539_v57 = vadd.f32 %v5156_v17, %v1011_v63  ;;  %v5542_v61 = vadd.f32 %v5160_v23, %v1012_v40  ;;  %8736 = vst [vmem:[#allocation58_spill] sm:$0xff] %v5544_v35  ;;  %v8741_v50 = vld [vmem:[#allocation100_spill] sm:$0xff] }
  0xca   :  { %v293_v62 = vmul.f32 %v5506_v56, %v4715_v42  ;;  %v294_v16 = vmul.f32 %v5506_v56, %v4718_v43  ;;  %v1793_v19 = vadd.f32 %v5282_v33, %v1073_v30  ;;  %v1794_v24 = vadd.f32 %v5286_v36, %v1074_v37  ;;  %2068 = vperm.xlu1 %4352, %v1998_v45   ;;  %v8739_v33 = vld [vmem:[#allocation87_spill] sm:$0xff] }
  0xcb   :  { %v5553_v7 = vadd.f32 %v5291_v32, %v1045_v34  ;;  %v5556_v17 = vadd.f32 %v5295_v18, %v1046_v28  ;;  %v327_v23 = vmul.f32 %v5544_v35, %v4721_v46  ;;  %v328_v2 = vmul.f32 %v5544_v35, %v4724_v47  ;;  %v2000_v32 = vld [vmem:[%s8202_s2 + $0x78] sm:$0xff] }
  0xcc   :  { %v1013_v5 = vadd.f32 %v8738_v54, %v293_v62  ;;  %v1014_v30 = vadd.f32 %v8739_v33, %v294_v16  ;;  %v1481_v36 = vmul.f32 %v5513_v60, %v4659_v1  ;;  %v1482_v18 = vmul.f32 %v5513_v60, %v4662_v3  ;;  %v5579_v53 = vpop.permute.xlu0 %241  ;;  %v8742_v62 = vld [vmem:[#allocation101_spill] sm:$0xff]  ;;  %v5609_v16 = vpop.permute.xlu1 %2003 }
  0xcd   :  { %v1047_v37 = vadd.f32 %v5053_v41, %v327_v23  ;;  %v1048_v51 = vadd.f32 %v5057_v52, %v328_v2  ;;  %v295_v10 = vmul.f32 %v5544_v35, %v4715_v42  ;;  %v296_v63 = vmul.f32 %v5544_v35, %v4718_v43  ;;  %8740 = vst [vmem:[#allocation60_spill] sm:$0xff] %v5579_v53  ;;  %v8743_v23 = vld [vmem:[#allocation165_spill] sm:$0xff] }
  0xce   :  { %v5582_v40 = vadd.f32 %v5299_v59, %v1013_v5  ;;  %v5585_v45 = vadd.f32 %v5303_v13, %v1014_v30  ;;  %v5588_v58 = vadd.f32 %v1481_v36, %v5243_v21  ;;  %v5591_v41 = vadd.f32 %v1482_v18, %v5246_v38  ;;  %2078 = vperm.xlu1 %4352, %v2000_v32  }
  0xcf   :  { %v5594_v52 = vadd.f32 %v5429_v25, %v1047_v37  ;;  %v5597_v34 = vadd.f32 %v5433_v22, %v1048_v51  ;;  %v1015_v28 = vadd.f32 %v8741_v50, %v295_v10  ;;  %v1016_v59 = vadd.f32 %v8742_v62, %v296_v63 }
  0xd0   :  { %v359_v13 = vmul.f32 %v5544_v35, %v4727_v48  ;;  %v360_v21 = vmul.f32 %v5544_v35, %v4730_v49  ;;  %v1543_v38 = vmul.f32 %v5415_v44, %v4675_v14  ;;  %v1544_v25 = vmul.f32 %v5415_v44, %v4678_v15  ;;  %v5621_v33 = vpop.permute.xlu0 %246 }
  0xd1   :  { %v5612_v22 = vadd.f32 %v5437_v9, %v1015_v28  ;;  %v5615_v2 = vadd.f32 %v8743_v23, %v1016_v59  ;;  %v357_v54 = vmul.f32 %v5506_v56, %v4727_v48  ;;  %v358_v5 = vmul.f32 %v5506_v56, %v4730_v49  ;;  %8744 = vst [vmem:[#allocation61_spill] sm:$0xff] %v5621_v33  ;;  %v5637_v28 = vpop.permute.xlu1 %2008 }
  0xd2   :  { %v2081_v30 = vadd.f32 %v5609_v16, %v5474_v12  ;;  %v2082_v36 = vadd.f32 %v5609_v16, %v5477_v8  ;;  %v2113_v9 = vadd.f32 %v5609_v16, %v5480_v20  ;;  %v2114_v18 = vadd.f32 %v5609_v16, %v5483_v55 }
  0xd3   :  { %v2177_v32 = vadd.f32 %v5609_v16, %v5501_v0  ;;  %v2178_v37 = vadd.f32 %v5609_v16, %v5504_v39  ;;  %v2145_v51 = vadd.f32 %v5609_v16, %v1793_v19  ;;  %v2146_v10 = vadd.f32 %v5609_v16, %v1794_v24 }
  0xd4   :  { %v2337_v12 = vmax.f32 %v2081_v30, 0.0  ;;  %v2338_v63 = vmax.f32 %v2082_v36, 0.0  ;;  %v2369_v50 = vmax.f32 %v2113_v9, 0.0  ;;  %v2370_v8 = vmax.f32 %v2114_v18, 0.0  ;;  %v5639_v23 = vpop.permute.xlu0 %251 }
  0xd5   :  { %v2433_v20 = vmax.f32 %v2177_v32, 0.0  ;;  %v2434_v62 = vmax.f32 %v2178_v37, 0.0  ;;  %v2401_v59 = vmax.f32 %v2145_v51, 0.0  ;;  %v2402_v55 = vmax.f32 %v2146_v10, 0.0  ;;  %8745 = vst [vmem:[#allocation66_spill] sm:$0xff] %v5639_v23 }
  0xd6   :  { %v2593_v0 = vadd.f32 %v2338_v63, %v2337_v12  ;;  %v2641_v49 = vadd.f32 %v2370_v8, %v2369_v50  ;;  %v2115_v39 = vadd.f32 %v5637_v28, %v5522_v4  ;;  %v2116_v19 = vadd.f32 %v5637_v28, %v5525_v29  ;;  %v8748_v8 = vld [vmem:[#allocation103_spill] sm:$0xff] }
  0xd7   :  { %v2147_v24 = vadd.f32 %v5637_v28, %v5528_v31  ;;  %v2148_v30 = vadd.f32 %v5637_v28, %v5531_v11  ;;  %v2083_v36 = vadd.f32 %v5637_v28, %v5539_v57  ;;  %v2084_v9 = vadd.f32 %v5637_v28, %v5542_v61  ;;  %v5659_v11 = vpop.permute.xlu1 %722  ;;  %v8747_v57 = vld [vmem:[#allocation102_spill] sm:$0xff] }
  0xd8   :  { %2594 = vadd.xlane.f32.xlu0 %v2593_v0  ;;  %v2371_v18 = vmax.f32 %v2115_v39, 0.0  ;;  %v2372_v32 = vmax.f32 %v2116_v19, 0.0  ;;  %v5653_v37 = vadd.f32 %v2434_v62, %v2433_v20  ;;  %v5655_v4 = vadd.f32 %v2402_v55, %v2401_v59  ;;  %v5657_v12 = vpop.permute.xlu0 %2013  ;;  %8746 = vst [vmem:[#allocation67_spill] sm:$0xff] %v5659_v11  ;;  %v8749_v0 = vld [vmem:[#allocation88_spill] sm:$0xff] }
  0xd9   :  { %v2403_v29 = vmax.f32 %v2147_v24, 0.0  ;;  %v2404_v51 = vmax.f32 %v2148_v30, 0.0  ;;  %v2339_v10 = vmax.f32 %v2083_v36, 0.0  ;;  %v2340_v31 = vmax.f32 %v2084_v9, 0.0  ;;  %v8751_v9 = vld [vmem:[#allocation141_spill] sm:$0xff] }
  0xda   :  { %v2644_v63 = vadd.f32 %v2372_v32, %v2371_v18  ;;  %v1079_v50 = vadd.f32 %v8747_v57, %v359_v13  ;;  %v1080_v61 = vadd.f32 %v8748_v8, %v360_v21  ;;  %v1077_v39 = vadd.f32 %v8749_v0, %v357_v54  ;;  %v8759_v0 = vld [vmem:[#allocation62_spill] sm:$0xff] }
  0xdb   :  { %v2117_v20 = vadd.f32 %v5657_v12, %v5553_v7  ;;  %v2118_v62 = vadd.f32 %v5657_v12, %v5556_v17  ;;  %v2692_v59 = vadd.f32 %v2404_v51, %v2403_v29  ;;  %v5668_v55 = vadd.f32 %v2340_v31, %v2339_v10  ;;  %v8750_v7 = vld [vmem:[#allocation89_spill] sm:$0xff]  ;;  %v8754_v51 = vld [vmem:[#allocation164_spill] sm:$0xff]  ;;  %v8755_v10 = vld [vmem:[#allocation30_spill] sm:$0xff] }
  0xdc   :  { %2642 = vadd.xlane.f32.xlu0 %v2641_v49  ;;  %v2085_v19 = vadd.f32 %v5657_v12, %v5582_v40  ;;  %v2086_v13 = vadd.f32 %v5657_v12, %v5585_v45  ;;  %v5674_v24 = vadd.f32 %v1543_v38, %v1079_v50  ;;  %v5676_v21 = vadd.f32 %v1544_v25, %v1080_v61  ;;  %v5680_v18 = vpop.permute.xlu0 %261  ;;  %v8753_v29 = vld [vmem:[#allocation29_spill] sm:$0xff]  ;;  %v5686_v38 = vpop.permute.xlu1 %1434  ;;  %v8757_v31 = vld [vmem:[#allocation142_spill] sm:$0xff] }
  0xdd   :  { %v2373_v54 = vmax.f32 %v2117_v20, 0.0  ;;  %v2374_v30 = vmax.f32 %v2118_v62, 0.0  ;;  %v1078_v36 = vadd.f32 %v8750_v7, %v358_v5  ;;  %v1797_v17 = vadd.f32 %v8751_v9, %v1077_v39  ;;  %8752 = vst [vmem:[#allocation68_spill] sm:$0xff] %v5680_v18  ;;  %8756 = vst [vmem:[#allocation69_spill] sm:$0xff] %v5686_v38  ;;  %v8758_v5 = vld [vmem:[#allocation27_spill] sm:$0xff]  ;;  %v8763_v9 = vld [vmem:[#allocation16_spill] sm:$0xff] }
  0xde   :  { %v2341_v32 = vmax.f32 %v2085_v19, 0.0  ;;  %v2342_v49 = vmax.f32 %v2086_v13, 0.0  ;;  %v417_v40 = vmul.f32 %v8754_v51, %v8753_v29  ;;  %v418_v45 = vmul.f32 %v8754_v51, %v8755_v10  ;;  %v8760_v20 = vld [vmem:[#allocation63_spill] sm:$0xff]  ;;  %v8761_v19 = vld [vmem:[#allocation28_spill] sm:$0xff] }
  0xdf   :  { %v2647_v25 = vadd.f32 %v2374_v30, %v2373_v54  ;;  %v1798_v57 = vadd.f32 %v8757_v31, %v1078_v36  ;;  %v2149_v50 = vadd.f32 %v5657_v12, %v1797_v17  ;;  %v387_v8 = vmul.f32 %v5463_v6, %v8758_v5  ;;  %v8762_v30 = vld [vmem:[#allocation72_spill] sm:$0xff] }
  0xe0   :  { %2645 = vadd.xlane.f32.xlu0 %v2644_v63  ;;  %v5692_v61 = vadd.f32 %v2342_v49, %v2341_v32  ;;  %v1137_v39 = vadd.f32 %v8759_v0, %v417_v40  ;;  %v1138_v62 = vadd.f32 %v8760_v20, %v418_v45  ;;  %v388_v13 = vmul.f32 %v5463_v6, %v8761_v19  ;;  %v5702_v31 = vpop.permute.xlu0 %2023  ;;  %v8765_v63 = vld [vmem:[#allocation143_spill] sm:$0xff]  ;;  %v8766_v49 = vld [vmem:[#allocation144_spill] sm:$0xff]  ;;  %v8767_v40 = vld [vmem:[#allocation73_spill] sm:$0xff]  ;;  %v5714_v23 = vpop.permute.xlu1 %256 }
  0xe1   :  { %v2150_v7 = vadd.f32 %v5657_v12, %v1798_v57  ;;  %v2405_v54 = vmax.f32 %v2149_v50, 0.0  ;;  %v1107_v36 = vadd.f32 %v8762_v30, %v387_v8  ;;  %v1513_v17 = vmul.f32 %v5513_v60, %v8763_v9  ;;  %8764 = vst [vmem:[#allocation70_spill] sm:$0xff] %v5702_v31  ;;  %v8768_v45 = vld [vmem:[#allocation17_spill] sm:$0xff]  ;;  %v8769_v30 = vld [vmem:[#allocation120_spill] sm:$0xff]  ;;  %8770 = vst [vmem:[#allocation71_spill] sm:$0xff] %v5714_v23 }
  0xe2   :  { %v1857_v32 = vadd.f32 %v8765_v63, %v1137_v39  ;;  %v1858_v18 = vadd.f32 %v8766_v49, %v1138_v62  ;;  %v1108_v0 = vadd.f32 %v8767_v40, %v388_v13  ;;  %v1514_v20 = vmul.f32 %v5513_v60, %v8768_v45  ;;  %v8771_v13 = vld [vmem:[#allocation121_spill] sm:$0xff] }
  0xe3   :  { %v2089_v57 = vadd.f32 %v5702_v31, %v5588_v58  ;;  %v2090_v50 = vadd.f32 %v5702_v31, %v5591_v41  ;;  %v2406_v8 = vmax.f32 %v2150_v7, 0.0  ;;  %v1827_v11 = vadd.f32 %v8769_v30, %v1107_v36  ;;  %v8772_v49 = vld [vmem:[#allocation137_spill] sm:$0xff]  ;;  %v8773_v30 = vld [vmem:[#allocation138_spill] sm:$0xff] }
  0xe4   :  { %2648 = vadd.xlane.f32.xlu0 %v2647_v25  ;;  %v2209_v39 = vadd.f32 %v5609_v16, %v1857_v32  ;;  %v2210_v62 = vadd.f32 %v5609_v16, %v1858_v18  ;;  %v1828_v63 = vadd.f32 %v8771_v13, %v1108_v0  ;;  %v1769_v40 = vadd.f32 %v1513_v17, %v8772_v49  ;;  %v8777_v49 = vld [vmem:[#allocation145_spill] sm:$0xff] }
  0xe5   :  { %v2345_v48 = vmax.f32 %v2089_v57, 0.0  ;;  %v2346_v26 = vmax.f32 %v2090_v50, 0.0  ;;  %v5720_v58 = vadd.f32 %v2406_v8, %v2405_v54  ;;  %v2179_v41 = vadd.f32 %v5637_v28, %v1827_v11  ;;  %v5735_v50 = vpop.permute.xlu1 %1438 }
  0xe6   :  { %v2465_v7 = vmax.f32 %v2209_v39, 0.0  ;;  %v2466_v33 = vmax.f32 %v2210_v62, 0.0  ;;  %v2180_v36 = vadd.f32 %v5637_v28, %v1828_v63  ;;  %v1770_v25 = vadd.f32 %v1514_v20, %v8773_v30  ;;  %8774 = vst [vmem:[#allocation84_spill] sm:$0xff] %v5735_v50  ;;  %v8776_v62 = vld [vmem:[#allocation91_spill] sm:$0xff] }
  0xe7   :  { %v5725_v23 = vadd.f32 %v2346_v26, %v2345_v48  ;;  %v2435_v32 = vmax.f32 %v2179_v41, 0.0  ;;  %v2121_v18 = vadd.f32 %v5702_v31, %v1769_v40  ;;  %v389_v17 = vmul.f32 %v5506_v56, %v8758_v5  ;;  %v8775_v48 = vld [vmem:[#allocation90_spill] sm:$0xff]  ;;  %v8778_v41 = vld [vmem:[#allocation147_spill] sm:$0xff] }
  0xe8   :  { %2693 = vadd.xlane.f32.xlu0 %v2692_v59  ;;  %v5730_v0 = vadd.f32 %v2466_v33, %v2465_v7  ;;  %v2436_v54 = vmax.f32 %v2180_v36, 0.0  ;;  %v2122_v11 = vadd.f32 %v5702_v31, %v1770_v25  ;;  %v390_v57 = vmul.f32 %v5506_v56, %v8761_v19  ;;  %v8779_v36 = vld [vmem:[#allocation148_spill] sm:$0xff] }
  0xe9   :  { %v2377_v20 = vmax.f32 %v2121_v18, 0.0  ;;  %v1109_v26 = vadd.f32 %v8775_v48, %v389_v17  ;;  %v1545_v8 = vmul.f32 %v5513_v60, %v4675_v14  ;;  %v1546_v39 = vmul.f32 %v5513_v60, %v4678_v15  ;;  %v8780_v17 = vld [vmem:[#allocation146_spill] sm:$0xff] }
  0xea   :  { %v5742_v59 = vadd.f32 %v2436_v54, %v2435_v32  ;;  %v2378_v33 = vmax.f32 %v2122_v11, 0.0  ;;  %v1110_v13 = vadd.f32 %v8776_v62, %v390_v57  ;;  %v419_v63 = vmul.f32 %v5463_v6, %v8753_v29  ;;  %v8781_v54 = vld [vmem:[#allocation76_spill] sm:$0xff]  ;;  %v8782_v62 = vld [vmem:[#allocation77_spill] sm:$0xff] }
  0xeb   :  { %v1829_v40 = vadd.f32 %v8777_v49, %v1109_v26  ;;  %v1801_v7 = vadd.f32 %v1545_v8, %v8778_v41  ;;  %v1802_v30 = vadd.f32 %v1546_v39, %v8779_v36  ;;  %v420_v25 = vmul.f32 %v5463_v6, %v8755_v10  ;;  %v5762_v49 = vpop.permute.xlu1 %2018 }
  0xec   :  { %v5752_v18 = vadd.f32 %v2378_v33, %v2377_v20  ;;  %v1830_v32 = vadd.f32 %v8780_v17, %v1110_v13  ;;  %v1139_v11 = vadd.f32 %v8781_v54, %v419_v63  ;;  %v421_v57 = vmul.f32 %v5506_v56, %v8753_v29  ;;  %8783 = vst [vmem:[#allocation85_spill] sm:$0xff] %v5762_v49  ;;  %v8784_v33 = vld [vmem:[#allocation123_spill] sm:$0xff]  ;;  %v8785_v63 = vld [vmem:[#allocation92_spill] sm:$0xff] }
  0xed   :  { %v2181_v48 = vadd.f32 %v5657_v12, %v1829_v40  ;;  %v2153_v26 = vadd.f32 %v5702_v31, %v1801_v7  ;;  %v2154_v8 = vadd.f32 %v5702_v31, %v1802_v30  ;;  %v1140_v39 = vadd.f32 %v8782_v62, %v420_v25 }
  0xee   :  { %v2182_v20 = vadd.f32 %v5657_v12, %v1830_v32  ;;  %v1859_v41 = vadd.f32 %v8784_v33, %v1139_v11  ;;  %v422_v13 = vmul.f32 %v5506_v56, %v8755_v10  ;;  %v1141_v36 = vadd.f32 %v8785_v63, %v421_v57 }
  0xef   :  { %v2119_v40 = vadd.f32 %v5762_v49, %v5594_v52  ;;  %v2120_v7 = vadd.f32 %v5762_v49, %v5597_v34  ;;  %v2087_v30 = vadd.f32 %v5762_v49, %v5612_v22  ;;  %v2088_v25 = vadd.f32 %v5762_v49, %v5615_v2  ;;  %v5783_v14 = vpop.permute.xlu1 %730 }
  0xf0   :  { %v2151_v17 = vadd.f32 %v5762_v49, %v5674_v24  ;;  %v2152_v32 = vadd.f32 %v5762_v49, %v5676_v21  ;;  %v2437_v54 = vmax.f32 %v2181_v48, 0.0  ;;  %v2438_v11 = vmax.f32 %v2182_v20, 0.0  ;;  %8786 = vst [vmem:[#allocation86_spill] sm:$0xff] %v5783_v14  ;;  %v8787_v24 = vld [vmem:[#allocation124_spill] sm:$0xff]  ;;  %v8788_v20 = vld [vmem:[#allocation93_spill] sm:$0xff] }
  0xf1   :  { %v2375_v57 = vmax.f32 %v2119_v40, 0.0  ;;  %v2376_v62 = vmax.f32 %v2120_v7, 0.0  ;;  %v2343_v52 = vmax.f32 %v2087_v30, 0.0  ;;  %v2344_v33 = vmax.f32 %v2088_v25, 0.0  ;;  %v8789_v7 = vld [vmem:[#allocation149_spill] sm:$0xff]  ;;  %v8812_v14 = vld [vmem:[#allocation152_spill] sm:$0xff] }
  0xf2   :  { %v2407_v63 = vmax.f32 %v2151_v17, 0.0  ;;  %v2408_v34 = vmax.f32 %v2152_v32, 0.0  ;;  %v5781_v15 = vadd.f32 %v2438_v11, %v2437_v54  ;;  %v2409_v22 = vmax.f32 %v2153_v26, 0.0  ;;  %2597 = vadd.xlane.f32.xlu1 %v5668_v55  ;;  %v8790_v17 = vld [vmem:[#allocation37_spill] sm:$0xff]  ;;  %v8792_v55 = vld [vmem:[#allocation150_spill] sm:$0xff] }
  0xf3   :  { %v2650_v2 = vadd.f32 %v2376_v62, %v2375_v57  ;;  %v2602_v50 = vadd.f32 %v2344_v33, %v2343_v52  ;;  %v2410_v10 = vmax.f32 %v2154_v8, 0.0  ;;  %v1860_v29 = vadd.f32 %v8787_v24, %v1140_v39  ;;  %v8791_v8 = vld [vmem:[#allocation38_spill] sm:$0xff]  ;;  %v8794_v62 = vld [vmem:[#allocation83_spill] sm:$0xff]  ;;  %v5805_v33 = vpop.permute.xlu0 %271 }
  0xf4   :  { %v2698_v21 = vadd.f32 %v2408_v34, %v2407_v63  ;;  %v2211_v48 = vadd.f32 %v5637_v28, %v1859_v41  ;;  %v1142_v40 = vadd.f32 %v8788_v20, %v422_v13  ;;  %v1861_v30 = vadd.f32 %v8789_v7, %v1141_v36  ;;  %v8793_v57 = vld [vmem:[#allocation82_spill] sm:$0xff]  ;;  %8795 = vst [vmem:[#allocation87_spill] sm:$0xff] %v5805_v33  ;;  %v5807_v63 = vpop.permute.xlu1 %1442  ;;  %v8799_v7 = vld [vmem:[#allocation125_spill] sm:$0xff]  ;;  %v8811_v33 = vld [vmem:[#allocation156_spill] sm:$0xff] }
  0xf5   :  { %2651 = vadd.xlane.f32.xlu0 %v2650_v2  ;;  %v5790_v25 = vadd.f32 %v2410_v10, %v2409_v22  ;;  %v2212_v26 = vadd.f32 %v5637_v28, %v1860_v29  ;;  %v451_v32 = vmul.f32 %v5463_v6, %v8790_v17  ;;  %v452_v39 = vmul.f32 %v5463_v6, %v8791_v8  ;;  %v8797_v2 = vld [vmem:[#allocation104_spill] sm:$0xff] }
  0xf6   :  { %v2467_v54 = vmax.f32 %v2211_v48, 0.0  ;;  %v1862_v11 = vadd.f32 %v8792_v55, %v1142_v40  ;;  %v2213_v41 = vadd.f32 %v5657_v12, %v1861_v30  ;;  %v391_v13 = vmul.f32 %v5544_v35, %v8758_v5  ;;  %8796 = vst [vmem:[#allocation100_spill] sm:$0xff] %v5807_v63  ;;  %2600 = vadd.xlane.f32.xlu1 %v5692_v61  ;;  %v8798_v48 = vld [vmem:[#allocation20_spill] sm:$0xff]  ;;  %v8802_v61 = vld [vmem:[#allocation21_spill] sm:$0xff] }
  0xf7   :  { %v2468_v36 = vmax.f32 %v2212_v26, 0.0  ;;  %v1171_v10 = vadd.f32 %v8793_v57, %v451_v32  ;;  %v1172_v52 = vadd.f32 %v8794_v62, %v452_v39  ;;  %v392_v29 = vmul.f32 %v5544_v35, %v8761_v19  ;;  %v8800_v26 = vld [vmem:[#allocation126_spill] sm:$0xff]  ;;  %v8801_v39 = vld [vmem:[#allocation105_spill] sm:$0xff] }
  0xf8   :  { %v2214_v34 = vadd.f32 %v5657_v12, %v1862_v11  ;;  %v2469_v22 = vmax.f32 %v2213_v41, 0.0  ;;  %v1111_v24 = vadd.f32 %v8797_v2, %v391_v13  ;;  %v1575_v20 = vmul.f32 %v5415_v44, %v8798_v48  ;;  %v8804_v2 = vld [vmem:[#allocation9_spill] sm:$0xff] }
  0xf9   :  { %2738 = vadd.xlane.f32.xlu0 %v5653_v37  ;;  %v5815_v40 = vadd.f32 %v2468_v36, %v2467_v54  ;;  %v1891_v30 = vadd.f32 %v8799_v7, %v1171_v10  ;;  %v1892_v32 = vadd.f32 %v8800_v26, %v1172_v52  ;;  %v1112_v55 = vadd.f32 %v8801_v39, %v392_v29  ;;  %v8803_v36 = vld [vmem:[#allocation8_spill] sm:$0xff]  ;;  %v5841_v39 = vpop.permute.xlu0 %2033  ;;  %v8813_v63 = vld [vmem:[#allocation153_spill] sm:$0xff] }
  0xfa   :  { %v2470_v57 = vmax.f32 %v2214_v34, 0.0  ;;  %v1576_v11 = vmul.f32 %v5415_v44, %v8802_v61  ;;  %v1831_v41 = vadd.f32 %v1575_v20, %v1111_v24  ;;  %v333_v13 = vmul.f32 %v5579_v53, %v4721_v46  ;;  %2690 = vadd.xlane.f32.xlu1 %v5655_v4  ;;  %v5836_v20 = vpop.permute.xlu1 %266  ;;  %8806 = vst [vmem:[#allocation165_spill] sm:$0xff] %v5841_v39 }
  0xfb   :  { %v2243_v62 = vadd.f32 %v5637_v28, %v1891_v30  ;;  %v2244_v37 = vadd.f32 %v5637_v28, %v1892_v32  ;;  %v334_v54 = vmul.f32 %v5579_v53, %v4724_v47  ;;  %v797_v10 = vmul.f32 %v5466_v27, %v8803_v36  ;;  %8805 = vst [vmem:[#allocation101_spill] sm:$0xff] %v5836_v20 }
  0xfc   :  { %v5831_v52 = vadd.f32 %v2470_v57, %v2469_v22  ;;  %v1832_v29 = vadd.f32 %v1576_v11, %v1112_v55  ;;  %v2183_v34 = vadd.f32 %v5762_v49, %v1831_v41  ;;  %v798_v24 = vmul.f32 %v5466_v27, %v8804_v2 }
  0xfd   :  { %2606 = vadd.xlane.f32.xlu0 %v5725_v23  ;;  %v2499_v7 = vmax.f32 %v2243_v62, 0.0  ;;  %v2500_v30 = vmax.f32 %v2244_v37, 0.0  ;;  %v1053_v26 = vadd.f32 %v797_v10, %v333_v13  ;;  %v1517_v32 = vmul.f32 %v5686_v38, %v8763_v9 }
  0xfe   :  { %v2184_v4 = vadd.f32 %v5762_v49, %v1832_v29  ;;  %v2439_v22 = vmax.f32 %v2183_v34, 0.0  ;;  %v1054_v55 = vadd.f32 %v798_v24, %v334_v54  ;;  %v1518_v57 = vmul.f32 %v5686_v38, %v8768_v45  ;;  %2603 = vadd.xlane.f32.xlu1 %v2602_v50  ;;  %v8807_v34 = vld [vmem:[#allocation94_spill] sm:$0xff] }
  0xff   :  { %v5846_v11 = vadd.f32 %v2500_v30, %v2499_v7  ;;  %v1773_v41 = vadd.f32 %v1517_v32, %v1053_v26  ;;  %v449_v23 = vmul.f32 %v8754_v51, %v8790_v17  ;;  %v450_v13 = vmul.f32 %v8754_v51, %v8791_v8  ;;  %v8808_v7 = vld [vmem:[#allocation95_spill] sm:$0xff]  ;;  %v5861_v32 = vpop.permute.xlu1 %1446 }
 0x100   :  { %v2440_v62 = vmax.f32 %v2184_v4, 0.0  ;;  %v1774_v37 = vadd.f32 %v1518_v57, %v1054_v55  ;;  %v1577_v10 = vmul.f32 %v5513_v60, %v8798_v48  ;;  %v1578_v54 = vmul.f32 %v5513_v60, %v8802_v61  ;;  %8809 = vst [vmem:[#allocation102_spill] sm:$0xff] %v5861_v32  ;;  %v8810_v55 = vld [vmem:[#allocation155_spill] sm:$0xff]  ;;  %v8818_v32 = vld [vmem:[#allocation161_spill] sm:$0xff] }
 0x101   :  { %2699 = vadd.xlane.f32.xlu0 %v2698_v21  ;;  %v2125_v29 = vadd.f32 %v5841_v39, %v1773_v41  ;;  %v1169_v24 = vadd.f32 %v8807_v34, %v449_v23  ;;  %v1170_v30 = vadd.f32 %v8808_v7, %v450_v13  ;;  %v301_v26 = vmul.f32 %v5579_v53, %v4715_v42 }
 0x102   :  { %v5863_v50 = vadd.f32 %v2440_v62, %v2439_v22  ;;  %v2126_v4 = vadd.f32 %v5841_v39, %v1774_v37  ;;  %v1833_v57 = vadd.f32 %v1577_v10, %v8810_v55  ;;  %v1834_v20 = vadd.f32 %v1578_v54, %v8811_v33  ;;  %2696 = vadd.xlane.f32.xlu1 %v5720_v58  ;;  %v8814_v37 = vld [vmem:[#allocation6_spill] sm:$0xff] }
 0x103   :  { %v2381_v21 = vmax.f32 %v2125_v29, 0.0  ;;  %v1889_v41 = vadd.f32 %v8812_v14, %v1169_v24  ;;  %v1890_v23 = vadd.f32 %v8813_v63, %v1170_v30  ;;  %v302_v13 = vmul.f32 %v5579_v53, %v4718_v43  ;;  %v8815_v63 = vld [vmem:[#allocation7_spill] sm:$0xff]  ;;  %v5886_v30 = vpop.permute.xlu1 %2028 }
 0x104   :  { %v2382_v34 = vmax.f32 %v2126_v4, 0.0  ;;  %v2185_v22 = vadd.f32 %v5702_v31, %v1833_v57  ;;  %v2186_v62 = vadd.f32 %v5702_v31, %v1834_v20  ;;  %v765_v10 = vmul.f32 %v5466_v27, %v8814_v37  ;;  %8816 = vst [vmem:[#allocation103_spill] sm:$0xff] %v5886_v30 }
 0x105   :  { %2786 = vadd.xlane.f32.xlu0 %v5730_v0  ;;  %v2241_v33 = vadd.f32 %v5609_v16, %v1889_v41  ;;  %v2242_v14 = vadd.f32 %v5609_v16, %v1890_v23  ;;  %v766_v54 = vmul.f32 %v5466_v27, %v8815_v63  ;;  %v1485_v58 = vmul.f32 %v5686_v38, %v4659_v1  ;;  %v8817_v41 = vld [vmem:[#allocation160_spill] sm:$0xff] }
 0x106   :  { %v5884_v29 = vadd.f32 %v2382_v34, %v2381_v21  ;;  %v2441_v24 = vmax.f32 %v2185_v22, 0.0  ;;  %v2442_v7 = vmax.f32 %v2186_v62, 0.0  ;;  %v1021_v20 = vadd.f32 %v765_v10, %v301_v26  ;;  %2741 = vadd.xlane.f32.xlu1 %v5742_v59  ;;  %v8819_v34 = vld [vmem:[#allocation162_spill] sm:$0xff]  ;;  %v8820_v26 = vld [vmem:[#allocation163_spill] sm:$0xff] }
 0x107   :  { %v2497_v4 = vmax.f32 %v2241_v33, 0.0  ;;  %v2498_v55 = vmax.f32 %v2242_v14, 0.0  ;;  %v1022_v0 = vadd.f32 %v766_v54, %v302_v13  ;;  %v1486_v57 = vmul.f32 %v5686_v38, %v4662_v3 }
 0x108   :  { %v2091_v23 = vadd.f32 %v5886_v30, %v8817_v41  ;;  %v2092_v21 = vadd.f32 %v5886_v30, %v8818_v32  ;;  %v2123_v22 = vadd.f32 %v5886_v30, %v8819_v34  ;;  %v2124_v62 = vadd.f32 %v5886_v30, %v8820_v26 }
 0x109   :  { %v5899_v10 = vadd.f32 %v2498_v55, %v2497_v4  ;;  %v5901_v13 = vadd.f32 %v2442_v7, %v2441_v24  ;;  %v1741_v33 = vadd.f32 %v1485_v58, %v1021_v20  ;;  %v1742_v14 = vadd.f32 %v1486_v57, %v1022_v0  ;;  %v5909_v4 = vpop.permute.xlu1 %738  ;;  %v8822_v7 = vld [vmem:[#allocation74_spill] sm:$0xff]  ;;  %v8824_v0 = vld [vmem:[#allocation75_spill] sm:$0xff] }
 0x10a   :  { %v2347_v54 = vmax.f32 %v2091_v23, 0.0  ;;  %v2348_v59 = vmax.f32 %v2092_v21, 0.0  ;;  %v2379_v31 = vmax.f32 %v2123_v22, 0.0  ;;  %v2380_v60 = vmax.f32 %v2124_v62, 0.0  ;;  %8821 = vst [vmem:[#allocation88_spill] sm:$0xff] %v5909_v4  ;;  %2654 = vadd.xlane.f32.xlu1 %v5752_v18  ;;  %v8823_v20 = vld [vmem:[#allocation106_spill] sm:$0xff] }
 0x10b   :  { %v2093_v41 = vadd.f32 %v5841_v39, %v1741_v33  ;;  %v2094_v32 = vadd.f32 %v5841_v39, %v1742_v14  ;;  %v453_v34 = vmul.f32 %v5506_v56, %v8790_v17  ;;  %v454_v26 = vmul.f32 %v5506_v56, %v8791_v8  ;;  %v8825_v57 = vld [vmem:[#allocation107_spill] sm:$0xff]  ;;  %v8826_v62 = vld [vmem:[#allocation98_spill] sm:$0xff]  ;;  %v8828_v56 = vld [vmem:[#allocation80_spill] sm:$0xff] }
 0x10c   :  { %v2608_v58 = vadd.f32 %v2348_v59, %v2347_v54  ;;  %v2656_v24 = vadd.f32 %v2380_v60, %v2379_v31  ;;  %v1083_v55 = vadd.f32 %v8823_v20, %v8822_v7  ;;  %v1084_v23 = vadd.f32 %v8825_v57, %v8824_v0  ;;  %v8827_v14 = vld [vmem:[#allocation99_spill] sm:$0xff]  ;;  %v8829_v4 = vld [vmem:[#allocation81_spill] sm:$0xff]  ;;  %v8831_v31 = vld [vmem:[#allocation46_spill] sm:$0xff] }
 0x10d   :  { %v2349_v21 = vmax.f32 %v2093_v41, 0.0  ;;  %v2350_v22 = vmax.f32 %v2094_v32, 0.0  ;;  %v1173_v33 = vadd.f32 %v8826_v62, %v453_v34  ;;  %v1174_v39 = vadd.f32 %v8827_v14, %v454_v26  ;;  %v8830_v18 = vld [vmem:[#allocation45_spill] sm:$0xff]  ;;  %v8833_v32 = vld [vmem:[#allocation158_spill] sm:$0xff] }
 0x10e   :  { %2609 = vadd.xlane.f32.xlu0 %v2608_v58  ;;  %v1803_v38 = vadd.f32 %v8828_v56, %v1083_v55  ;;  %v1804_v27 = vadd.f32 %v8829_v4, %v1084_v23  ;;  %v483_v60 = vmul.f32 %v5463_v6, %v8830_v18  ;;  %v484_v54 = vmul.f32 %v5463_v6, %v8831_v31  ;;  %v8832_v7 = vld [vmem:[#allocation157_spill] sm:$0xff]  ;;  %v8835_v58 = vld [vmem:[#allocation108_spill] sm:$0xff]  ;;  %v5935_v23 = vpop.permute.xlu1 %1450 }
 0x10f   :  { %v5924_v59 = vadd.f32 %v2350_v22, %v2349_v21  ;;  %v1893_v41 = vadd.f32 %v8832_v7, %v1173_v33  ;;  %v1894_v20 = vadd.f32 %v8833_v32, %v1174_v39  ;;  %v8834_v34 = vld [vmem:[#allocation29_spill] sm:$0xff]  ;;  %2744 = vadd.xlane.f32.xlu1 %v5781_v15  ;;  %8837 = vst [vmem:[#allocation89_spill] sm:$0xff] %v5935_v23  ;;  %v8838_v39 = vld [vmem:[#allocation30_spill] sm:$0xff]  ;;  %v8839_v33 = vld [vmem:[#allocation111_spill] sm:$0xff] }
 0x110   :  { %v423_v26 = vmul.f32 %v5544_v35, %v8834_v34  ;;  %v2155_v56 = vadd.f32 %v5886_v30, %v1803_v38  ;;  %v2156_v4 = vadd.f32 %v5886_v30, %v1804_v27  ;;  %v1203_v55 = vadd.f32 %v8835_v58, %v483_v60  ;;  %v8836_v0 = vld [vmem:[#allocation109_spill] sm:$0xff]  ;;  %v8840_v27 = vld [vmem:[#allocation127_spill] sm:$0xff]  ;;  %v8841_v60 = vld [vmem:[#allocation128_spill] sm:$0xff] }
 0x111   :  { %v1204_v57 = vadd.f32 %v8836_v0, %v484_v54  ;;  %v2245_v21 = vadd.f32 %v5657_v12, %v1893_v41  ;;  %v2246_v22 = vadd.f32 %v5657_v12, %v1894_v20  ;;  %v424_v62 = vmul.f32 %v5544_v35, %v8838_v39  ;;  %v8842_v0 = vld [vmem:[#allocation112_spill] sm:$0xff]  ;;  %v8843_v41 = vld [vmem:[#allocation33_spill] sm:$0xff] }
 0x112   :  { %v1143_v14 = vadd.f32 %v8839_v33, %v423_v26  ;;  %2702 = vadd.xlane.f32.xlu0 %v5790_v25  ;;  %v2411_v15 = vmax.f32 %v2155_v56, 0.0  ;;  %v2412_v38 = vmax.f32 %v2156_v4, 0.0  ;;  %v1923_v7 = vadd.f32 %v8840_v27, %v1203_v55  ;;  %v8844_v56 = vld [vmem:[#allocation34_spill] sm:$0xff]  ;;  %v5961_v33 = vpop.permute.xlu1 %276  ;;  %v8847_v27 = vld [vmem:[#allocation59_spill] sm:$0xff] }
 0x113   :  { %v1924_v32 = vadd.f32 %v8841_v60, %v1204_v57  ;;  %v2501_v54 = vmax.f32 %v2245_v21, 0.0  ;;  %v2502_v58 = vmax.f32 %v2246_v22, 0.0  ;;  %v1144_v23 = vadd.f32 %v8842_v0, %v424_v62  ;;  %2789 = vadd.xlane.f32.xlu1 %v5815_v40  ;;  %v8845_v21 = vld [vmem:[#allocation61_spill] sm:$0xff]  ;;  %8846 = vst [vmem:[#allocation141_spill] sm:$0xff] %v5961_v33  ;;  %v8850_v33 = vld [vmem:[#allocation136_spill] sm:$0xff] }
 0x114   :  { %v1607_v20 = vmul.f32 %v5415_v44, %v8843_v41  ;;  %v5949_v6 = vadd.f32 %v2412_v38, %v2411_v15  ;;  %v2275_v26 = vadd.f32 %v5637_v28, %v1923_v7  ;;  %v1608_v4 = vmul.f32 %v5415_v44, %v8844_v56 }
 0x115   :  { %v2276_v25 = vadd.f32 %v5637_v28, %v1924_v32  ;;  %v5955_v55 = vadd.f32 %v2502_v58, %v2501_v54  ;;  %v335_v22 = vmul.f32 %v8845_v21, %v4721_v46  ;;  %v336_v62 = vmul.f32 %v8845_v21, %v4724_v47  ;;  %v8848_v32 = vld [vmem:[#allocation84_spill] sm:$0xff] }
 0x116   :  { %v1863_v57 = vadd.f32 %v1607_v20, %v1143_v14  ;;  %2792 = vadd.xlane.f32.xlu0 %v5831_v52  ;;  %v2531_v40 = vmax.f32 %v2275_v26, 0.0  ;;  %v1864_v38 = vadd.f32 %v1608_v4, %v1144_v23  ;;  %v799_v7 = vmul.f32 %v8847_v27, %v8803_v36 }
 0x117   :  { %v2532_v15 = vmax.f32 %v2276_v25, 0.0  ;;  %v800_v14 = vmul.f32 %v8847_v27, %v8804_v2  ;;  %v1519_v54 = vmul.f32 %v8848_v32, %v8763_v9  ;;  %v1520_v58 = vmul.f32 %v8848_v32, %v8768_v45  ;;  %2657 = vadd.xlane.f32.xlu1 %v2656_v24  ;;  %v8852_v2 = vld [vmem:[#allocation44_spill] sm:$0xff] }
 0x118   :  { %v2215_v60 = vadd.f32 %v5762_v49, %v1863_v57  ;;  %v2216_v52 = vadd.f32 %v5762_v49, %v1864_v38  ;;  %v1055_v23 = vadd.f32 %v799_v7, %v335_v22  ;;  %v481_v20 = vmul.f32 %v8754_v51, %v8830_v18  ;;  %v8849_v57 = vld [vmem:[#allocation43_spill] sm:$0xff]  ;;  %v5986_v38 = vpop.permute.xlu1 %1454 }
 0x119   :  { %v5973_v0 = vadd.f32 %v2532_v15, %v2531_v40  ;;  %v1056_v25 = vadd.f32 %v800_v14, %v336_v62  ;;  %v482_v4 = vmul.f32 %v8754_v51, %v8831_v31  ;;  %v1665_v9 = vmul.f32 %v8850_v33, %v8849_v57  ;;  %v8851_v40 = vld [vmem:[#allocation113_spill] sm:$0xff]  ;;  %8853 = vst [vmem:[#allocation164_spill] sm:$0xff] %v5986_v38  ;;  %v8855_v14 = vld [vmem:[#allocation151_spill] sm:$0xff] }
 0x11a   :  { %v2471_v26 = vmax.f32 %v2215_v60, 0.0  ;;  %2837 = vadd.xlane.f32.xlu0 %v5846_v11  ;;  %v2472_v45 = vmax.f32 %v2216_v52, 0.0  ;;  %v1775_v24 = vadd.f32 %v1519_v54, %v1055_v23  ;;  %v1201_v15 = vadd.f32 %v8851_v40, %v481_v20  ;;  %v8854_v60 = vld [vmem:[#allocation114_spill] sm:$0xff]  ;;  %v8856_v52 = vld [vmem:[#allocation140_spill] sm:$0xff]  ;;  %v8858_v40 = vld [vmem:[#allocation117_spill] sm:$0xff] }
 0x11b   :  { %v1666_v22 = vmul.f32 %v8850_v33, %v8852_v2  ;;  %v1776_v7 = vadd.f32 %v1520_v58, %v1056_v25  ;;  %v1202_v62 = vadd.f32 %v8854_v60, %v482_v4  ;;  %v395_v36 = vmul.f32 %v8855_v14, %v8758_v5  ;;  %2747 = vadd.xlane.f32.xlu1 %v5863_v50  ;;  %v8857_v25 = vld [vmem:[#allocation116_spill] sm:$0xff] }
 0x11c   :  { %v396_v47 = vmul.f32 %v8855_v14, %v8761_v19  ;;  %v5994_v11 = vadd.f32 %v2472_v45, %v2471_v26  ;;  %v1921_v54 = vadd.f32 %v1665_v9, %v1201_v15  ;;  %v1579_v23 = vmul.f32 %v8856_v52, %v8798_v48 }
 0x11d   :  { %v1580_v20 = vmul.f32 %v8856_v52, %v8802_v61  ;;  %v1922_v58 = vadd.f32 %v1666_v22, %v1202_v62  ;;  %v1115_v4 = vadd.f32 %v8857_v25, %v395_v36  ;;  %v303_v38 = vmul.f32 %v8845_v21, %v4715_v42  ;;  %v6015_v62 = vpop.permute.xlu1 %2038 }
 0x11e   :  { %v1116_v60 = vadd.f32 %v8858_v40, %v396_v47  ;;  %2660 = vadd.xlane.f32.xlu0 %v5884_v29  ;;  %v2273_v45 = vadd.f32 %v5609_v16, %v1921_v54  ;;  %v304_v9 = vmul.f32 %v8845_v21, %v4718_v43  ;;  %v767_v50 = vmul.f32 %v8847_v27, %v8814_v37 }
 0x11f   :  { %v768_v26 = vmul.f32 %v8847_v27, %v8815_v63  ;;  %v2274_v36 = vadd.f32 %v5609_v16, %v1922_v58  ;;  %v1835_v15 = vadd.f32 %v1579_v23, %v1115_v4  ;;  %v1487_v22 = vmul.f32 %v8848_v32, %v4659_v1  ;;  %8859 = vst [vmem:[#allocation142_spill] sm:$0xff] %v6015_v62 }
 0x120   :  { %v1836_v47 = vadd.f32 %v1580_v20, %v1116_v60  ;;  %2834 = vadd.xlane.f32.xlu1 %v5899_v10  ;;  %v2529_v29 = vmax.f32 %v2273_v45, 0.0  ;;  %v1023_v54 = vadd.f32 %v767_v50, %v303_v38  ;;  %v1488_v40 = vmul.f32 %v8848_v32, %v4662_v3 }
 0x121   :  { %v1024_v25 = vadd.f32 %v768_v26, %v304_v9  ;;  %v2127_v61 = vadd.f32 %v6015_v62, %v1775_v24  ;;  %v2128_v48 = vadd.f32 %v6015_v62, %v1776_v7  ;;  %v2530_v58 = vmax.f32 %v2274_v36, 0.0 }
 0x122   :  { %v2187_v23 = vadd.f32 %v5886_v30, %v1835_v15  ;;  %2750 = vadd.xlane.f32.xlu0 %v5901_v13  ;;  %v2188_v20 = vadd.f32 %v5886_v30, %v1836_v47  ;;  %v1743_v4 = vadd.f32 %v1487_v22, %v1023_v54  ;;  %v455_v10 = vmul.f32 %v5544_v35, %v8790_v17  ;;  %v8860_v15 = vld [vmem:[#allocation118_spill] sm:$0xff]  ;;  %v8861_v22 = vld [vmem:[#allocation39_spill] sm:$0xff] }
 0x123   :  { %v1744_v60 = vadd.f32 %v1488_v40, %v1024_v25  ;;  %v2383_v38 = vmax.f32 %v2127_v61, 0.0  ;;  %v2384_v45 = vmax.f32 %v2128_v48, 0.0  ;;  %v2881_v9 = vadd.f32 %v2530_v58, %v2529_v29  ;;  %v8862_v61 = vld [vmem:[#allocation40_spill] sm:$0xff]  ;;  %v8863_v40 = vld [vmem:[#allocation119_spill] sm:$0xff] }
 0x124   :  { %v2443_v50 = vmax.f32 %v2187_v23, 0.0  ;;  %2612 = vadd.xlane.f32.xlu1 %v5924_v59  ;;  %v2444_v24 = vmax.f32 %v2188_v20, 0.0  ;;  %v2095_v7 = vadd.f32 %v6015_v62, %v1743_v4  ;;  %v456_v13 = vmul.f32 %v5544_v35, %v8791_v8  ;;  %v8864_v20 = vld [vmem:[#allocation25_spill] sm:$0xff]  ;;  %v8872_v8 = vld [vmem:[#allocation50_spill] sm:$0xff] }
 0x125   :  { %v2096_v26 = vadd.f32 %v6015_v62, %v1744_v60  ;;  %v2662_v36 = vadd.f32 %v2384_v45, %v2383_v38  ;;  %v1175_v47 = vadd.f32 %v8860_v15, %v455_v10  ;;  %v1639_v54 = vmul.f32 %v5415_v44, %v8861_v22  ;;  %v8865_v60 = vld [vmem:[#allocation26_spill] sm:$0xff]  ;;  %v8867_v45 = vld [vmem:[#allocation55_spill] sm:$0xff] }
 0x126   :  { %v1640_v48 = vmul.f32 %v5415_v44, %v8862_v61  ;;  %2840 = vadd.xlane.f32.xlu0 %v5955_v55  ;;  %v2752_v59 = vadd.f32 %v2444_v24, %v2443_v50  ;;  %v2351_v29 = vmax.f32 %v2095_v7, 0.0  ;;  %v1176_v58 = vadd.f32 %v8863_v40, %v456_v13  ;;  %v8866_v38 = vld [vmem:[#allocation10_spill] sm:$0xff]  ;;  %v8868_v55 = vld [vmem:[#allocation11_spill] sm:$0xff]  ;;  %v8870_v7 = vld [vmem:[#allocation69_spill] sm:$0xff] }
 0x127   :  { %v2352_v25 = vmax.f32 %v2096_v26, 0.0  ;;  %v1895_v23 = vadd.f32 %v1639_v54, %v1175_v47  ;;  %v365_v4 = vmul.f32 %v5579_v53, %v8864_v20  ;;  %v366_v10 = vmul.f32 %v5579_v53, %v8865_v60  ;;  %v8869_v24 = vld [vmem:[#allocation18_spill] sm:$0xff]  ;;  %v8871_v54 = vld [vmem:[#allocation19_spill] sm:$0xff]  ;;  %v8876_v53 = vld [vmem:[#allocation53_spill] sm:$0xff] }
 0x128   :  { %v829_v15 = vmul.f32 %v8867_v45, %v8866_v38  ;;  %2705 = vadd.xlane.f32.xlu1 %v5949_v6  ;;  %v1896_v22 = vadd.f32 %v1640_v48, %v1176_v58  ;;  %v830_v50 = vmul.f32 %v8867_v45, %v8868_v55  ;;  %v1549_v26 = vmul.f32 %v8870_v7, %v8869_v24  ;;  %v8874_v58 = vld [vmem:[#allocation52_spill] sm:$0xff]  ;;  %v8877_v44 = vld [vmem:[#allocation130_spill] sm:$0xff] }
 0x129   :  { %v2614_v61 = vadd.f32 %v2352_v25, %v2351_v29  ;;  %v2247_v13 = vadd.f32 %v5762_v49, %v1895_v23  ;;  %v1550_v40 = vmul.f32 %v8870_v7, %v8871_v54  ;;  %v513_v17 = vmul.f32 %v8754_v51, %v8872_v8  ;;  %v8873_v29 = vld [vmem:[#allocation51_spill] sm:$0xff] }
 0x12a   :  { %v1085_v47 = vadd.f32 %v829_v15, %v365_v4  ;;  %2885 = vadd.xlane.f32.xlu0 %v5973_v0  ;;  %v2248_v6 = vadd.f32 %v5762_v49, %v1896_v22  ;;  %v1086_v48 = vadd.f32 %v830_v50, %v366_v10  ;;  %v514_v25 = vmul.f32 %v8754_v51, %v8873_v29  ;;  %v8875_v4 = vld [vmem:[#allocation129_spill] sm:$0xff]  ;;  %v8878_v10 = vld [vmem:[#allocation131_spill] sm:$0xff] }
 0x12b   :  { %v1697_v45 = vmul.f32 %v8850_v33, %v8874_v58  ;;  %v2503_v19 = vmax.f32 %v2247_v13, 0.0  ;;  %v1233_v15 = vadd.f32 %v8875_v4, %v513_v17  ;;  %v1698_v7 = vmul.f32 %v8850_v33, %v8876_v53  ;;  %v8879_v51 = vld [vmem:[#allocation165_spill] sm:$0xff] }
 0x12c   :  { %v1805_v23 = vadd.f32 %v1549_v26, %v1085_v47  ;;  %2795 = vadd.xlane.f32.xlu1 %v5994_v11  ;;  %v2504_v5 = vmax.f32 %v2248_v6, 0.0  ;;  %v1806_v0 = vadd.f32 %v1550_v40, %v1086_v48  ;;  %v1234_v22 = vadd.f32 %v8877_v44, %v514_v25  ;;  %v8880_v17 = vld [vmem:[#allocation57_spill] sm:$0xff]  ;;  %v8881_v40 = vld [vmem:[#allocation132_spill] sm:$0xff] }
 0x12d   :  { %v425_v50 = vmul.f32 %v8878_v10, %v8834_v34  ;;  %v1953_v30 = vadd.f32 %v1697_v45, %v1233_v15  ;;  %v426_v26 = vmul.f32 %v8878_v10, %v8838_v39  ;;  %v1609_v13 = vmul.f32 %v8880_v17, %v8843_v41  ;;  %v8882_v25 = vld [vmem:[#allocation133_spill] sm:$0xff] }
 0x12e   :  { %v2157_v49 = vadd.f32 %v8879_v51, %v1805_v23  ;;  %2663 = vadd.xlane.f32.xlu0 %v2662_v36  ;;  %v2842_v33 = vadd.f32 %v2504_v5, %v2503_v19  ;;  %v2158_v11 = vadd.f32 %v8879_v51, %v1806_v0  ;;  %v1954_v47 = vadd.f32 %v1698_v7, %v1234_v22  ;;  %v6079_v23 = vpop.permute.xlu0 %281  ;;  %v8884_v19 = vld [vmem:[#allocation66_spill] sm:$0xff] }
 0x12f   :  { %v1145_v6 = vadd.f32 %v8881_v40, %v425_v50  ;;  %v2305_v48 = vadd.f32 %v5609_v16, %v1953_v30  ;;  %v1146_v4 = vadd.f32 %v8882_v25, %v426_v26  ;;  %v1610_v45 = vmul.f32 %v8880_v17, %v8844_v56  ;;  %8883 = vst [vmem:[#allocation62_spill] sm:$0xff] %v6079_v23  ;;  %v8885_v30 = vld [vmem:[#allocation67_spill] sm:$0xff]  ;;  %v8886_v25 = vld [vmem:[#allocation70_spill] sm:$0xff] }
 0x130   :  { %v2413_v44 = vmax.f32 %v2157_v49, 0.0  ;;  %2882 = vadd.xlane.f32.xlu1 %v2881_v9  ;;  %v2414_v15 = vmax.f32 %v2158_v11, 0.0  ;;  %v2306_v36 = vadd.f32 %v5609_v16, %v1954_v47  ;;  %v305_v7 = vmul.f32 %v8884_v19, %v4715_v42  ;;  %v8887_v47 = vld [vmem:[#allocation100_spill] sm:$0xff]  ;;  %v8891_v17 = vld [vmem:[#allocation134_spill] sm:$0xff] }
 0x131   :  { %v1865_v5 = vadd.f32 %v1609_v13, %v1145_v6  ;;  %v2561_v0 = vmax.f32 %v2305_v48, 0.0  ;;  %v1866_v22 = vadd.f32 %v1610_v45, %v1146_v4  ;;  %v306_v49 = vmul.f32 %v8884_v19, %v4718_v43 }
 0x132   :  { %v769_v50 = vmul.f32 %v8885_v30, %v8814_v37  ;;  %2753 = vadd.xlane.f32.xlu0 %v2752_v59  ;;  %v2707_v26 = vadd.f32 %v2414_v15, %v2413_v44  ;;  %v2562_v40 = vmax.f32 %v2306_v36, 0.0  ;;  %v770_v16 = vmul.f32 %v8885_v30, %v8815_v63  ;;  %v8888_v44 = vld [vmem:[#allocation56_spill] sm:$0xff] }
 0x133   :  { %v2217_v9 = vadd.f32 %v8886_v25, %v1865_v5  ;;  %v2218_v13 = vadd.f32 %v8886_v25, %v1866_v22  ;;  %v1489_v6 = vmul.f32 %v8887_v47, %v4659_v1  ;;  %v1490_v48 = vmul.f32 %v8887_v47, %v4662_v3 }
 0x134   :  { %v1025_v11 = vadd.f32 %v769_v50, %v305_v7  ;;  %2615 = vadd.xlane.f32.xlu1 %v2614_v61  ;;  %v2929_v4 = vadd.f32 %v2562_v40, %v2561_v0  ;;  %v1026_v59 = vadd.f32 %v770_v16, %v306_v49  ;;  %v485_v15 = vmul.f32 %v8888_v44, %v8830_v18  ;;  %v8889_v7 = vld [vmem:[#allocation139_spill] sm:$0xff]  ;;  %v6102_v50 = vpop.permute.xlu0 %2043 }
 0x135   :  { %v2473_v45 = vmax.f32 %v2217_v9, 0.0  ;;  %v2474_v36 = vmax.f32 %v2218_v13, 0.0  ;;  %v486_v23 = vmul.f32 %v8888_v44, %v8831_v31  ;;  %v1669_v22 = vmul.f32 %v8889_v7, %v8849_v57  ;;  %8890 = vst [vmem:[#allocation63_spill] sm:$0xff] %v6102_v50  ;;  %v8892_v16 = vld [vmem:[#allocation135_spill] sm:$0xff] }
 0x136   :  { %v1745_v5 = vadd.f32 %v1489_v6, %v1025_v11  ;;  %2843 = vadd.xlane.f32.xlu0 %v2842_v33  ;;  %v1746_v25 = vadd.f32 %v1490_v48, %v1026_v59  ;;  %v1205_v61 = vadd.f32 %v8891_v17, %v485_v15  ;;  %v1670_v0 = vmul.f32 %v8889_v7, %v8852_v2  ;;  %v6118_v59 = vpop.permute.xlu1 %746 }
 0x137   :  { %v367_v49 = vmul.f32 %v8845_v21, %v8864_v20  ;;  %v2797_v40 = vadd.f32 %v2474_v36, %v2473_v45  ;;  %v1206_v13 = vadd.f32 %v8892_v16, %v486_v23  ;;  %v368_v11 = vmul.f32 %v8845_v21, %v8865_v60  ;;  %8893 = vst [vmem:[#allocation72_spill] sm:$0xff] %v6118_v59  ;;  %v8894_v16 = vld [vmem:[#allocation54_spill] sm:$0xff] }
 0x138   :  { %v2097_v9 = vadd.f32 %v6102_v50, %v1745_v5  ;;  %2708 = vadd.xlane.f32.xlu1 %v2707_v26  ;;  %v2098_v33 = vadd.f32 %v6102_v50, %v1746_v25  ;;  %v1925_v6 = vadd.f32 %v1669_v22, %v1205_v61  ;;  %v831_v17 = vmul.f32 %v8847_v27, %v8866_v38 }
 0x139   :  { %v832_v48 = vmul.f32 %v8847_v27, %v8868_v55  ;;  %v1926_v15 = vadd.f32 %v1670_v0, %v1206_v13  ;;  %v1551_v23 = vmul.f32 %v8848_v32, %v8869_v24  ;;  %v1552_v36 = vmul.f32 %v8848_v32, %v8871_v54  ;;  %v8896_v13 = vld [vmem:[#allocation64_spill] sm:$0xff] }
 0x13a   :  { %v2353_v45 = vmax.f32 %v2097_v9, 0.0  ;;  %2930 = vadd.xlane.f32.xlu0 %v2929_v4  ;;  %v2354_v26 = vmax.f32 %v2098_v33, 0.0  ;;  %v2277_v25 = vadd.f32 %v5657_v12, %v1925_v6  ;;  %v1087_v5 = vadd.f32 %v831_v17, %v367_v49  ;;  %v8895_v9 = vld [vmem:[#allocation47_spill] sm:$0xff]  ;;  %v8897_v6 = vld [vmem:[#allocation48_spill] sm:$0xff] }
 0x13b   :  { %v1088_v22 = vadd.f32 %v832_v48, %v368_v11  ;;  %v2278_v61 = vadd.f32 %v5657_v12, %v1926_v15  ;;  %v515_v27 = vmul.f32 %v8894_v16, %v8872_v8  ;;  %v516_v0 = vmul.f32 %v8894_v16, %v8873_v29  ;;  %v8898_v17 = vld [vmem:[#allocation115_spill] sm:$0xff] }
 0x13c   :  { %v979_v59 = vmul.f32 %v8896_v13, %v8895_v9  ;;  %2798 = vadd.xlane.f32.xlu1 %v2797_v40  ;;  %v2617_v21 = vadd.f32 %v2354_v26, %v2353_v45  ;;  %v2533_v32 = vmax.f32 %v2277_v25, 0.0  ;;  %v1807_v4 = vadd.f32 %v1551_v23, %v1087_v5  ;;  %v6142_v23 = vpop.permute.xlu1 %1458  ;;  %v8900_v5 = vld [vmem:[#allocation31_spill] sm:$0xff] }
 0x13d   :  { %v1808_v33 = vadd.f32 %v1552_v36, %v1088_v22  ;;  %v2534_v7 = vmax.f32 %v2278_v61, 0.0  ;;  %v980_v49 = vmul.f32 %v8896_v13, %v8897_v6  ;;  %v1699_v48 = vmul.f32 %v8898_v17, %v8874_v58  ;;  %8899 = vst [vmem:[#allocation143_spill] sm:$0xff] %v6142_v23  ;;  %v8901_v22 = vld [vmem:[#allocation65_spill] sm:$0xff]  ;;  %v8902_v13 = vld [vmem:[#allocation32_spill] sm:$0xff] }
 0x13e   :  { %v1235_v11 = vadd.f32 %v979_v59, %v515_v27  ;;  %2618 = vadd.xlane.f32.xlu0 %v2617_v21  ;;  %v2159_v15 = vadd.f32 %v6015_v62, %v1807_v4  ;;  %v1700_v40 = vmul.f32 %v8898_v17, %v8876_v53  ;;  %v427_v45 = vmul.f32 %v8855_v14, %v8834_v34  ;;  %v8903_v23 = vld [vmem:[#allocation24_spill] sm:$0xff] }
 0x13f   :  { %v2160_v16 = vadd.f32 %v6015_v62, %v1808_v33  ;;  %v2887_v36 = vadd.f32 %v2534_v7, %v2533_v32  ;;  %v1236_v26 = vadd.f32 %v980_v49, %v516_v0  ;;  %v428_v27 = vmul.f32 %v8855_v14, %v8838_v39  ;;  %v8905_v14 = vld [vmem:[#allocation9_spill] sm:$0xff] }
 0x140   :  { %v1955_v25 = vadd.f32 %v1699_v48, %v1235_v11  ;;  %v2415_v59 = vmax.f32 %v2159_v15, 0.0  ;;  %v891_v61 = vmul.f32 %v8901_v22, %v8900_v5  ;;  %v892_v4 = vmul.f32 %v8901_v22, %v8902_v13 }
 0x141   :  { %v2416_v21 = vmax.f32 %v2160_v16, 0.0  ;;  %2888 = vadd.xlane.f32.xlu1 %v2887_v36  ;;  %v1956_v33 = vadd.f32 %v1700_v40, %v1236_v26  ;;  %v1611_v32 = vmul.f32 %v8856_v52, %v8843_v41  ;;  %v1612_v7 = vmul.f32 %v8856_v52, %v8844_v56  ;;  %v8904_v36 = vld [vmem:[#allocation8_spill] sm:$0xff]  ;;  %v8909_v52 = vld [vmem:[#allocation103_spill] sm:$0xff] }
 0x142   :  { %v2307_v17 = vadd.f32 %v5637_v28, %v1955_v25  ;;  %v1147_v49 = vadd.f32 %v891_v61, %v427_v45  ;;  %v1148_v11 = vadd.f32 %v892_v4, %v428_v27  ;;  %v337_v48 = vmul.f32 %v8884_v19, %v4721_v46  ;;  %v8906_v45 = vld [vmem:[#allocation16_spill] sm:$0xff]  ;;  %v8908_v4 = vld [vmem:[#allocation17_spill] sm:$0xff] }
 0x143   :  { %v2710_v0 = vadd.f32 %v2416_v21, %v2415_v59  ;;  %v2308_v15 = vadd.f32 %v5637_v28, %v1956_v33  ;;  %v338_v40 = vmul.f32 %v8884_v19, %v8903_v23  ;;  %v801_v26 = vmul.f32 %v8885_v30, %v8904_v36  ;;  %v6166_v21 = vpop.permute.xlu1 %286 }
 0x144   :  { %v2563_v16 = vmax.f32 %v2307_v17, 0.0  ;;  %v1867_v25 = vadd.f32 %v1611_v32, %v1147_v49  ;;  %v1868_v22 = vadd.f32 %v1612_v7, %v1148_v11  ;;  %v802_v59 = vmul.f32 %v8885_v30, %v8905_v14  ;;  %8907 = vst [vmem:[#allocation144_spill] sm:$0xff] %v6166_v21  ;;  %v8911_v21 = vld [vmem:[#allocation96_spill] sm:$0xff] }
 0x145   :  { %2711 = vadd.xlane.f32.xlu0 %v2710_v0  ;;  %v1521_v27 = vmul.f32 %v8887_v47, %v8906_v45  ;;  %v2564_v61 = vmax.f32 %v2308_v15, 0.0  ;;  %v1057_v28 = vadd.f32 %v801_v26, %v337_v48  ;;  %v1522_v33 = vmul.f32 %v8887_v47, %v8908_v4  ;;  %v8910_v45 = vld [vmem:[#allocation41_spill] sm:$0xff]  ;;  %v8912_v48 = vld [vmem:[#allocation42_spill] sm:$0xff] }
 0x146   :  { %v487_v17 = vmul.f32 %v5544_v35, %v8830_v18  ;;  %v2219_v0 = vadd.f32 %v8909_v52, %v1867_v25  ;;  %v2220_v32 = vadd.f32 %v8909_v52, %v1868_v22  ;;  %v1058_v7 = vadd.f32 %v802_v59, %v338_v40  ;;  %v8913_v18 = vld [vmem:[#allocation159_spill] sm:$0xff] }
 0x147   :  { %v488_v49 = vmul.f32 %v5544_v35, %v8831_v31  ;;  %v2932_v11 = vadd.f32 %v2564_v61, %v2563_v16  ;;  %v1777_v62 = vadd.f32 %v1521_v27, %v1057_v28  ;;  %v951_v15 = vmul.f32 %v8911_v21, %v8910_v45  ;;  %v8914_v28 = vld [vmem:[#allocation27_spill] sm:$0xff]  ;;  %v8915_v35 = vld [vmem:[#allocation60_spill] sm:$0xff] }
 0x148   :  { %v952_v26 = vmul.f32 %v8911_v21, %v8912_v48  ;;  %v2475_v4 = vmax.f32 %v2219_v0, 0.0  ;;  %v2476_v14 = vmax.f32 %v2220_v32, 0.0  ;;  %v1778_v36 = vadd.f32 %v1522_v33, %v1058_v7  ;;  %v8916_v0 = vld [vmem:[#allocation28_spill] sm:$0xff]  ;;  %v6190_v32 = vpop.permute.xlu1 %1462 }
 0x149   :  { %v1671_v25 = vmul.f32 %v8913_v18, %v8849_v57  ;;  %2933 = vadd.xlane.f32.xlu1 %v2932_v11  ;;  %v2129_v22 = vadd.f32 %v6102_v50, %v1777_v62  ;;  %v1207_v40 = vadd.f32 %v951_v15, %v487_v17  ;;  %v1672_v16 = vmul.f32 %v8913_v18, %v8852_v2  ;;  %v8918_v62 = vld [vmem:[#allocation12_spill] sm:$0xff]  ;;  %v8919_v17 = vld [vmem:[#allocation55_spill] sm:$0xff] }
 0x14a   :  { %v1208_v59 = vadd.f32 %v952_v26, %v488_v49  ;;  %v2800_v27 = vadd.f32 %v2476_v14, %v2475_v4  ;;  %v2130_v61 = vadd.f32 %v6102_v50, %v1778_v36  ;;  %v397_v21 = vmul.f32 %v8915_v35, %v8914_v28  ;;  %8917 = vst [vmem:[#allocation73_spill] sm:$0xff] %v6190_v32  ;;  %v8920_v26 = vld [vmem:[#allocation13_spill] sm:$0xff]  ;;  %v8921_v36 = vld [vmem:[#allocation20_spill] sm:$0xff]  ;;  %v8926_v32 = vld [vmem:[#allocation79_spill] sm:$0xff] }
 0x14b   :  { %v398_v33 = vmul.f32 %v8915_v35, %v8916_v0  ;;  %v2385_v7 = vmax.f32 %v2129_v22, 0.0  ;;  %v1927_v11 = vadd.f32 %v1671_v25, %v1207_v40  ;;  %v861_v49 = vmul.f32 %v8919_v17, %v8918_v62  ;;  %v8922_v4 = vld [vmem:[#allocation69_spill] sm:$0xff]  ;;  %v8925_v40 = vld [vmem:[#allocation71_spill] sm:$0xff] }
 0x14c   :  { %v1928_v52 = vadd.f32 %v1672_v16, %v1208_v59  ;;  %2801 = vadd.xlane.f32.xlu0 %v2800_v27  ;;  %v2386_v15 = vmax.f32 %v2130_v61, 0.0  ;;  %v862_v14 = vmul.f32 %v8919_v17, %v8920_v26  ;;  %v1581_v18 = vmul.f32 %v8922_v4, %v8921_v36  ;;  %v8923_v28 = vld [vmem:[#allocation21_spill] sm:$0xff] }
 0x14d   :  { %v1582_v2 = vmul.f32 %v8922_v4, %v8923_v28  ;;  %v8924_v0 = vld [vmem:[#allocation85_spill] sm:$0xff]  ;;  %v1117_v25 = vadd.f32 %v861_v49, %v397_v21  ;;  %v307_v59 = vmul.f32 %v8925_v40, %v4715_v42  ;;  %v308_v61 = vmul.f32 %v8925_v40, %v4718_v43  ;;  %v8927_v49 = vld [vmem:[#allocation102_spill] sm:$0xff] }
 0x14e   :  { %v2279_v57 = vadd.f32 %v8924_v0, %v1927_v11  ;;  %v2280_v22 = vadd.f32 %v8924_v0, %v1928_v52  ;;  %v2665_v16 = vadd.f32 %v2386_v15, %v2385_v7  ;;  %v1118_v27 = vadd.f32 %v862_v14, %v398_v33  ;;  %v6214_v7 = vpop.permute.xlu1 %2048 }
 0x14f   :  { %v771_v26 = vmul.f32 %v8926_v32, %v8814_v37  ;;  %v1837_v48 = vadd.f32 %v1581_v18, %v1117_v25  ;;  %v772_v11 = vmul.f32 %v8926_v32, %v8815_v63  ;;  %v1491_v0 = vmul.f32 %v8927_v49, %v4659_v1  ;;  %8928 = vst [vmem:[#allocation120_spill] sm:$0xff] %v6214_v7  ;;  %v8933_v37 = vld [vmem:[#allocation36_spill] sm:$0xff] }
 0x150   :  { %v2535_v36 = vmax.f32 %v2279_v57, 0.0  ;;  %v2536_v62 = vmax.f32 %v2280_v22, 0.0  ;;  %2666 = vadd.xlane.f32.xlu1 %v2665_v16  ;;  %v1838_v52 = vadd.f32 %v1582_v2, %v1118_v27  ;;  %v1492_v33 = vmul.f32 %v8927_v49, %v4662_v3  ;;  %v8929_v22 = vld [vmem:[#allocation37_spill] sm:$0xff]  ;;  %v8930_v2 = vld [vmem:[#allocation38_spill] sm:$0xff] }
 0x151   :  { %v1027_v21 = vadd.f32 %v771_v26, %v307_v59  ;;  %v2189_v14 = vadd.f32 %v8879_v51, %v1837_v48  ;;  %v1028_v57 = vadd.f32 %v772_v11, %v308_v61  ;;  %v457_v18 = vmul.f32 %v8878_v10, %v8929_v22  ;;  %v8931_v59 = vld [vmem:[#allocation35_spill] sm:$0xff]  ;;  %v8932_v27 = vld [vmem:[#allocation49_spill] sm:$0xff] }
 0x152   :  { %v2890_v15 = vadd.f32 %v2536_v62, %v2535_v36  ;;  %v2190_v25 = vadd.f32 %v8879_v51, %v1838_v52  ;;  %v458_v26 = vmul.f32 %v8878_v10, %v8930_v2  ;;  %v921_v1 = vmul.f32 %v8932_v27, %v8931_v59  ;;  %v8934_v48 = vld [vmem:[#allocation39_spill] sm:$0xff]  ;;  %v8935_v36 = vld [vmem:[#allocation57_spill] sm:$0xff] }
 0x153   :  { %v1747_v16 = vadd.f32 %v1491_v0, %v1027_v21  ;;  %v2445_v3 = vmax.f32 %v2189_v14, 0.0  ;;  %v1748_v63 = vadd.f32 %v1492_v33, %v1028_v57  ;;  %v922_v62 = vmul.f32 %v8932_v27, %v8933_v37  ;;  %v8936_v0 = vld [vmem:[#allocation40_spill] sm:$0xff] }
 0x154   :  { %2891 = vadd.xlane.f32.xlu0 %v2890_v15  ;;  %v1641_v61 = vmul.f32 %v8935_v36, %v8934_v48  ;;  %v2446_v11 = vmax.f32 %v2190_v25, 0.0  ;;  %v1177_v52 = vadd.f32 %v921_v1, %v457_v18  ;;  %v1642_v21 = vmul.f32 %v8935_v36, %v8936_v0 }
 0x155   :  { %v2099_v22 = vadd.f32 %v6214_v7, %v1747_v16  ;;  %v2100_v2 = vadd.f32 %v6214_v7, %v1748_v63  ;;  %v1178_v43 = vadd.f32 %v922_v62, %v458_v26  ;;  %v369_v15 = vmul.f32 %v8884_v19, %v8864_v20  ;;  %v8937_v26 = vld [vmem:[#allocation70_spill] sm:$0xff] }
 0x156   :  { %v370_v33 = vmul.f32 %v8884_v19, %v8865_v60  ;;  %v2755_v14 = vadd.f32 %v2446_v11, %v2445_v3  ;;  %v1897_v37 = vadd.f32 %v1641_v61, %v1177_v52  ;;  %v833_v25 = vmul.f32 %v8885_v30, %v8866_v38  ;;  %v8952_v19 = vld [vmem:[#allocation59_spill] sm:$0xff] }
 0x157   :  { %v2355_v57 = vmax.f32 %v2099_v22, 0.0  ;;  %v2356_v16 = vmax.f32 %v2100_v2, 0.0  ;;  %v1898_v1 = vadd.f32 %v1642_v21, %v1178_v43  ;;  %v834_v18 = vmul.f32 %v8885_v30, %v8868_v55 }
 0x158   :  { %v1553_v63 = vmul.f32 %v8887_v47, %v8869_v24  ;;  %2756 = vadd.xlane.f32.xlu1 %v2755_v14  ;;  %v2249_v62 = vadd.f32 %v8937_v26, %v1897_v37  ;;  %v1089_v20 = vadd.f32 %v833_v25, %v369_v15  ;;  %v1554_v3 = vmul.f32 %v8887_v47, %v8871_v54  ;;  %v8938_v14 = vld [vmem:[#allocation78_spill] sm:$0xff]  ;;  %v8939_v47 = vld [vmem:[#allocation139_spill] sm:$0xff] }
 0x159   :  { %v517_v22 = vmul.f32 %v8888_v44, %v8872_v8  ;;  %v2620_v61 = vadd.f32 %v2356_v16, %v2355_v57  ;;  %v2250_v2 = vadd.f32 %v8937_v26, %v1898_v1  ;;  %v1090_v43 = vadd.f32 %v834_v18, %v370_v33 }
 0x15a   :  { %v518_v11 = vmul.f32 %v8888_v44, %v8873_v29  ;;  %v2505_v52 = vmax.f32 %v2249_v62, 0.0  ;;  %v1809_v21 = vadd.f32 %v1553_v63, %v1089_v20  ;;  %v981_v30 = vmul.f32 %v8938_v14, %v8895_v9 }
 0x15b   :  { %v982_v37 = vmul.f32 %v8938_v14, %v8897_v6  ;;  %2621 = vadd.xlane.f32.xlu0 %v2620_v61  ;;  %v2506_v15 = vmax.f32 %v2250_v2, 0.0  ;;  %v1810_v25 = vadd.f32 %v1554_v3, %v1090_v43  ;;  %v1701_v57 = vmul.f32 %v8939_v47, %v8874_v58 }
 0x15c   :  { %v1702_v33 = vmul.f32 %v8939_v47, %v8876_v53  ;;  %v2161_v16 = vadd.f32 %v6102_v50, %v1809_v21  ;;  %v1237_v44 = vadd.f32 %v981_v30, %v517_v22  ;;  %v429_v20 = vmul.f32 %v8915_v35, %v8834_v34 }
 0x15d   :  { %v1238_v1 = vadd.f32 %v982_v37, %v518_v11  ;;  %v2845_v18 = vadd.f32 %v2506_v15, %v2505_v52  ;;  %v2162_v63 = vadd.f32 %v6102_v50, %v1810_v25  ;;  %v430_v62 = vmul.f32 %v8915_v35, %v8838_v39  ;;  %v8951_v50 = vld [vmem:[#allocation12_spill] sm:$0xff] }
 0x15e   :  { %v893_v3 = vmul.f32 %v8919_v17, %v8900_v5  ;;  %v2417_v61 = vmax.f32 %v2161_v16, 0.0  ;;  %v1957_v2 = vadd.f32 %v1701_v57, %v1237_v44  ;;  %v894_v47 = vmul.f32 %v8919_v17, %v8902_v13  ;;  %v8940_v16 = vld [vmem:[#allocation8_spill] sm:$0xff] }
 0x15f   :  { %v1958_v43 = vadd.f32 %v1702_v33, %v1238_v1  ;;  %2846 = vadd.xlane.f32.xlu1 %v2845_v18  ;;  %v2418_v30 = vmax.f32 %v2162_v63, 0.0  ;;  %v1613_v11 = vmul.f32 %v8922_v4, %v8843_v41  ;;  %v1614_v52 = vmul.f32 %v8922_v4, %v8844_v56  ;;  %v8941_v63 = vld [vmem:[#allocation9_spill] sm:$0xff]  ;;  %v8945_v4 = vld [vmem:[#allocation42_spill] sm:$0xff] }
 0x160   :  { %v1149_v22 = vadd.f32 %v893_v3, %v429_v20  ;;  %v2309_v21 = vadd.f32 %v5657_v12, %v1957_v2  ;;  %v1150_v37 = vadd.f32 %v894_v47, %v430_v62  ;;  %v339_v15 = vmul.f32 %v8925_v40, %v4721_v46  ;;  %v8942_v2 = vld [vmem:[#allocation16_spill] sm:$0xff] }
 0x161   :  { %v2310_v14 = vadd.f32 %v5657_v12, %v1958_v43  ;;  %v2713_v25 = vadd.f32 %v2418_v30, %v2417_v61  ;;  %v340_v33 = vmul.f32 %v8925_v40, %v8903_v23  ;;  %v803_v44 = vmul.f32 %v8926_v32, %v8940_v16  ;;  %v8943_v43 = vld [vmem:[#allocation17_spill] sm:$0xff] }
 0x162   :  { %v1869_v57 = vadd.f32 %v1613_v11, %v1149_v22  ;;  %v2565_v1 = vmax.f32 %v2309_v21, 0.0  ;;  %v1870_v18 = vadd.f32 %v1614_v52, %v1150_v37  ;;  %v804_v3 = vmul.f32 %v8926_v32, %v8941_v63  ;;  %v8944_v21 = vld [vmem:[#allocation45_spill] sm:$0xff] }
 0x163   :  { %v2566_v20 = vmax.f32 %v2310_v14, 0.0  ;;  %2714 = vadd.xlane.f32.xlu0 %v2713_v25  ;;  %v1059_v62 = vadd.f32 %v803_v44, %v339_v15  ;;  %v1523_v61 = vmul.f32 %v8927_v49, %v8942_v2  ;;  %v1524_v47 = vmul.f32 %v8927_v49, %v8943_v43 }
 0x164   :  { %v2221_v12 = vadd.f32 %v8879_v51, %v1869_v57  ;;  %v2222_v22 = vadd.f32 %v8879_v51, %v1870_v18  ;;  %v1060_v11 = vadd.f32 %v804_v3, %v340_v33  ;;  %v489_v52 = vmul.f32 %v8878_v10, %v8944_v21 }
 0x165   :  { %v2935_v30 = vadd.f32 %v2566_v20, %v2565_v1  ;;  %v1779_v37 = vadd.f32 %v1523_v61, %v1059_v62  ;;  %v490_v25 = vmul.f32 %v8878_v10, %v8831_v31  ;;  %v953_v15 = vmul.f32 %v8932_v27, %v8910_v45  ;;  %v8946_v20 = vld [vmem:[#allocation43_spill] sm:$0xff]  ;;  %v8949_v10 = vld [vmem:[#allocation61_spill] sm:$0xff]  ;;  %v8970_v31 = vld [vmem:[#allocation36_spill] sm:$0xff] }
 0x166   :  { %v2477_v14 = vmax.f32 %v2221_v12, 0.0  ;;  %v2478_v57 = vmax.f32 %v2222_v22, 0.0  ;;  %v1780_v44 = vadd.f32 %v1524_v47, %v1060_v11  ;;  %v954_v1 = vmul.f32 %v8932_v27, %v8945_v4  ;;  %v8947_v12 = vld [vmem:[#allocation44_spill] sm:$0xff]  ;;  %v8948_v61 = vld [vmem:[#allocation27_spill] sm:$0xff] }
 0x167   :  { %2936 = vadd.xlane.f32.xlu1 %v2935_v30  ;;  %v1673_v33 = vmul.f32 %v8935_v36, %v8946_v20  ;;  %v2131_v18 = vadd.f32 %v6214_v7, %v1779_v37  ;;  %v1209_v3 = vadd.f32 %v953_v15, %v489_v52  ;;  %v1674_v62 = vmul.f32 %v8935_v36, %v8947_v12  ;;  %v8950_v47 = vld [vmem:[#allocation28_spill] sm:$0xff]  ;;  %v8953_v37 = vld [vmem:[#allocation13_spill] sm:$0xff] }
 0x168   :  { %v399_v51 = vmul.f32 %v8949_v10, %v8948_v61  ;;  %v2803_v17 = vadd.f32 %v2478_v57, %v2477_v14  ;;  %v2132_v30 = vadd.f32 %v6214_v7, %v1780_v44  ;;  %v1210_v22 = vadd.f32 %v954_v1, %v490_v25  ;;  %v8954_v12 = vld [vmem:[#allocation20_spill] sm:$0xff] }
 0x169   :  { %v400_v11 = vmul.f32 %v8949_v10, %v8950_v47  ;;  %v2387_v27 = vmax.f32 %v2131_v18, 0.0  ;;  %v1929_v35 = vadd.f32 %v1673_v33, %v1209_v3  ;;  %v863_v20 = vmul.f32 %v8952_v19, %v8951_v50  ;;  %v8955_v61 = vld [vmem:[#allocation84_spill] sm:$0xff] }
 0x16a   :  { %v864_v52 = vmul.f32 %v8952_v19, %v8953_v37  ;;  %2804 = vadd.xlane.f32.xlu0 %v2803_v17  ;;  %v2388_v15 = vmax.f32 %v2132_v30, 0.0  ;;  %v1930_v36 = vadd.f32 %v1674_v62, %v1210_v22  ;;  %v1583_v14 = vmul.f32 %v8955_v61, %v8954_v12  ;;  %v8956_v33 = vld [vmem:[#allocation68_spill] sm:$0xff]  ;;  %v8957_v37 = vld [vmem:[#allocation23_spill] sm:$0xff]  ;;  %v8958_v62 = vld [vmem:[#allocation6_spill] sm:$0xff] }
 0x16b   :  { %v1584_v25 = vmul.f32 %v8955_v61, %v8923_v28  ;;  %v2281_v57 = vadd.f32 %v8937_v26, %v1929_v35  ;;  %v1119_v44 = vadd.f32 %v863_v20, %v399_v51  ;;  %v309_v18 = vmul.f32 %v8956_v33, %v4715_v42  ;;  %v8959_v30 = vld [vmem:[#allocation86_spill] sm:$0xff]  ;;  %v8960_v28 = vld [vmem:[#allocation7_spill] sm:$0xff] }
 0x16c   :  { %v1120_v1 = vadd.f32 %v864_v52, %v400_v11  ;;  %v2668_v3 = vadd.f32 %v2388_v15, %v2387_v27  ;;  %v2282_v50 = vadd.f32 %v8937_v26, %v1930_v36  ;;  %v310_v17 = vmul.f32 %v8956_v33, %v8957_v37  ;;  %v8961_v11 = vld [vmem:[#allocation14_spill] sm:$0xff]  ;;  %v8962_v52 = vld [vmem:[#allocation89_spill] sm:$0xff]  ;;  %v8963_v15 = vld [vmem:[#allocation15_spill] sm:$0xff]  ;;  %v6328_v26 = vpop.permute.xlu1 %2053 }
 0x16d   :  { %v773_v22 = vmul.f32 %v8959_v30, %v8958_v62  ;;  %v2537_v12 = vmax.f32 %v2281_v57, 0.0  ;;  %v1839_v47 = vadd.f32 %v1583_v14, %v1119_v44  ;;  %v774_v35 = vmul.f32 %v8959_v30, %v8960_v28  ;;  %8964 = vst [vmem:[#allocation121_spill] sm:$0xff] %v6328_v26  ;;  %v8965_v37 = vld [vmem:[#allocation142_spill] sm:$0xff]  ;;  %v8967_v44 = vld [vmem:[#allocation151_spill] sm:$0xff] }
 0x16e   :  { %v1840_v4 = vadd.f32 %v1584_v25, %v1120_v1  ;;  %2669 = vadd.xlane.f32.xlu1 %v2668_v3  ;;  %v2538_v51 = vmax.f32 %v2282_v50, 0.0  ;;  %v1493_v27 = vmul.f32 %v8962_v52, %v8961_v11  ;;  %v1494_v36 = vmul.f32 %v8962_v52, %v8963_v15  ;;  %v8966_v25 = vld [vmem:[#allocation37_spill] sm:$0xff]  ;;  %v8968_v50 = vld [vmem:[#allocation38_spill] sm:$0xff] }
 0x16f   :  { %v1029_v20 = vadd.f32 %v773_v22, %v309_v18  ;;  %v2191_v42 = vadd.f32 %v8965_v37, %v1839_v47  ;;  %v1030_v14 = vadd.f32 %v774_v35, %v310_v17  ;;  %v459_v1 = vmul.f32 %v8967_v44, %v8966_v25  ;;  %v8969_v22 = vld [vmem:[#allocation65_spill] sm:$0xff]  ;;  %v8971_v35 = vld [vmem:[#allocation140_spill] sm:$0xff] }
 0x170   :  { %v2192_v57 = vadd.f32 %v8965_v37, %v1840_v4  ;;  %v2893_v28 = vadd.f32 %v2538_v51, %v2537_v12  ;;  %v460_v18 = vmul.f32 %v8967_v44, %v8968_v50  ;;  %v923_v11 = vmul.f32 %v8969_v22, %v8931_v59 }
 0x171   :  { %v1749_v3 = vadd.f32 %v1493_v27, %v1029_v20  ;;  %v2447_v62 = vmax.f32 %v2191_v42, 0.0  ;;  %v1750_v45 = vadd.f32 %v1494_v36, %v1030_v14  ;;  %v924_v47 = vmul.f32 %v8969_v22, %v8970_v31  ;;  %v8972_v42 = vld [vmem:[#allocation25_spill] sm:$0xff] }
 0x172   :  { %v2448_v15 = vmax.f32 %v2192_v57, 0.0  ;;  %2894 = vadd.xlane.f32.xlu0 %v2893_v28  ;;  %v1179_v17 = vadd.f32 %v923_v11, %v459_v1  ;;  %v1643_v12 = vmul.f32 %v8971_v35, %v8934_v48  ;;  %v1644_v51 = vmul.f32 %v8971_v35, %v8936_v0 }
 0x173   :  { %v2101_v4 = vadd.f32 %v6328_v26, %v1749_v3  ;;  %v2102_v27 = vadd.f32 %v6328_v26, %v1750_v45  ;;  %v1180_v59 = vadd.f32 %v924_v47, %v460_v18  ;;  %v371_v36 = vmul.f32 %v8925_v40, %v8972_v42 }
 0x174   :  { %v2758_v20 = vadd.f32 %v2448_v15, %v2447_v62  ;;  %v1899_v14 = vadd.f32 %v1643_v12, %v1179_v17  ;;  %v372_v28 = vmul.f32 %v8925_v40, %v8865_v60  ;;  %v835_v11 = vmul.f32 %v8926_v32, %v8866_v38  ;;  %v8973_v15 = vld [vmem:[#allocation103_spill] sm:$0xff]  ;;  %v8974_v17 = vld [vmem:[#allocation58_spill] sm:$0xff] }
 0x175   :  { %v2357_v57 = vmax.f32 %v2101_v4, 0.0  ;;  %v2358_v1 = vmax.f32 %v2102_v27, 0.0  ;;  %v1900_v3 = vadd.f32 %v1644_v51, %v1180_v59  ;;  %v836_v62 = vmul.f32 %v8926_v32, %v8868_v55 }
 0x176   :  { %2759 = vadd.xlane.f32.xlu1 %v2758_v20  ;;  %v1555_v45 = vmul.f32 %v8927_v49, %v8869_v24  ;;  %v2251_v18 = vadd.f32 %v8973_v15, %v1899_v14  ;;  %v1091_v47 = vadd.f32 %v835_v11, %v371_v36  ;;  %v1556_v4 = vmul.f32 %v8927_v49, %v8871_v54  ;;  %v8975_v24 = vld [vmem:[#allocation96_spill] sm:$0xff]  ;;  %v8976_v49 = vld [vmem:[#allocation159_spill] sm:$0xff] }
 0x177   :  { %v519_v12 = vmul.f32 %v8974_v17, %v8872_v8  ;;  %v2623_v40 = vadd.f32 %v2358_v1, %v2357_v57  ;;  %v2252_v20 = vadd.f32 %v8973_v15, %v1900_v3  ;;  %v1092_v27 = vadd.f32 %v836_v62, %v372_v28 }
 0x178   :  { %v520_v59 = vmul.f32 %v8974_v17, %v8873_v29  ;;  %v2507_v51 = vmax.f32 %v2251_v18, 0.0  ;;  %v1811_v32 = vadd.f32 %v1555_v45, %v1091_v47  ;;  %v983_v55 = vmul.f32 %v8975_v24, %v8895_v9 }
 0x179   :  { %v984_v36 = vmul.f32 %v8975_v24, %v8897_v6  ;;  %2624 = vadd.xlane.f32.xlu0 %v2623_v40  ;;  %v2508_v14 = vmax.f32 %v2252_v20, 0.0  ;;  %v1812_v11 = vadd.f32 %v1556_v4, %v1092_v27  ;;  %v1703_v57 = vmul.f32 %v8976_v49, %v8874_v58 }
 0x17a   :  { %v2163_v1 = vadd.f32 %v6214_v7, %v1811_v32  ;;  %v1239_v28 = vadd.f32 %v983_v55, %v519_v12  ;;  %v1704_v62 = vmul.f32 %v8976_v49, %v8876_v53  ;;  %v431_v47 = vmul.f32 %v8949_v10, %v8834_v34  ;;  %v8977_v12 = vld [vmem:[#allocation85_spill] sm:$0xff] }
 0x17b   :  { %v1240_v3 = vadd.f32 %v984_v36, %v520_v59  ;;  %v2848_v45 = vadd.f32 %v2508_v14, %v2507_v51  ;;  %v2164_v18 = vadd.f32 %v6214_v7, %v1812_v11  ;;  %v432_v24 = vmul.f32 %v8949_v10, %v8838_v39 }
 0x17c   :  { %v2419_v40 = vmax.f32 %v2163_v1, 0.0  ;;  %v1959_v4 = vadd.f32 %v1703_v57, %v1239_v28  ;;  %v895_v55 = vmul.f32 %v8952_v19, %v8900_v5  ;;  %v896_v32 = vmul.f32 %v8952_v19, %v8902_v13 }
 0x17d   :  { %v1960_v17 = vadd.f32 %v1704_v62, %v1240_v3  ;;  %2849 = vadd.xlane.f32.xlu1 %v2848_v45  ;;  %v2420_v20 = vmax.f32 %v2164_v18, 0.0  ;;  %v1615_v49 = vmul.f32 %v8955_v61, %v8843_v41  ;;  %v1616_v51 = vmul.f32 %v8955_v61, %v8844_v56 }
 0x17e   :  { %v2311_v27 = vadd.f32 %v8977_v12, %v1959_v4  ;;  %v1151_v14 = vadd.f32 %v895_v55, %v431_v47  ;;  %v1152_v11 = vadd.f32 %v896_v32, %v432_v24  ;;  %v341_v57 = vmul.f32 %v8956_v33, %v4721_v46 }
 0x17f   :  { %v2312_v59 = vadd.f32 %v8977_v12, %v1960_v17  ;;  %v2716_v36 = vadd.f32 %v2420_v20, %v2419_v40  ;;  %v342_v3 = vmul.f32 %v8956_v33, %v8903_v23  ;;  %v805_v62 = vmul.f32 %v8959_v30, %v8940_v16 }
 0x180   :  { %v2567_v1 = vmax.f32 %v2311_v27, 0.0  ;;  %v1871_v45 = vadd.f32 %v1615_v49, %v1151_v14  ;;  %v1872_v18 = vadd.f32 %v1616_v51, %v1152_v11  ;;  %v806_v4 = vmul.f32 %v8959_v30, %v8941_v63  ;;  %v8978_v27 = vld [vmem:[#allocation46_spill] sm:$0xff]  ;;  %v8979_v51 = vld [vmem:[#allocation41_spill] sm:$0xff] }
 0x181   :  { %v2568_v28 = vmax.f32 %v2312_v59, 0.0  ;;  %2717 = vadd.xlane.f32.xlu0 %v2716_v36  ;;  %v1525_v47 = vmul.f32 %v8962_v52, %v8942_v2  ;;  %v1061_v40 = vadd.f32 %v805_v62, %v341_v57  ;;  %v1526_v17 = vmul.f32 %v8962_v52, %v8943_v43  ;;  %v8980_v14 = vld [vmem:[#allocation42_spill] sm:$0xff]  ;;  %v8981_v62 = vld [vmem:[#allocation43_spill] sm:$0xff] }
 0x182   :  { %v2223_v20 = vadd.f32 %v8965_v37, %v1871_v45  ;;  %v2224_v55 = vadd.f32 %v8965_v37, %v1872_v18  ;;  %v1062_v32 = vadd.f32 %v806_v4, %v342_v3  ;;  %v491_v49 = vmul.f32 %v8967_v44, %v8944_v21  ;;  %v6412_v45 = vpop.permute.xlu0 %2058  ;;  %v6414_v18 = vpop.permute.xlu1 %1470 }
 0x183   :  { %v2938_v24 = vadd.f32 %v2568_v28, %v2567_v1  ;;  %v1781_v12 = vadd.f32 %v1525_v47, %v1061_v40  ;;  %v492_v59 = vmul.f32 %v8967_v44, %v8978_v27  ;;  %v955_v36 = vmul.f32 %v8969_v22, %v8979_v51  ;;  %8982 = vst [vmem:[#allocation137_spill] sm:$0xff] %v6412_v45  ;;  %v8984_v40 = vld [vmem:[#allocation44_spill] sm:$0xff]  ;;  %v8999_v51 = vld [vmem:[#allocation6_spill] sm:$0xff] }
 0x184   :  { %v956_v11 = vmul.f32 %v8969_v22, %v8980_v14  ;;  %v2479_v57 = vmax.f32 %v2223_v20, 0.0  ;;  %v2480_v1 = vmax.f32 %v2224_v55, 0.0  ;;  %v1782_v28 = vadd.f32 %v1526_v17, %v1062_v32  ;;  %8983 = vst [vmem:[#allocation138_spill] sm:$0xff] %v6414_v18  ;;  %v8985_v20 = vld [vmem:[#allocation27_spill] sm:$0xff]  ;;  %v8986_v55 = vld [vmem:[#allocation66_spill] sm:$0xff]  ;;  %v8987_v32 = vld [vmem:[#allocation28_spill] sm:$0xff] }
 0x185   :  { %2939 = vadd.xlane.f32.xlu1 %v2938_v24  ;;  %v1675_v3 = vmul.f32 %v8971_v35, %v8981_v62  ;;  %v2133_v4 = vadd.f32 %v6328_v26, %v1781_v12  ;;  %v1211_v47 = vadd.f32 %v955_v36, %v491_v49  ;;  %v1676_v44 = vmul.f32 %v8971_v35, %v8984_v40  ;;  %v8988_v18 = vld [vmem:[#allocation12_spill] sm:$0xff]  ;;  %v8989_v62 = vld [vmem:[#allocation67_spill] sm:$0xff] }
 0x186   :  { %v1212_v24 = vadd.f32 %v956_v11, %v492_v59  ;;  %v2806_v37 = vadd.f32 %v2480_v1, %v2479_v57  ;;  %v2134_v22 = vadd.f32 %v6328_v26, %v1782_v28  ;;  %v401_v17 = vmul.f32 %v8986_v55, %v8985_v20  ;;  %v8990_v59 = vld [vmem:[#allocation13_spill] sm:$0xff]  ;;  %v8991_v11 = vld [vmem:[#allocation20_spill] sm:$0xff] }
 0x187   :  { %v402_v61 = vmul.f32 %v8986_v55, %v8987_v32  ;;  %v2389_v19 = vmax.f32 %v2133_v4, 0.0  ;;  %v1931_v10 = vadd.f32 %v1675_v3, %v1211_v47  ;;  %v865_v12 = vmul.f32 %v8989_v62, %v8988_v18  ;;  %v8992_v57 = vld [vmem:[#allocation100_spill] sm:$0xff]  ;;  %v8993_v28 = vld [vmem:[#allocation21_spill] sm:$0xff]  ;;  %v6438_v32 = vpop.permute.xlu1 %2063 }
 0x188   :  { %v1932_v7 = vadd.f32 %v1676_v44, %v1212_v24  ;;  %2807 = vadd.xlane.f32.xlu0 %v2806_v37  ;;  %v2390_v49 = vmax.f32 %v2134_v22, 0.0  ;;  %v866_v36 = vmul.f32 %v8989_v62, %v8990_v59  ;;  %v1585_v1 = vmul.f32 %v8992_v57, %v8991_v11  ;;  %v8994_v24 = vld [vmem:[#allocation22_spill] sm:$0xff]  ;;  %v8995_v18 = vld [vmem:[#allocation101_spill] sm:$0xff]  ;;  %v6436_v22 = vpop.permute.xlu0 %2073  ;;  %8997 = vst [vmem:[#allocation91_spill] sm:$0xff] %v6438_v32 }
 0x189   :  { %v1586_v35 = vmul.f32 %v8992_v57, %v8993_v28  ;;  %v2283_v20 = vadd.f32 %v8973_v15, %v1931_v10  ;;  %v1121_v3 = vadd.f32 %v865_v12, %v401_v17  ;;  %v311_v37 = vmul.f32 %v8995_v18, %v8994_v24  ;;  %8996 = vst [vmem:[#allocation90_spill] sm:$0xff] %v6436_v22  ;;  %v8998_v28 = vld [vmem:[#allocation23_spill] sm:$0xff]  ;;  %v9003_v22 = vld [vmem:[#allocation14_spill] sm:$0xff] }
 0x18a   :  { %v2284_v4 = vadd.f32 %v8973_v15, %v1932_v7  ;;  %v2671_v44 = vadd.f32 %v2390_v49, %v2389_v19  ;;  %v1122_v47 = vadd.f32 %v866_v36, %v402_v61  ;;  %v312_v10 = vmul.f32 %v8995_v18, %v8998_v28  ;;  %v9000_v7 = vld [vmem:[#allocation97_spill] sm:$0xff]  ;;  %v9001_v19 = vld [vmem:[#allocation7_spill] sm:$0xff]  ;;  %v9004_v15 = vld [vmem:[#allocation164_spill] sm:$0xff] }
 0x18b   :  { %v2539_v59 = vmax.f32 %v2283_v20, 0.0  ;;  %v1841_v11 = vadd.f32 %v1585_v1, %v1121_v3  ;;  %v775_v17 = vmul.f32 %v9000_v7, %v8999_v51  ;;  %v776_v61 = vmul.f32 %v9000_v7, %v9001_v19  ;;  %v9002_v49 = vld [vmem:[#allocation63_spill] sm:$0xff]  ;;  %v9007_v51 = vld [vmem:[#allocation60_spill] sm:$0xff] }
 0x18c   :  { %v2540_v40 = vmax.f32 %v2284_v4, 0.0  ;;  %2672 = vadd.xlane.f32.xlu1 %v2671_v44  ;;  %v1842_v14 = vadd.f32 %v1586_v35, %v1122_v47  ;;  %v1495_v32 = vmul.f32 %v9004_v15, %v9003_v22  ;;  %v9005_v35 = vld [vmem:[#allocation15_spill] sm:$0xff]  ;;  %v6452_v44 = vpop.xlane.xlu0 %2594  ;;  %v461_v19 = vmul.f32 %v9007_v51, %v8966_v25 }
 0x18d   :  { %v2193_v36 = vadd.f32 %v9002_v49, %v1841_v11  ;;  %v1031_v1 = vadd.f32 %v775_v17, %v311_v37  ;;  %v1032_v4 = vadd.f32 %v776_v61, %v312_v10  ;;  %v1496_v3 = vmul.f32 %v9004_v15, %v9005_v35  ;;  %9006 = vst [vmem:[#allocation145_spill] sm:$0xff] %v6452_v44  ;;  %v9008_v28 = vld [vmem:[#allocation35_spill] sm:$0xff]  ;;  %v6460_v10 = vpop.permute.xlu1 %2068  ;;  %v9011_v61 = vld [vmem:[#allocation69_spill] sm:$0xff] }
 0x18e   :  { %v2896_v12 = vadd.f32 %v2540_v40, %v2539_v59  ;;  %v2194_v20 = vadd.f32 %v9002_v49, %v1842_v14  ;;  %v462_v40 = vmul.f32 %v9007_v51, %v8968_v50  ;;  %v9009_v14 = vld [vmem:[#allocation55_spill] sm:$0xff]  ;;  %9010 = vst [vmem:[#allocation147_spill] sm:$0xff] %v6460_v10 }
 0x18f   :  { %v2449_v47 = vmax.f32 %v2193_v36, 0.0  ;;  %v1751_v11 = vadd.f32 %v1495_v32, %v1031_v1  ;;  %v1752_v22 = vadd.f32 %v1496_v3, %v1032_v4  ;;  %v925_v37 = vmul.f32 %v9009_v14, %v9008_v28 }
 0x190   :  { %2897 = vadd.xlane.f32.xlu0 %v2896_v12  ;;  %v2450_v59 = vmax.f32 %v2194_v20, 0.0  ;;  %v926_v17 = vmul.f32 %v9009_v14, %v8970_v31  ;;  %v1645_v12 = vmul.f32 %v9011_v61, %v8934_v48  ;;  %v1646_v36 = vmul.f32 %v9011_v61, %v8936_v0  ;;  %v6472_v28 = vpop.xlane.xlu0 %2642 }
 0x191   :  { %v2103_v50 = vadd.f32 %v6412_v45, %v1751_v11  ;;  %v2104_v32 = vadd.f32 %v6412_v45, %v1752_v22  ;;  %v1181_v20 = vadd.f32 %v925_v37, %v461_v19  ;;  %v373_v31 = vmul.f32 %v8956_v33, %v8972_v42  ;;  %9012 = vst [vmem:[#allocation148_spill] sm:$0xff] %v6472_v28 }
 0x192   :  { %v2761_v44 = vadd.f32 %v2450_v59, %v2449_v47  ;;  %v1182_v1 = vadd.f32 %v926_v17, %v462_v40  ;;  %v374_v0 = vmul.f32 %v8956_v33, %v8865_v60  ;;  %v837_v47 = vmul.f32 %v8959_v30, %v8866_v38  ;;  %v9013_v59 = vld [vmem:[#allocation11_spill] sm:$0xff]  ;;  %v9015_v40 = vld [vmem:[#allocation18_spill] sm:$0xff]  ;;  %v6485_v17 = vpop.permute.xlu1 %2078 }
 0x193   :  { %v2359_v4 = vmax.f32 %v2103_v50, 0.0  ;;  %v2360_v3 = vmax.f32 %v2104_v32, 0.0  ;;  %v1901_v10 = vadd.f32 %v1645_v12, %v1181_v20  ;;  %v838_v22 = vmul.f32 %v8959_v30, %v9013_v59  ;;  %9016 = vst [vmem:[#allocation146_spill] sm:$0xff] %v6485_v17 }
 0x194   :  { %2762 = vadd.xlane.f32.xlu1 %v2761_v44  ;;  %v1902_v48 = vadd.f32 %v1646_v36, %v1182_v1  ;;  %v9014_v44 = vld [vmem:[#allocation165_spill] sm:$0xff]  ;;  %v1557_v11 = vmul.f32 %v8962_v52, %v9015_v40  ;;  %v1558_v37 = vmul.f32 %v8962_v52, %v8871_v54  ;;  %v1093_v36 = vadd.f32 %v837_v47, %v373_v31  ;;  %v9017_v1 = vld [vmem:[#allocation131_spill] sm:$0xff] }
 0x195   :  { %v2626_v19 = vadd.f32 %v2360_v3, %v2359_v4  ;;  %v2253_v50 = vadd.f32 %v9014_v44, %v1901_v10  ;;  %v1094_v32 = vadd.f32 %v838_v22, %v374_v0  ;;  %v521_v28 = vmul.f32 %v9017_v1, %v8872_v8  ;;  %v9018_v4 = vld [vmem:[#allocation49_spill] sm:$0xff]  ;;  %v6500_v22 = vpop.xlane.xlu0 %2645 }
 0x196   :  { %v2254_v12 = vadd.f32 %v9014_v44, %v1902_v48  ;;  %v522_v10 = vmul.f32 %v9017_v1, %v8873_v29  ;;  %v985_v3 = vmul.f32 %v9018_v4, %v8895_v9  ;;  %v1813_v33 = vadd.f32 %v1557_v11, %v1093_v36  ;;  %v9019_v31 = vld [vmem:[#allocation57_spill] sm:$0xff]  ;;  %9020 = vst [vmem:[#allocation76_spill] sm:$0xff] %v6500_v22  ;;  %v6504_v11 = vpop.xlane.xlu1 %2597 }
 0x197   :  { %2627 = vadd.xlane.f32.xlu0 %v2626_v19  ;;  %v2509_v20 = vmax.f32 %v2253_v50, 0.0  ;;  %v1814_v52 = vadd.f32 %v1558_v37, %v1094_v32  ;;  %v986_v17 = vmul.f32 %v9018_v4, %v8897_v6  ;;  %v1705_v0 = vmul.f32 %v9019_v31, %v8874_v58  ;;  %9021 = vst [vmem:[#allocation77_spill] sm:$0xff] %v6504_v11 }
 0x198   :  { %v2510_v30 = vmax.f32 %v2254_v12, 0.0  ;;  %v1241_v48 = vadd.f32 %v985_v3, %v521_v28  ;;  %v1706_v47 = vmul.f32 %v9019_v31, %v8876_v53  ;;  %v2165_v50 = vadd.f32 %v6328_v26, %v1813_v33 }
 0x199   :  { %v2166_v1 = vadd.f32 %v6328_v26, %v1814_v52  ;;  %v1242_v12 = vadd.f32 %v986_v17, %v522_v10  ;;  %v433_v28 = vmul.f32 %v8986_v55, %v8834_v34  ;;  %v434_v36 = vmul.f32 %v8986_v55, %v8838_v39  ;;  %v9022_v52 = vld [vmem:[#allocation70_spill] sm:$0xff] }
 0x19a   :  { %v2851_v19 = vadd.f32 %v2510_v30, %v2509_v20  ;;  %v1961_v37 = vadd.f32 %v1705_v0, %v1241_v48  ;;  %v897_v32 = vmul.f32 %v8989_v62, %v8900_v5  ;;  %v2421_v4 = vmax.f32 %v2165_v50, 0.0 }
 0x19b   :  { %v2422_v30 = vmax.f32 %v2166_v1, 0.0  ;;  %v1962_v20 = vadd.f32 %v1706_v47, %v1242_v12  ;;  %v898_v33 = vmul.f32 %v8989_v62, %v8902_v13  ;;  %v1617_v3 = vmul.f32 %v8992_v57, %v8843_v41 }
 0x19c   :  { %2852 = vadd.xlane.f32.xlu1 %v2851_v19  ;;  %v2313_v17 = vadd.f32 %v9022_v52, %v1961_v37  ;;  %v1153_v10 = vadd.f32 %v897_v32, %v433_v28  ;;  %v1618_v48 = vmul.f32 %v8992_v57, %v8844_v56  ;;  %v343_v19 = vmul.f32 %v8995_v18, %v4721_v46  ;;  %v6526_v37 = vpop.xlane.xlu0 %2648  ;;  %v9027_v57 = vld [vmem:[#allocation43_spill] sm:$0xff] }
 0x19d   :  { %v2719_v31 = vadd.f32 %v2422_v30, %v2421_v4  ;;  %v2314_v0 = vadd.f32 %v9022_v52, %v1962_v20  ;;  %v1154_v22 = vadd.f32 %v898_v33, %v434_v36  ;;  %v344_v1 = vmul.f32 %v8995_v18, %v8903_v23  ;;  %9023 = vst [vmem:[#allocation123_spill] sm:$0xff] %v6526_v37  ;;  %v6532_v30 = vpop.xlane.xlu1 %2600  ;;  %v9025_v37 = vld [vmem:[#allocation41_spill] sm:$0xff] }
 0x19e   :  { %v2569_v47 = vmax.f32 %v2313_v17, 0.0  ;;  %v1873_v50 = vadd.f32 %v1617_v3, %v1153_v10  ;;  %v807_v12 = vmul.f32 %v9000_v7, %v8940_v16  ;;  %v808_v4 = vmul.f32 %v9000_v7, %v8941_v63  ;;  %9024 = vst [vmem:[#allocation92_spill] sm:$0xff] %v6532_v30 }
 0x19f   :  { %2720 = vadd.xlane.f32.xlu0 %v2719_v31  ;;  %v2570_v28 = vmax.f32 %v2314_v0, 0.0  ;;  %v1874_v32 = vadd.f32 %v1618_v48, %v1154_v22  ;;  %v1527_v36 = vmul.f32 %v9004_v15, %v8942_v2  ;;  %v1528_v52 = vmul.f32 %v9004_v15, %v8943_v43 }
 0x1a0   :  { %v2225_v20 = vadd.f32 %v9002_v49, %v1873_v50  ;;  %v1063_v33 = vadd.f32 %v807_v12, %v343_v19  ;;  %v493_v17 = vmul.f32 %v9007_v51, %v8944_v21  ;;  %v1064_v3 = vadd.f32 %v808_v4, %v344_v1  ;;  %v9026_v50 = vld [vmem:[#allocation42_spill] sm:$0xff] }
 0x1a1   :  { %v2941_v10 = vadd.f32 %v2570_v28, %v2569_v47  ;;  %v2226_v22 = vadd.f32 %v9002_v49, %v1874_v32  ;;  %v494_v48 = vmul.f32 %v9007_v51, %v8978_v27  ;;  %v957_v30 = vmul.f32 %v9009_v14, %v9025_v37  ;;  %v9028_v28 = vld [vmem:[#allocation44_spill] sm:$0xff]  ;;  %v6553_v49 = vpop.xlane.xlu0 %2693  ;;  %v6560_v26 = vpop.xlane.xlu1 %2690 }
 0x1a2   :  { %v2481_v31 = vmax.f32 %v2225_v20, 0.0  ;;  %v1783_v0 = vadd.f32 %v1527_v36, %v1063_v33  ;;  %v958_v19 = vmul.f32 %v9009_v14, %v9026_v50  ;;  %v1784_v11 = vadd.f32 %v1528_v52, %v1064_v3  ;;  %v9029_v36 = vld [vmem:[#allocation27_spill] sm:$0xff]  ;;  %9031 = vst [vmem:[#allocation124_spill] sm:$0xff] %v6553_v49  ;;  %v9033_v3 = vld [vmem:[#allocation12_spill] sm:$0xff]  ;;  %9035 = vst [vmem:[#allocation93_spill] sm:$0xff] %v6560_v26 }
 0x1a3   :  { %2942 = vadd.xlane.f32.xlu1 %v2941_v10  ;;  %v2482_v12 = vmax.f32 %v2226_v22, 0.0  ;;  %v1677_v47 = vmul.f32 %v9011_v61, %v9027_v57  ;;  %v1678_v1 = vmul.f32 %v9011_v61, %v9028_v28  ;;  %v1213_v4 = vadd.f32 %v957_v30, %v493_v17  ;;  %v9030_v33 = vld [vmem:[#allocation71_spill] sm:$0xff]  ;;  %v9032_v22 = vld [vmem:[#allocation28_spill] sm:$0xff]  ;;  %v9036_v17 = vld [vmem:[#allocation13_spill] sm:$0xff] }
 0x1a4   :  { %v2135_v32 = vadd.f32 %v6412_v45, %v1783_v0  ;;  %v1214_v20 = vadd.f32 %v958_v19, %v494_v48  ;;  %v403_v51 = vmul.f32 %v9030_v33, %v9029_v36  ;;  %v2136_v10 = vadd.f32 %v6412_v45, %v1784_v11  ;;  %v9034_v14 = vld [vmem:[#allocation79_spill] sm:$0xff]  ;;  %v9039_v36 = vld [vmem:[#allocation21_spill] sm:$0xff]  ;;  %v9054_v50 = vld [vmem:[#allocation36_spill] sm:$0xff] }
 0x1a5   :  { %v2809_v62 = vadd.f32 %v2482_v12, %v2481_v31  ;;  %v404_v52 = vmul.f32 %v9030_v33, %v9032_v22  ;;  %v867_v55 = vmul.f32 %v9034_v14, %v9033_v3  ;;  %v1933_v0 = vadd.f32 %v1677_v47, %v1213_v4  ;;  %v9037_v31 = vld [vmem:[#allocation20_spill] sm:$0xff]  ;;  %v9038_v12 = vld [vmem:[#allocation102_spill] sm:$0xff]  ;;  %v9040_v47 = vld [vmem:[#allocation87_spill] sm:$0xff] }
 0x1a6   :  { %v2391_v61 = vmax.f32 %v2135_v32, 0.0  ;;  %v1934_v30 = vadd.f32 %v1678_v1, %v1214_v20  ;;  %v868_v48 = vmul.f32 %v9034_v14, %v9036_v17  ;;  %v2392_v19 = vmax.f32 %v2136_v10, 0.0  ;;  %v9041_v20 = vld [vmem:[#allocation23_spill] sm:$0xff] }
 0x1a7   :  { %2810 = vadd.xlane.f32.xlu0 %v2809_v62  ;;  %v1123_v49 = vadd.f32 %v867_v55, %v403_v51  ;;  %v1587_v11 = vmul.f32 %v9038_v12, %v9037_v31  ;;  %v1588_v22 = vmul.f32 %v9038_v12, %v9039_v36  ;;  %v2285_v28 = vadd.f32 %v9014_v44, %v1933_v0  ;;  %v9042_v51 = vld [vmem:[#allocation6_spill] sm:$0xff]  ;;  %v9043_v55 = vld [vmem:[#allocation88_spill] sm:$0xff]  ;;  %v6576_v31 = vpop.xlane.xlu0 %2651  ;;  %v9045_v0 = vld [vmem:[#allocation7_spill] sm:$0xff] }
 0x1a8   :  { %v2286_v3 = vadd.f32 %v9014_v44, %v1934_v30  ;;  %v1124_v26 = vadd.f32 %v868_v48, %v404_v52  ;;  %v313_v1 = vmul.f32 %v9040_v47, %v8994_v24  ;;  %v2674_v32 = vadd.f32 %v2392_v19, %v2391_v61  ;;  %9044 = vst [vmem:[#allocation149_spill] sm:$0xff] %v6576_v31  ;;  %v9046_v52 = vld [vmem:[#allocation120_spill] sm:$0xff]  ;;  %v9047_v61 = vld [vmem:[#allocation14_spill] sm:$0xff] }
 0x1a9   :  { %v1843_v4 = vadd.f32 %v1587_v11, %v1123_v49  ;;  %v314_v62 = vmul.f32 %v9040_v47, %v9041_v20  ;;  %v777_v10 = vmul.f32 %v9043_v55, %v9042_v51  ;;  %v2541_v17 = vmax.f32 %v2285_v28, 0.0  ;;  %v9048_v49 = vld [vmem:[#allocation143_spill] sm:$0xff]  ;;  %v6585_v20 = vpop.xlane.xlu1 %2603 }
 0x1aa   :  { %v2542_v36 = vmax.f32 %v2286_v3, 0.0  ;;  %v1844_v57 = vadd.f32 %v1588_v22, %v1124_v26  ;;  %v778_v30 = vmul.f32 %v9043_v55, %v9045_v0  ;;  %2675 = vadd.xlane.f32.xlu1 %v2674_v32  ;;  %v1497_v19 = vmul.f32 %v9048_v49, %v9047_v61  ;;  %9049 = vst [vmem:[#allocation150_spill] sm:$0xff] %v6585_v20  ;;  %v9050_v26 = vld [vmem:[#allocation61_spill] sm:$0xff]  ;;  %v9051_v0 = vld [vmem:[#allocation38_spill] sm:$0xff] }
 0x1ab   :  { %v2195_v48 = vadd.f32 %v9046_v52, %v1843_v4  ;;  %v1033_v44 = vadd.f32 %v777_v10, %v313_v1  ;;  %v1498_v11 = vmul.f32 %v9048_v49, %v9005_v35  ;;  %v463_v22 = vmul.f32 %v9050_v26, %v8966_v25  ;;  %v9052_v4 = vld [vmem:[#allocation35_spill] sm:$0xff] }
 0x1ac   :  { %v2899_v51 = vadd.f32 %v2542_v36, %v2541_v17  ;;  %v2196_v28 = vadd.f32 %v9046_v52, %v1844_v57  ;;  %v1034_v3 = vadd.f32 %v778_v30, %v314_v62  ;;  %v464_v1 = vmul.f32 %v9050_v26, %v9051_v0  ;;  %v9053_v10 = vld [vmem:[#allocation59_spill] sm:$0xff]  ;;  %v9056_v57 = vld [vmem:[#allocation84_spill] sm:$0xff] }
 0x1ad   :  { %v2451_v31 = vmax.f32 %v2195_v48, 0.0  ;;  %v1753_v32 = vadd.f32 %v1497_v19, %v1033_v44  ;;  %v927_v61 = vmul.f32 %v9053_v10, %v9052_v4  ;;  %v928_v36 = vmul.f32 %v9053_v10, %v9054_v50  ;;  %v9055_v17 = vld [vmem:[#allocation39_spill] sm:$0xff]  ;;  %v9058_v48 = vld [vmem:[#allocation40_spill] sm:$0xff]  ;;  %v6601_v19 = vpop.xlane.xlu0 %2738  ;;  %v6608_v50 = vpop.xlane.xlu1 %2696 }
 0x1ae   :  { %2900 = vadd.xlane.f32.xlu0 %v2899_v51  ;;  %v2452_v24 = vmax.f32 %v2196_v28, 0.0  ;;  %v1754_v35 = vadd.f32 %v1498_v11, %v1034_v3  ;;  %v1647_v62 = vmul.f32 %v9056_v57, %v9055_v17  ;;  %v9057_v30 = vld [vmem:[#allocation91_spill] sm:$0xff]  ;;  %v1648_v44 = vmul.f32 %v9056_v57, %v9058_v48  ;;  %9059 = vst [vmem:[#allocation82_spill] sm:$0xff] %v6601_v19 }
 0x1af   :  { %v2105_v20 = vadd.f32 %v9057_v30, %v1753_v32  ;;  %v1183_v25 = vadd.f32 %v927_v61, %v463_v22  ;;  %v1184_v51 = vadd.f32 %v928_v36, %v464_v1  ;;  %v375_v11 = vmul.f32 %v8995_v18, %v8972_v42  ;;  %9060 = vst [vmem:[#allocation83_spill] sm:$0xff] %v6608_v50 }
 0x1b0   :  { %v2764_v0 = vadd.f32 %v2452_v24, %v2451_v31  ;;  %v2106_v4 = vadd.f32 %v9057_v30, %v1754_v35  ;;  %v376_v17 = vmul.f32 %v8995_v18, %v8865_v60  ;;  %v839_v32 = vmul.f32 %v9000_v7, %v8866_v38  ;;  %v9061_v35 = vld [vmem:[#allocation142_spill] sm:$0xff] }
 0x1b1   :  { %v2361_v28 = vmax.f32 %v2105_v20, 0.0  ;;  %v1903_v3 = vadd.f32 %v1647_v62, %v1183_v25  ;;  %v1904_v22 = vadd.f32 %v1648_v44, %v1184_v51  ;;  %v840_v24 = vmul.f32 %v9000_v7, %v9013_v59  ;;  %v9062_v44 = vld [vmem:[#allocation151_spill] sm:$0xff]  ;;  %v6622_v50 = vpop.xlane.xlu0 %2606 }
 0x1b2   :  { %2765 = vadd.xlane.f32.xlu1 %v2764_v0  ;;  %v2362_v61 = vmax.f32 %v2106_v4, 0.0  ;;  %v1559_v20 = vmul.f32 %v9004_v15, %v9015_v40  ;;  %v1560_v25 = vmul.f32 %v9004_v15, %v8871_v54  ;;  %v1095_v0 = vadd.f32 %v839_v32, %v375_v11  ;;  %9063 = vst [vmem:[#allocation104_spill] sm:$0xff] %v6622_v50  ;;  %v9064_v15 = vld [vmem:[#allocation65_spill] sm:$0xff]  ;;  %v9077_v50 = vld [vmem:[#allocation68_spill] sm:$0xff] }
 0x1b3   :  { %v2255_v31 = vadd.f32 %v9061_v35, %v1903_v3  ;;  %v2256_v36 = vadd.f32 %v9061_v35, %v1904_v22  ;;  %v1096_v4 = vadd.f32 %v840_v24, %v376_v17  ;;  %v523_v51 = vmul.f32 %v9062_v44, %v8872_v8  ;;  %v9065_v17 = vld [vmem:[#allocation140_spill] sm:$0xff]  ;;  %v6632_v22 = vpop.xlane.xlu1 %2741 }
 0x1b4   :  { %v2629_v1 = vadd.f32 %v2362_v61, %v2361_v28  ;;  %v1815_v3 = vadd.f32 %v1559_v20, %v1095_v0  ;;  %v524_v18 = vmul.f32 %v9062_v44, %v8873_v29  ;;  %v987_v28 = vmul.f32 %v9064_v15, %v8895_v9  ;;  %9066 = vst [vmem:[#allocation125_spill] sm:$0xff] %v6632_v22 }
 0x1b5   :  { %v2511_v62 = vmax.f32 %v2255_v31, 0.0  ;;  %v2512_v19 = vmax.f32 %v2256_v36, 0.0  ;;  %v1816_v7 = vadd.f32 %v1560_v25, %v1096_v4  ;;  %v988_v11 = vmul.f32 %v9064_v15, %v8897_v6 }
 0x1b6   :  { %2630 = vadd.xlane.f32.xlu0 %v2629_v1  ;;  %v1707_v61 = vmul.f32 %v9065_v17, %v8874_v58  ;;  %v2167_v24 = vadd.f32 %v6412_v45, %v1815_v3  ;;  %v1708_v20 = vmul.f32 %v9065_v17, %v8876_v53  ;;  %v1243_v25 = vadd.f32 %v987_v28, %v523_v51 }
 0x1b7   :  { %v2854_v32 = vadd.f32 %v2512_v19, %v2511_v62  ;;  %v2168_v31 = vadd.f32 %v6412_v45, %v1816_v7  ;;  %v1244_v1 = vadd.f32 %v988_v11, %v524_v18  ;;  %v435_v15 = vmul.f32 %v9030_v33, %v8834_v34  ;;  %v6644_v7 = vpop.xlane.xlu0 %2699  ;;  %v9068_v11 = vld [vmem:[#allocation103_spill] sm:$0xff]  ;;  %v9087_v45 = vld [vmem:[#allocation141_spill] sm:$0xff] }
 0x1b8   :  { %v2423_v36 = vmax.f32 %v2167_v24, 0.0  ;;  %v436_v4 = vmul.f32 %v9030_v33, %v8838_v39  ;;  %v1963_v44 = vadd.f32 %v1707_v61, %v1243_v25  ;;  %v899_v62 = vmul.f32 %v9034_v14, %v8900_v5  ;;  %9067 = vst [vmem:[#allocation126_spill] sm:$0xff] %v6644_v7  ;;  %v6654_v24 = vpop.xlane.xlu1 %2654  ;;  %v9086_v33 = vld [vmem:[#allocation22_spill] sm:$0xff] }
 0x1b9   :  { %2855 = vadd.xlane.f32.xlu1 %v2854_v32  ;;  %v2424_v0 = vmax.f32 %v2168_v31, 0.0  ;;  %v1964_v19 = vadd.f32 %v1708_v20, %v1244_v1  ;;  %v900_v18 = vmul.f32 %v9034_v14, %v8902_v13  ;;  %v1619_v51 = vmul.f32 %v9038_v12, %v8843_v41  ;;  %9069 = vst [vmem:[#allocation105_spill] sm:$0xff] %v6654_v24  ;;  %v9081_v14 = vld [vmem:[#allocation13_spill] sm:$0xff] }
 0x1ba   :  { %v1620_v28 = vmul.f32 %v9038_v12, %v8844_v56  ;;  %v2315_v17 = vadd.f32 %v9068_v11, %v1963_v44  ;;  %v1155_v32 = vadd.f32 %v899_v62, %v435_v15  ;;  %v345_v20 = vmul.f32 %v9040_v47, %v4721_v46 }
 0x1bb   :  { %v2722_v3 = vadd.f32 %v2424_v0, %v2423_v36  ;;  %v2316_v61 = vadd.f32 %v9068_v11, %v1964_v19  ;;  %v1156_v31 = vadd.f32 %v900_v18, %v436_v4  ;;  %v346_v25 = vmul.f32 %v9040_v47, %v8903_v23  ;;  %v6669_v24 = vpop.xlane.xlu0 %2786 }
 0x1bc   :  { %v809_v1 = vmul.f32 %v9043_v55, %v8940_v16  ;;  %v2571_v36 = vmax.f32 %v2315_v17, 0.0  ;;  %v1875_v7 = vadd.f32 %v1619_v51, %v1155_v32  ;;  %v810_v44 = vmul.f32 %v9043_v55, %v8941_v63  ;;  %9070 = vst [vmem:[#allocation94_spill] sm:$0xff] %v6669_v24 }
 0x1bd   :  { %2723 = vadd.xlane.f32.xlu0 %v2722_v3  ;;  %v2572_v0 = vmax.f32 %v2316_v61, 0.0  ;;  %v1876_v15 = vadd.f32 %v1620_v28, %v1156_v31  ;;  %v1529_v4 = vmul.f32 %v9048_v49, %v8942_v2  ;;  %v1530_v62 = vmul.f32 %v9048_v49, %v8943_v43 }
 0x1be   :  { %v1065_v19 = vadd.f32 %v809_v1, %v345_v20  ;;  %v2227_v18 = vadd.f32 %v9046_v52, %v1875_v7  ;;  %v1066_v11 = vadd.f32 %v810_v44, %v346_v25  ;;  %v495_v61 = vmul.f32 %v9050_v26, %v8944_v21  ;;  %v6678_v1 = vpop.xlane.xlu1 %2744  ;;  %v9073_v44 = vld [vmem:[#allocation43_spill] sm:$0xff] }
 0x1bf   :  { %v2944_v3 = vadd.f32 %v2572_v0, %v2571_v36  ;;  %v2228_v17 = vadd.f32 %v9046_v52, %v1876_v15  ;;  %v496_v28 = vmul.f32 %v9050_v26, %v8978_v27  ;;  %v959_v20 = vmul.f32 %v9053_v10, %v9025_v37  ;;  %9071 = vst [vmem:[#allocation95_spill] sm:$0xff] %v6678_v1  ;;  %v9072_v36 = vld [vmem:[#allocation42_spill] sm:$0xff] }
 0x1c0   :  { %v1785_v51 = vadd.f32 %v1529_v4, %v1065_v19  ;;  %v2483_v32 = vmax.f32 %v2227_v18, 0.0  ;;  %v1786_v31 = vadd.f32 %v1530_v62, %v1066_v11  ;;  %v960_v0 = vmul.f32 %v9053_v10, %v9072_v36  ;;  %v6688_v18 = vpop.xlane.xlu0 %2609  ;;  %v9078_v10 = vld [vmem:[#allocation28_spill] sm:$0xff] }
 0x1c1   :  { %2945 = vadd.xlane.f32.xlu1 %v2944_v3  ;;  %v2484_v7 = vmax.f32 %v2228_v17, 0.0  ;;  %v1679_v15 = vmul.f32 %v9056_v57, %v9073_v44  ;;  %v1215_v4 = vadd.f32 %v959_v20, %v495_v61  ;;  %v9074_v3 = vld [vmem:[#allocation44_spill] sm:$0xff]  ;;  %9075 = vst [vmem:[#allocation155_spill] sm:$0xff] %v6688_v18  ;;  %v406_v52 = vmul.f32 %v9077_v50, %v9078_v10  ;;  %v9080_v61 = vld [vmem:[#allocation86_spill] sm:$0xff] }
 0x1c2   :  { %v2137_v25 = vadd.f32 %v9057_v30, %v1785_v51  ;;  %v2138_v19 = vadd.f32 %v9057_v30, %v1786_v31  ;;  %v1680_v62 = vmul.f32 %v9056_v57, %v9074_v3  ;;  %v1216_v1 = vadd.f32 %v960_v0, %v496_v28  ;;  %v9076_v51 = vld [vmem:[#allocation27_spill] sm:$0xff]  ;;  %v9079_v31 = vld [vmem:[#allocation12_spill] sm:$0xff]  ;;  %v9084_v0 = vld [vmem:[#allocation21_spill] sm:$0xff] }
 0x1c3   :  { %v2812_v11 = vadd.f32 %v2484_v7, %v2483_v32  ;;  %v1935_v22 = vadd.f32 %v1679_v15, %v1215_v4  ;;  %v405_v26 = vmul.f32 %v9077_v50, %v9076_v51  ;;  %v869_v20 = vmul.f32 %v9080_v61, %v9079_v31  ;;  %v9082_v18 = vld [vmem:[#allocation20_spill] sm:$0xff]  ;;  %v9083_v32 = vld [vmem:[#allocation89_spill] sm:$0xff]  ;;  %v9088_v31 = vld [vmem:[#allocation23_spill] sm:$0xff] }
 0x1c4   :  { %v2393_v24 = vmax.f32 %v2137_v25, 0.0  ;;  %v2394_v17 = vmax.f32 %v2138_v19, 0.0  ;;  %v1936_v12 = vadd.f32 %v1680_v62, %v1216_v1  ;;  %v870_v57 = vmul.f32 %v9080_v61, %v9081_v14  ;;  %v6703_v19 = vpop.xlane.xlu1 %2789  ;;  %v6712_v10 = vpop.xlane.xlu0 %2702  ;;  %v9092_v3 = vld [vmem:[#allocation7_spill] sm:$0xff] }
 0x1c5   :  { %2813 = vadd.xlane.f32.xlu0 %v2812_v11  ;;  %v1589_v7 = vmul.f32 %v9083_v32, %v9082_v18  ;;  %v2287_v25 = vadd.f32 %v9061_v35, %v1935_v22  ;;  %v1590_v15 = vmul.f32 %v9083_v32, %v9084_v0  ;;  %9085 = vst [vmem:[#allocation156_spill] sm:$0xff] %v6703_v19  ;;  %9091 = vst [vmem:[#allocation152_spill] sm:$0xff] %v6712_v10 }
 0x1c6   :  { %v2677_v28 = vadd.f32 %v2394_v17, %v2393_v24  ;;  %v2288_v4 = vadd.f32 %v9061_v35, %v1936_v12  ;;  %v1125_v1 = vadd.f32 %v869_v20, %v405_v26  ;;  %v1126_v62 = vadd.f32 %v870_v57, %v406_v52  ;;  %v9089_v24 = vld [vmem:[#allocation6_spill] sm:$0xff]  ;;  %v9094_v57 = vld [vmem:[#allocation73_spill] sm:$0xff] }
 0x1c7   :  { %v2543_v11 = vmax.f32 %v2287_v25, 0.0  ;;  %v315_v14 = vmul.f32 %v9087_v45, %v9086_v33  ;;  %v316_v18 = vmul.f32 %v9087_v45, %v9088_v31  ;;  %v9090_v17 = vld [vmem:[#allocation110_spill] sm:$0xff]  ;;  %v9096_v31 = vld [vmem:[#allocation121_spill] sm:$0xff] }
 0x1c8   :  { %2678 = vadd.xlane.f32.xlu1 %v2677_v28  ;;  %v779_v22 = vmul.f32 %v9090_v17, %v9089_v24  ;;  %v2544_v0 = vmax.f32 %v2288_v4, 0.0  ;;  %v1845_v51 = vadd.f32 %v1589_v7, %v1125_v1  ;;  %v1846_v19 = vadd.f32 %v1590_v15, %v1126_v62  ;;  %v9093_v26 = vld [vmem:[#allocation14_spill] sm:$0xff]  ;;  %v9095_v28 = vld [vmem:[#allocation15_spill] sm:$0xff]  ;;  %v9097_v4 = vld [vmem:[#allocation37_spill] sm:$0xff]  ;;  %v6737_v36 = vpop.xlane.xlu0 %2792 }
 0x1c9   :  { %v780_v12 = vmul.f32 %v9090_v17, %v9092_v3  ;;  %v1499_v20 = vmul.f32 %v9094_v57, %v9093_v26  ;;  %v1500_v25 = vmul.f32 %v9094_v57, %v9095_v28  ;;  %v9098_v7 = vld [vmem:[#allocation66_spill] sm:$0xff]  ;;  %v9101_v3 = vld [vmem:[#allocation35_spill] sm:$0xff]  ;;  %9107 = vst [vmem:[#allocation160_spill] sm:$0xff] %v6737_v36 }
 0x1ca   :  { %v1035_v52 = vadd.f32 %v779_v22, %v315_v14  ;;  %v2902_v35 = vadd.f32 %v2544_v0, %v2543_v11  ;;  %v2197_v33 = vadd.f32 %v9096_v31, %v1845_v51  ;;  %v2198_v24 = vadd.f32 %v9096_v31, %v1846_v19  ;;  %v9099_v1 = vld [vmem:[#allocation38_spill] sm:$0xff]  ;;  %v6726_v14 = vpop.xlane.xlu1 %2657  ;;  %v9102_v28 = vld [vmem:[#allocation67_spill] sm:$0xff]  ;;  %v9103_v11 = vld [vmem:[#allocation36_spill] sm:$0xff] }
 0x1cb   :  { %v1036_v44 = vadd.f32 %v780_v12, %v316_v18  ;;  %v465_v15 = vmul.f32 %v9098_v7, %v9097_v4  ;;  %v466_v62 = vmul.f32 %v9098_v7, %v9099_v1  ;;  %9100 = vst [vmem:[#allocation153_spill] sm:$0xff] %v6726_v14  ;;  %v929_v0 = vmul.f32 %v9102_v28, %v9101_v3  ;;  %v9104_v18 = vld [vmem:[#allocation147_spill] sm:$0xff] }
 0x1cc   :  { %v1755_v10 = vadd.f32 %v1499_v20, %v1035_v52  ;;  %2903 = vadd.xlane.f32.xlu0 %v2902_v35  ;;  %v2453_v22 = vmax.f32 %v2197_v33, 0.0  ;;  %v2454_v26 = vmax.f32 %v2198_v24, 0.0  ;;  %v930_v51 = vmul.f32 %v9102_v28, %v9103_v11  ;;  %v9105_v52 = vld [vmem:[#allocation39_spill] sm:$0xff]  ;;  %v9106_v20 = vld [vmem:[#allocation100_spill] sm:$0xff] }
 0x1cd   :  { %v1756_v19 = vadd.f32 %v1500_v25, %v1036_v44  ;;  %v1649_v4 = vmul.f32 %v9106_v20, %v9105_v52  ;;  %v1650_v1 = vmul.f32 %v9106_v20, %v9058_v48  ;;  %v1185_v33 = vadd.f32 %v929_v0, %v465_v15 }
 0x1ce   :  { %v2107_v12 = vadd.f32 %v9104_v18, %v1755_v10  ;;  %v2767_v35 = vadd.f32 %v2454_v26, %v2453_v22  ;;  %v1186_v24 = vadd.f32 %v930_v51, %v466_v62  ;;  %v377_v11 = vmul.f32 %v9040_v47, %v8972_v42  ;;  %v6752_v22 = vpop.xlane.xlu1 %2747 }
 0x1cf   :  { %v2108_v14 = vadd.f32 %v9104_v18, %v1756_v19  ;;  %v1905_v44 = vadd.f32 %v1649_v4, %v1185_v33  ;;  %v378_v25 = vmul.f32 %v9040_v47, %v8865_v60  ;;  %v841_v48 = vmul.f32 %v9043_v55, %v8866_v38  ;;  %9108 = vst [vmem:[#allocation161_spill] sm:$0xff] %v6752_v22  ;;  %v9109_v4 = vld [vmem:[#allocation63_spill] sm:$0xff] }
 0x1d0   :  { %v2363_v3 = vmax.f32 %v2107_v12, 0.0  ;;  %2768 = vadd.xlane.f32.xlu1 %v2767_v35  ;;  %v1906_v10 = vadd.f32 %v1650_v1, %v1186_v24  ;;  %v842_v26 = vmul.f32 %v9043_v55, %v9013_v59  ;;  %v1561_v15 = vmul.f32 %v9048_v49, %v9015_v40  ;;  %v6760_v24 = vpop.xlane.xlu0 %2837  ;;  %v9112_v22 = vld [vmem:[#allocation55_spill] sm:$0xff] }
 0x1d1   :  { %v2364_v52 = vmax.f32 %v2108_v14, 0.0  ;;  %v1562_v62 = vmul.f32 %v9048_v49, %v8871_v54  ;;  %v2257_v1 = vadd.f32 %v9109_v4, %v1905_v44  ;;  %v1097_v51 = vadd.f32 %v841_v48, %v377_v11  ;;  %v9110_v14 = vld [vmem:[#allocation60_spill] sm:$0xff]  ;;  %9111 = vst [vmem:[#allocation162_spill] sm:$0xff] %v6760_v24  ;;  %v9123_v24 = vld [vmem:[#allocation27_spill] sm:$0xff] }
 0x1d2   :  { %v2258_v0 = vadd.f32 %v9109_v4, %v1906_v10  ;;  %v1098_v12 = vadd.f32 %v842_v26, %v378_v25  ;;  %v525_v35 = vmul.f32 %v9110_v14, %v8872_v8  ;;  %v526_v33 = vmul.f32 %v9110_v14, %v8873_v29 }
 0x1d3   :  { %v2632_v19 = vadd.f32 %v2364_v52, %v2363_v3  ;;  %v2513_v36 = vmax.f32 %v2257_v1, 0.0  ;;  %v1817_v49 = vadd.f32 %v1561_v15, %v1097_v51  ;;  %v989_v47 = vmul.f32 %v9112_v22, %v8895_v9  ;;  %v9113_v3 = vld [vmem:[#allocation69_spill] sm:$0xff] }
 0x1d4   :  { %v2514_v55 = vmax.f32 %v2258_v0, 0.0  ;;  %v1818_v44 = vadd.f32 %v1562_v62, %v1098_v12  ;;  %v990_v48 = vmul.f32 %v9112_v22, %v8897_v6  ;;  %v1709_v11 = vmul.f32 %v9113_v3, %v8874_v58  ;;  %v6774_v62 = vpop.xlane.xlu1 %2834  ;;  %v6784_v14 = vpop.xlane.xlu0 %2660 }
 0x1d5   :  { %2633 = vadd.xlane.f32.xlu0 %v2632_v19  ;;  %v1710_v52 = vmul.f32 %v9113_v3, %v8876_v53  ;;  %v2169_v25 = vadd.f32 %v9057_v30, %v1817_v49  ;;  %v1245_v26 = vadd.f32 %v989_v47, %v525_v35  ;;  %v437_v0 = vmul.f32 %v9077_v50, %v8834_v34  ;;  %v9116_v35 = vld [vmem:[#allocation165_spill] sm:$0xff] }
 0x1d6   :  { %v2857_v10 = vadd.f32 %v2514_v55, %v2513_v36  ;;  %v2170_v15 = vadd.f32 %v9057_v30, %v1818_v44  ;;  %v1246_v1 = vadd.f32 %v990_v48, %v526_v33  ;;  %9114 = vst [vmem:[#allocation163_spill] sm:$0xff] %v6774_v62  ;;  %v438_v19 = vmul.f32 %v9077_v50, %v8838_v39  ;;  %v9134_v50 = vld [vmem:[#allocation22_spill] sm:$0xff] }
 0x1d7   :  { %v2425_v22 = vmax.f32 %v2169_v25, 0.0  ;;  %v1965_v51 = vadd.f32 %v1709_v11, %v1245_v26  ;;  %v901_v55 = vmul.f32 %v9080_v61, %v8900_v5  ;;  %v902_v47 = vmul.f32 %v9080_v61, %v8902_v13  ;;  %9115 = vst [vmem:[#allocation74_spill] sm:$0xff] %v6784_v14  ;;  %v9135_v30 = vld [vmem:[#allocation62_spill] sm:$0xff] }
 0x1d8   :  { %2858 = vadd.xlane.f32.xlu1 %v2857_v10  ;;  %v2426_v36 = vmax.f32 %v2170_v15, 0.0  ;;  %v1966_v49 = vadd.f32 %v1710_v52, %v1246_v1  ;;  %v1621_v12 = vmul.f32 %v9083_v32, %v8843_v41  ;;  %v1622_v48 = vmul.f32 %v9083_v32, %v8844_v56 }
 0x1d9   :  { %v2317_v33 = vadd.f32 %v9116_v35, %v1965_v51  ;;  %v1157_v44 = vadd.f32 %v901_v55, %v437_v0  ;;  %v347_v3 = vmul.f32 %v9087_v45, %v4721_v46  ;;  %v1158_v10 = vadd.f32 %v902_v47, %v438_v19 }
 0x1da   :  { %v2725_v11 = vadd.f32 %v2426_v36, %v2425_v22  ;;  %v2318_v52 = vadd.f32 %v9116_v35, %v1966_v49  ;;  %v348_v25 = vmul.f32 %v9087_v45, %v8903_v23  ;;  %v811_v1 = vmul.f32 %v9090_v17, %v8940_v16  ;;  %v6802_v36 = vpop.xlane.xlu1 %2612 }
 0x1db   :  { %v2573_v26 = vmax.f32 %v2317_v33, 0.0  ;;  %v1877_v15 = vadd.f32 %v1621_v12, %v1157_v44  ;;  %v812_v0 = vmul.f32 %v9090_v17, %v8941_v63  ;;  %v1878_v55 = vadd.f32 %v1622_v48, %v1158_v10  ;;  %9117 = vst [vmem:[#allocation106_spill] sm:$0xff] %v6802_v36  ;;  %v6806_v44 = vpop.xlane.xlu0 %2750 }
 0x1dc   :  { %2726 = vadd.xlane.f32.xlu0 %v2725_v11  ;;  %v2574_v51 = vmax.f32 %v2318_v52, 0.0  ;;  %v1531_v22 = vmul.f32 %v9094_v57, %v8942_v2  ;;  %v1532_v19 = vmul.f32 %v9094_v57, %v8943_v43  ;;  %v1067_v47 = vadd.f32 %v811_v1, %v347_v3  ;;  %9118 = vst [vmem:[#allocation75_spill] sm:$0xff] %v6806_v44 }
 0x1dd   :  { %v2229_v49 = vadd.f32 %v9096_v31, %v1877_v15  ;;  %v1068_v12 = vadd.f32 %v812_v0, %v348_v25  ;;  %v2230_v33 = vadd.f32 %v9096_v31, %v1878_v55  ;;  %v497_v10 = vmul.f32 %v9098_v7, %v8944_v21  ;;  %v9119_v25 = vld [vmem:[#allocation42_spill] sm:$0xff]  ;;  %v9120_v0 = vld [vmem:[#allocation43_spill] sm:$0xff]  ;;  %v9121_v55 = vld [vmem:[#allocation44_spill] sm:$0xff] }
 0x1de   :  { %v2947_v35 = vadd.f32 %v2574_v51, %v2573_v26  ;;  %v1787_v52 = vadd.f32 %v1531_v22, %v1067_v47  ;;  %v498_v36 = vmul.f32 %v9098_v7, %v8978_v27  ;;  %v961_v3 = vmul.f32 %v9102_v28, %v9025_v37 }
 0x1df   :  { %v2485_v11 = vmax.f32 %v2229_v49, 0.0  ;;  %v1788_v48 = vadd.f32 %v1532_v19, %v1068_v12  ;;  %v2486_v14 = vmax.f32 %v2230_v33, 0.0  ;;  %v962_v26 = vmul.f32 %v9102_v28, %v9119_v25  ;;  %v6822_v12 = vpop.xlane.xlu1 %2705  ;;  %v6828_v31 = vpop.xlane.xlu0 %2840  ;;  %v9155_v25 = vld [vmem:[#allocation90_spill] sm:$0xff] }
 0x1e0   :  { %2948 = vadd.xlane.f32.xlu1 %v2947_v35  ;;  %v2139_v15 = vadd.f32 %v9104_v18, %v1787_v52  ;;  %v1681_v51 = vmul.f32 %v9106_v20, %v9120_v0  ;;  %v1682_v22 = vmul.f32 %v9106_v20, %v9121_v55  ;;  %v1217_v49 = vadd.f32 %v961_v3, %v497_v10  ;;  %v9124_v52 = vld [vmem:[#allocation101_spill] sm:$0xff]  ;;  %v9127_v20 = vld [vmem:[#allocation12_spill] sm:$0xff] }
 0x1e1   :  { %v2140_v1 = vadd.f32 %v9104_v18, %v1788_v48  ;;  %v2815_v19 = vadd.f32 %v2486_v14, %v2485_v11  ;;  %v1218_v47 = vadd.f32 %v962_v26, %v498_v36  ;;  %9122 = vst [vmem:[#allocation107_spill] sm:$0xff] %v6822_v12  ;;  %v407_v28 = vmul.f32 %v9124_v52, %v9123_v24  ;;  %v9125_v48 = vld [vmem:[#allocation28_spill] sm:$0xff]  ;;  %v9128_v14 = vld [vmem:[#allocation97_spill] sm:$0xff]  ;;  %v9149_v24 = vld [vmem:[#allocation79_spill] sm:$0xff] }
 0x1e2   :  { %v2395_v35 = vmax.f32 %v2139_v15, 0.0  ;;  %v1937_v44 = vadd.f32 %v1681_v51, %v1217_v49  ;;  %v408_v7 = vmul.f32 %v9124_v52, %v9125_v48  ;;  %9126 = vst [vmem:[#allocation98_spill] sm:$0xff] %v6828_v31  ;;  %v871_v11 = vmul.f32 %v9128_v14, %v9127_v20  ;;  %v9129_v36 = vld [vmem:[#allocation13_spill] sm:$0xff]  ;;  %v9130_v15 = vld [vmem:[#allocation20_spill] sm:$0xff] }
 0x1e3   :  { %v2396_v33 = vmax.f32 %v2140_v1, 0.0  ;;  %2816 = vadd.xlane.f32.xlu0 %v2815_v19  ;;  %v1938_v62 = vadd.f32 %v1682_v22, %v1218_v47  ;;  %v872_v10 = vmul.f32 %v9128_v14, %v9129_v36  ;;  %v9131_v1 = vld [vmem:[#allocation164_spill] sm:$0xff]  ;;  %v9132_v22 = vld [vmem:[#allocation21_spill] sm:$0xff]  ;;  %v6840_v12 = vpop.xlane.xlu1 %2795 }
 0x1e4   :  { %v2289_v3 = vadd.f32 %v9109_v4, %v1937_v44  ;;  %v1591_v51 = vmul.f32 %v9131_v1, %v9130_v15  ;;  %v1592_v19 = vmul.f32 %v9131_v1, %v9132_v22  ;;  %v1127_v49 = vadd.f32 %v871_v11, %v407_v28  ;;  %9133 = vst [vmem:[#allocation99_spill] sm:$0xff] %v6840_v12  ;;  %v9137_v15 = vld [vmem:[#allocation6_spill] sm:$0xff]  ;;  %v9138_v20 = vld [vmem:[#allocation72_spill] sm:$0xff]  ;;  %v9139_v22 = vld [vmem:[#allocation7_spill] sm:$0xff]  ;;  %v6850_v28 = vpop.xlane.xlu0 %2885 }
 0x1e5   :  { %v2680_v32 = vadd.f32 %v2396_v33, %v2395_v35  ;;  %v2290_v26 = vadd.f32 %v9109_v4, %v1938_v62  ;;  %v1128_v47 = vadd.f32 %v872_v10, %v408_v7  ;;  %v317_v44 = vmul.f32 %v9135_v30, %v9134_v50  ;;  %v9136_v62 = vld [vmem:[#allocation23_spill] sm:$0xff]  ;;  %9140 = vst [vmem:[#allocation80_spill] sm:$0xff] %v6850_v28  ;;  %v9141_v7 = vld [vmem:[#allocation137_spill] sm:$0xff]  ;;  %v9147_v50 = vld [vmem:[#allocation38_spill] sm:$0xff] }
 0x1e6   :  { %v2545_v35 = vmax.f32 %v2289_v3, 0.0  ;;  %v1847_v31 = vadd.f32 %v1591_v51, %v1127_v49  ;;  %v318_v4 = vmul.f32 %v9135_v30, %v9136_v62  ;;  %v781_v48 = vmul.f32 %v9138_v20, %v9137_v15  ;;  %v9142_v3 = vld [vmem:[#allocation14_spill] sm:$0xff]  ;;  %v9146_v12 = vld [vmem:[#allocation71_spill] sm:$0xff] }
 0x1e7   :  { %2681 = vadd.xlane.f32.xlu1 %v2680_v32  ;;  %v2546_v33 = vmax.f32 %v2290_v26, 0.0  ;;  %v1848_v61 = vadd.f32 %v1592_v19, %v1128_v47  ;;  %v782_v32 = vmul.f32 %v9138_v20, %v9139_v22  ;;  %v9143_v26 = vld [vmem:[#allocation154_spill] sm:$0xff]  ;;  %v9144_v47 = vld [vmem:[#allocation15_spill] sm:$0xff]  ;;  %v468_v28 = vmul.f32 %v9146_v12, %v9147_v50 }
 0x1e8   :  { %v2199_v11 = vadd.f32 %v9141_v7, %v1847_v31  ;;  %v1501_v51 = vmul.f32 %v9143_v26, %v9142_v3  ;;  %v1037_v19 = vadd.f32 %v781_v48, %v317_v44  ;;  %v9148_v31 = vld [vmem:[#allocation35_spill] sm:$0xff]  ;;  %v9150_v3 = vld [vmem:[#allocation36_spill] sm:$0xff] }
 0x1e9   :  { %v2905_v36 = vadd.f32 %v2546_v33, %v2545_v35  ;;  %v2200_v10 = vadd.f32 %v9141_v7, %v1848_v61  ;;  %v1038_v49 = vadd.f32 %v782_v32, %v318_v4  ;;  %v1502_v35 = vmul.f32 %v9143_v26, %v9144_v47  ;;  %v9145_v33 = vld [vmem:[#allocation37_spill] sm:$0xff]  ;;  %v6866_v4 = vpop.xlane.xlu1 %2882  ;;  %v9152_v32 = vld [vmem:[#allocation39_spill] sm:$0xff]  ;;  %v9153_v47 = vld [vmem:[#allocation102_spill] sm:$0xff] }
 0x1ea   :  { %v467_v15 = vmul.f32 %v9146_v12, %v9145_v33  ;;  %v2455_v62 = vmax.f32 %v2199_v11, 0.0  ;;  %v931_v61 = vmul.f32 %v9149_v24, %v9148_v31  ;;  %v1757_v55 = vadd.f32 %v1501_v51, %v1037_v19  ;;  %9151 = vst [vmem:[#allocation81_spill] sm:$0xff] %v6866_v4  ;;  %v9154_v11 = vld [vmem:[#allocation40_spill] sm:$0xff]  ;;  %v6874_v51 = vpop.xlane.xlu0 %2663 }
 0x1eb   :  { %2906 = vadd.xlane.f32.xlu0 %v2905_v36  ;;  %v2456_v22 = vmax.f32 %v2200_v10, 0.0  ;;  %v1758_v0 = vadd.f32 %v1502_v35, %v1038_v49  ;;  %v932_v48 = vmul.f32 %v9149_v24, %v9150_v3  ;;  %v1651_v33 = vmul.f32 %v9153_v47, %v9152_v32  ;;  %9156 = vst [vmem:[#allocation157_spill] sm:$0xff] %v6874_v51 }
 0x1ec   :  { %v1187_v44 = vadd.f32 %v931_v61, %v467_v15  ;;  %v1652_v10 = vmul.f32 %v9153_v47, %v9154_v11  ;;  %v2109_v50 = vadd.f32 %v9155_v25, %v1757_v55  ;;  %v379_v49 = vmul.f32 %v9087_v45, %v8972_v42  ;;  %v9157_v55 = vld [vmem:[#allocation120_spill] sm:$0xff] }
 0x1ed   :  { %v2770_v36 = vadd.f32 %v2456_v22, %v2455_v62  ;;  %v2110_v37 = vadd.f32 %v9155_v25, %v1758_v0  ;;  %v1188_v31 = vadd.f32 %v932_v48, %v468_v28  ;;  %v380_v15 = vmul.f32 %v9087_v45, %v8865_v60  ;;  %v6890_v51 = vpop.xlane.xlu1 %2615  ;;  %v9176_v45 = vld [vmem:[#allocation12_spill] sm:$0xff] }
 0x1ee   :  { %v1907_v19 = vadd.f32 %v1651_v33, %v1187_v44  ;;  %v843_v22 = vmul.f32 %v9090_v17, %v8866_v38  ;;  %v2365_v62 = vmax.f32 %v2109_v50, 0.0  ;;  %v844_v0 = vmul.f32 %v9090_v17, %v9013_v59  ;;  %9158 = vst [vmem:[#allocation158_spill] sm:$0xff] %v6890_v51 }
 0x1ef   :  { %2771 = vadd.xlane.f32.xlu1 %v2770_v36  ;;  %v2366_v35 = vmax.f32 %v2110_v37, 0.0  ;;  %v1908_v61 = vadd.f32 %v1652_v10, %v1188_v31  ;;  %v1563_v33 = vmul.f32 %v9094_v57, %v9015_v40  ;;  %v1564_v44 = vmul.f32 %v9094_v57, %v8871_v54  ;;  %v9159_v10 = vld [vmem:[#allocation61_spill] sm:$0xff] }
 0x1f0   :  { %v2259_v4 = vadd.f32 %v9157_v55, %v1907_v19  ;;  %v1099_v28 = vadd.f32 %v843_v22, %v379_v49  ;;  %v1100_v37 = vadd.f32 %v844_v0, %v380_v15  ;;  %v527_v19 = vmul.f32 %v9159_v10, %v8872_v8  ;;  %v9160_v22 = vld [vmem:[#allocation59_spill] sm:$0xff]  ;;  %v9162_v15 = vld [vmem:[#allocation84_spill] sm:$0xff] }
 0x1f1   :  { %v2635_v48 = vadd.f32 %v2366_v35, %v2365_v62  ;;  %v2260_v36 = vadd.f32 %v9157_v55, %v1908_v61  ;;  %v528_v49 = vmul.f32 %v9159_v10, %v8873_v29  ;;  %v991_v62 = vmul.f32 %v9160_v22, %v8895_v9  ;;  %v6898_v35 = vpop.xlane.xlu0 %2753 }
 0x1f2   :  { %v2515_v50 = vmax.f32 %v2259_v4, 0.0  ;;  %v1819_v31 = vadd.f32 %v1563_v33, %v1099_v28  ;;  %9161 = vst [vmem:[#allocation29_spill] sm:$0xff] %v6898_v35  ;;  %v1820_v61 = vadd.f32 %v1564_v44, %v1100_v37  ;;  %v992_v4 = vmul.f32 %v9160_v22, %v8897_v6 }
 0x1f3   :  { %2636 = vadd.xlane.f32.xlu0 %v2635_v48  ;;  %v2516_v17 = vmax.f32 %v2260_v36, 0.0  ;;  %v1711_v0 = vmul.f32 %v9162_v15, %v8874_v58  ;;  %v1247_v33 = vadd.f32 %v991_v62, %v527_v19  ;;  %v1712_v48 = vmul.f32 %v9162_v15, %v8876_v53 }
 0x1f4   :  { %v2171_v57 = vadd.f32 %v9104_v18, %v1819_v31  ;;  %v2172_v36 = vadd.f32 %v9104_v18, %v1820_v61  ;;  %v1248_v51 = vadd.f32 %v992_v4, %v528_v49  ;;  %v439_v44 = vmul.f32 %v9124_v52, %v8834_v34  ;;  %v9164_v49 = vld [vmem:[#allocation142_spill] sm:$0xff] }
 0x1f5   :  { %v2860_v28 = vadd.f32 %v2516_v17, %v2515_v50  ;;  %v1967_v37 = vadd.f32 %v1711_v0, %v1247_v33  ;;  %v440_v31 = vmul.f32 %v9124_v52, %v8838_v39  ;;  %v903_v22 = vmul.f32 %v9128_v14, %v8900_v5  ;;  %v6914_v17 = vpop.xlane.xlu1 %2708  ;;  %v6923_v0 = vpop.xlane.xlu0 %2843  ;;  %v9175_v52 = vld [vmem:[#allocation28_spill] sm:$0xff] }
 0x1f6   :  { %v2427_v10 = vmax.f32 %v2171_v57, 0.0  ;;  %9163 = vst [vmem:[#allocation108_spill] sm:$0xff] %v6914_v17  ;;  %v2428_v50 = vmax.f32 %v2172_v36, 0.0  ;;  %v1968_v19 = vadd.f32 %v1712_v48, %v1248_v51  ;;  %v904_v62 = vmul.f32 %v9128_v14, %v8902_v13  ;;  %9165 = vst [vmem:[#allocation109_spill] sm:$0xff] %v6923_v0  ;;  %v9168_v0 = vld [vmem:[#allocation41_spill] sm:$0xff] }
 0x1f7   :  { %2861 = vadd.xlane.f32.xlu1 %v2860_v28  ;;  %v1623_v57 = vmul.f32 %v9131_v1, %v8843_v41  ;;  %v2319_v61 = vadd.f32 %v9164_v49, %v1967_v37  ;;  %v1159_v4 = vadd.f32 %v903_v22, %v439_v44  ;;  %v1624_v15 = vmul.f32 %v9131_v1, %v8844_v56  ;;  %v9173_v1 = vld [vmem:[#allocation27_spill] sm:$0xff] }
 0x1f8   :  { %v2728_v28 = vadd.f32 %v2428_v50, %v2427_v10  ;;  %v2320_v33 = vadd.f32 %v9164_v49, %v1968_v19  ;;  %v1160_v17 = vadd.f32 %v904_v62, %v440_v31  ;;  %v349_v48 = vmul.f32 %v9135_v30, %v4721_v46 }
 0x1f9   :  { %v2575_v36 = vmax.f32 %v2319_v61, 0.0  ;;  %v1879_v51 = vadd.f32 %v1623_v57, %v1159_v4  ;;  %v813_v35 = vmul.f32 %v9138_v20, %v8940_v16  ;;  %v350_v22 = vmul.f32 %v9135_v30, %v8903_v23  ;;  %v6939_v57 = vpop.xlane.xlu1 %2798 }
 0x1fa   :  { %2729 = vadd.xlane.f32.xlu0 %v2728_v28  ;;  %v2576_v37 = vmax.f32 %v2320_v33, 0.0  ;;  %v1880_v44 = vadd.f32 %v1624_v15, %v1160_v17  ;;  %v814_v10 = vmul.f32 %v9138_v20, %v8941_v63  ;;  %v1533_v19 = vmul.f32 %v9143_v26, %v8942_v2  ;;  %9166 = vst [vmem:[#allocation30_spill] sm:$0xff] %v6939_v57  ;;  %v6946_v33 = vpop.xlane.xlu0 %2930 }
 0x1fb   :  { %v2231_v50 = vadd.f32 %v9141_v7, %v1879_v51  ;;  %v1069_v31 = vadd.f32 %v813_v35, %v349_v48  ;;  %v1534_v62 = vmul.f32 %v9143_v26, %v8943_v43  ;;  %v499_v4 = vmul.f32 %v9146_v12, %v8944_v21  ;;  %9167 = vst [vmem:[#allocation111_spill] sm:$0xff] %v6946_v33 }
 0x1fc   :  { %v2950_v49 = vadd.f32 %v2576_v37, %v2575_v36  ;;  %v2232_v17 = vadd.f32 %v9141_v7, %v1880_v44  ;;  %v1070_v61 = vadd.f32 %v814_v10, %v350_v22  ;;  %v500_v35 = vmul.f32 %v9146_v12, %v8978_v27  ;;  %v9169_v36 = vld [vmem:[#allocation42_spill] sm:$0xff]  ;;  %v9170_v22 = vld [vmem:[#allocation43_spill] sm:$0xff] }
 0x1fd   :  { %v2487_v15 = vmax.f32 %v2231_v50, 0.0  ;;  %v1789_v28 = vadd.f32 %v1533_v19, %v1069_v31  ;;  %v963_v57 = vmul.f32 %v9149_v24, %v9168_v0  ;;  %v964_v37 = vmul.f32 %v9149_v24, %v9169_v36  ;;  %v9171_v50 = vld [vmem:[#allocation44_spill] sm:$0xff]  ;;  %v9199_v27 = vld [vmem:[#allocation38_spill] sm:$0xff] }
 0x1fe   :  { %2951 = vadd.xlane.f32.xlu1 %v2950_v49  ;;  %v2488_v51 = vmax.f32 %v2232_v17, 0.0  ;;  %v1790_v48 = vadd.f32 %v1534_v62, %v1070_v61  ;;  %v1683_v10 = vmul.f32 %v9153_v47, %v9170_v22  ;;  %v1684_v31 = vmul.f32 %v9153_v47, %v9171_v50  ;;  %v6958_v61 = vpop.xlane.xlu1 %2888  ;;  %v9177_v47 = vld [vmem:[#allocation88_spill] sm:$0xff]  ;;  %v9185_v50 = vld [vmem:[#allocation23_spill] sm:$0xff] }
 0x1ff   :  { %v2141_v44 = vadd.f32 %v9155_v25, %v1789_v28  ;;  %v1219_v49 = vadd.f32 %v963_v57, %v499_v4  ;;  %v1220_v17 = vadd.f32 %v964_v37, %v500_v35  ;;  %9172 = vst [vmem:[#allocation127_spill] sm:$0xff] %v6958_v61  ;;  %v9174_v28 = vld [vmem:[#allocation87_spill] sm:$0xff]  ;;  %v9179_v4 = vld [vmem:[#allocation20_spill] sm:$0xff]  ;;  %v6970_v37 = vpop.xlane.xlu0 %2618 }
 0x200   :  { %v2818_v19 = vadd.f32 %v2488_v51, %v2487_v15  ;;  %v2142_v33 = vadd.f32 %v9155_v25, %v1790_v48  ;;  %v409_v14 = vmul.f32 %v9174_v28, %v9173_v1  ;;  %v410_v18 = vmul.f32 %v9174_v28, %v9175_v52  ;;  %v9178_v51 = vld [vmem:[#allocation13_spill] sm:$0xff]  ;;  %v9180_v35 = vld [vmem:[#allocation143_spill] sm:$0xff]  ;;  %9181 = vst [vmem:[#allocation128_spill] sm:$0xff] %v6970_v37  ;;  %v9183_v52 = vld [vmem:[#allocation22_spill] sm:$0xff] }
 0x201   :  { %v2397_v62 = vmax.f32 %v2141_v44, 0.0  ;;  %v1939_v7 = vadd.f32 %v1683_v10, %v1219_v49  ;;  %v1940_v24 = vadd.f32 %v1684_v31, %v1220_v17  ;;  %v873_v15 = vmul.f32 %v9177_v47, %v9176_v45  ;;  %v9182_v31 = vld [vmem:[#allocation21_spill] sm:$0xff] }
 0x202   :  { %2819 = vadd.xlane.f32.xlu0 %v2818_v19  ;;  %v2398_v12 = vmax.f32 %v2142_v33, 0.0  ;;  %v874_v57 = vmul.f32 %v9177_v47, %v9178_v51  ;;  %v1593_v48 = vmul.f32 %v9180_v35, %v9179_v4  ;;  %v1594_v19 = vmul.f32 %v9180_v35, %v9182_v31  ;;  %v9184_v51 = vld [vmem:[#allocation144_spill] sm:$0xff]  ;;  %v9189_v31 = vld [vmem:[#allocation7_spill] sm:$0xff] }
 0x203   :  { %v2291_v44 = vadd.f32 %v9157_v55, %v1939_v7  ;;  %v2292_v10 = vadd.f32 %v9157_v55, %v1940_v24  ;;  %v1129_v49 = vadd.f32 %v873_v15, %v409_v14  ;;  %v319_v1 = vmul.f32 %v9184_v51, %v9183_v52  ;;  %v9187_v7 = vld [vmem:[#allocation122_spill] sm:$0xff]  ;;  %v6982_v24 = vpop.xlane.xlu1 %2933 }
 0x204   :  { %v2683_v33 = vadd.f32 %v2398_v12, %v2397_v62  ;;  %v1130_v17 = vadd.f32 %v874_v57, %v410_v18  ;;  %v320_v4 = vmul.f32 %v9184_v51, %v9185_v50  ;;  %v9186_v62 = vld [vmem:[#allocation6_spill] sm:$0xff]  ;;  %9188 = vst [vmem:[#allocation112_spill] sm:$0xff] %v6982_v24  ;;  %v784_v18 = vmul.f32 %v9187_v7, %v9189_v31 }
 0x205   :  { %v2547_v61 = vmax.f32 %v2291_v44, 0.0  ;;  %v2548_v45 = vmax.f32 %v2292_v10, 0.0  ;;  %v1849_v37 = vadd.f32 %v1593_v48, %v1129_v49  ;;  %v783_v22 = vmul.f32 %v9187_v7, %v9186_v62  ;;  %v9190_v14 = vld [vmem:[#allocation14_spill] sm:$0xff]  ;;  %v9193_v44 = vld [vmem:[#allocation91_spill] sm:$0xff] }
 0x206   :  { %2684 = vadd.xlane.f32.xlu1 %v2683_v33  ;;  %v1850_v12 = vadd.f32 %v1594_v19, %v1130_v17  ;;  %v9191_v15 = vld [vmem:[#allocation138_spill] sm:$0xff]  ;;  %v9192_v33 = vld [vmem:[#allocation15_spill] sm:$0xff]  ;;  %v6992_v19 = vpop.xlane.xlu0 %2711  ;;  %v1040_v49 = vadd.f32 %v784_v18, %v320_v4  ;;  %v9195_v17 = vld [vmem:[#allocation37_spill] sm:$0xff] }
 0x207   :  { %v2908_v55 = vadd.f32 %v2548_v45, %v2547_v61  ;;  %v1503_v57 = vmul.f32 %v9191_v15, %v9190_v14  ;;  %v1504_v52 = vmul.f32 %v9191_v15, %v9192_v33  ;;  %v2201_v10 = vadd.f32 %v9193_v44, %v1849_v37  ;;  %9194 = vst [vmem:[#allocation136_spill] sm:$0xff] %v6992_v19  ;;  %v9196_v45 = vld [vmem:[#allocation68_spill] sm:$0xff]  ;;  %v9197_v62 = vld [vmem:[#allocation35_spill] sm:$0xff]  ;;  %v9198_v31 = vld [vmem:[#allocation86_spill] sm:$0xff] }
 0x208   :  { %v2202_v50 = vadd.f32 %v9193_v44, %v1850_v12  ;;  %v1039_v48 = vadd.f32 %v783_v22, %v319_v1  ;;  %v469_v61 = vmul.f32 %v9196_v45, %v9195_v17  ;;  %v933_v24 = vmul.f32 %v9198_v31, %v9197_v62  ;;  %v9201_v18 = vld [vmem:[#allocation146_spill] sm:$0xff] }
 0x209   :  { %2909 = vadd.xlane.f32.xlu0 %v2908_v55  ;;  %v2457_v36 = vmax.f32 %v2201_v10, 0.0  ;;  %v470_v33 = vmul.f32 %v9196_v45, %v9199_v27  ;;  %v1760_v37 = vadd.f32 %v1504_v52, %v1040_v49  ;;  %v934_v1 = vmul.f32 %v9198_v31, %v9150_v3  ;;  %v9200_v55 = vld [vmem:[#allocation89_spill] sm:$0xff]  ;;  %v7007_v10 = vpop.xlane.xlu1 %2666 }
 0x20a   :  { %v2458_v14 = vmax.f32 %v2202_v50, 0.0  ;;  %v1759_v0 = vadd.f32 %v1503_v57, %v1039_v48  ;;  %v1189_v22 = vadd.f32 %v933_v24, %v469_v61  ;;  %v1653_v4 = vmul.f32 %v9200_v55, %v9152_v32  ;;  %9202 = vst [vmem:[#allocation113_spill] sm:$0xff] %v7007_v10  ;;  %v9204_v10 = vld [vmem:[#allocation121_spill] sm:$0xff] }
 0x20b   :  { %v1654_v62 = vmul.f32 %v9200_v55, %v9154_v11  ;;  %v2112_v57 = vadd.f32 %v9201_v18, %v1760_v37  ;;  %v1190_v50 = vadd.f32 %v934_v1, %v470_v33  ;;  %v381_v24 = vmul.f32 %v9135_v30, %v8972_v42 }
 0x20c   :  { %v2773_v12 = vadd.f32 %v2458_v14, %v2457_v36  ;;  %v2111_v19 = vadd.f32 %v9201_v18, %v1759_v0  ;;  %v1909_v48 = vadd.f32 %v1653_v4, %v1189_v22  ;;  %v382_v49 = vmul.f32 %v9135_v30, %v8865_v60  ;;  %v7016_v36 = vpop.xlane.xlu0 %2801 }
 0x20d   :  { %v845_v0 = vmul.f32 %v9138_v20, %v8866_v38  ;;  %9203 = vst [vmem:[#allocation114_spill] sm:$0xff] %v7016_v36  ;;  %v2368_v61 = vmax.f32 %v2112_v57, 0.0  ;;  %v1910_v14 = vadd.f32 %v1654_v62, %v1190_v50  ;;  %v846_v33 = vmul.f32 %v9138_v20, %v9013_v59  ;;  %v9205_v62 = vld [vmem:[#allocation66_spill] sm:$0xff]  ;;  %v9207_v20 = vld [vmem:[#allocation67_spill] sm:$0xff] }
 0x20e   :  { %2774 = vadd.xlane.f32.xlu1 %v2773_v12  ;;  %v2367_v52 = vmax.f32 %v2111_v19, 0.0  ;;  %v2261_v11 = vadd.f32 %v9204_v10, %v1909_v48  ;;  %v1565_v19 = vmul.f32 %v9143_v26, %v9015_v40  ;;  %v1566_v1 = vmul.f32 %v9143_v26, %v8871_v54  ;;  %v7030_v48 = vpop.xlane.xlu1 %2756 }
 0x20f   :  { %v1101_v37 = vadd.f32 %v845_v0, %v381_v24  ;;  %v2262_v4 = vadd.f32 %v9204_v10, %v1910_v14  ;;  %v1102_v30 = vadd.f32 %v846_v33, %v382_v49  ;;  %v529_v57 = vmul.f32 %v9205_v62, %v8872_v8  ;;  %9206 = vst [vmem:[#allocation116_spill] sm:$0xff] %v7030_v48  ;;  %v9208_v49 = vld [vmem:[#allocation100_spill] sm:$0xff] }
 0x210   :  { %v2638_v22 = vadd.f32 %v2368_v61, %v2367_v52  ;;  %v2517_v12 = vmax.f32 %v2261_v11, 0.0  ;;  %v530_v50 = vmul.f32 %v9205_v62, %v8873_v29  ;;  %v993_v26 = vmul.f32 %v9207_v20, %v8895_v9  ;;  %v7041_v33 = vpop.xlane.xlu0 %2891 }
 0x211   :  { %v1821_v36 = vadd.f32 %v1565_v19, %v1101_v37  ;;  %v2518_v24 = vmax.f32 %v2262_v4, 0.0  ;;  %v1822_v0 = vadd.f32 %v1566_v1, %v1102_v30  ;;  %v994_v52 = vmul.f32 %v9207_v20, %v8897_v6  ;;  %9209 = vst [vmem:[#allocation117_spill] sm:$0xff] %v7041_v33 }
 0x212   :  { %2639 = vadd.xlane.f32.xlu0 %v2638_v22  ;;  %v1713_v61 = vmul.f32 %v9208_v49, %v8874_v58  ;;  %v1714_v14 = vmul.f32 %v9208_v49, %v8876_v53  ;;  %v1249_v30 = vadd.f32 %v993_v26, %v529_v57  ;;  %v441_v4 = vmul.f32 %v9174_v28, %v8834_v34 }
 0x213   :  { %v2173_v11 = vadd.f32 %v9155_v25, %v1821_v36  ;;  %v2863_v37 = vadd.f32 %v2518_v24, %v2517_v12  ;;  %v2174_v19 = vadd.f32 %v9155_v25, %v1822_v0  ;;  %v1250_v1 = vadd.f32 %v994_v52, %v530_v50  ;;  %v7056_v50 = vpop.xlane.xlu1 %2846  ;;  %v9211_v0 = vld [vmem:[#allocation63_spill] sm:$0xff] }
 0x214   :  { %v1969_v36 = vadd.f32 %v1713_v61, %v1249_v30  ;;  %v905_v48 = vmul.f32 %v9177_v47, %v8900_v5  ;;  %v442_v49 = vmul.f32 %v9174_v28, %v8838_v39  ;;  %v906_v12 = vmul.f32 %v9177_v47, %v8902_v13  ;;  %9210 = vst [vmem:[#allocation118_spill] sm:$0xff] %v7056_v50 }
 0x215   :  { %v2429_v22 = vmax.f32 %v2173_v11, 0.0  ;;  %2864 = vadd.xlane.f32.xlu1 %v2863_v37  ;;  %v2430_v20 = vmax.f32 %v2174_v19, 0.0  ;;  %v1970_v62 = vadd.f32 %v1714_v14, %v1250_v1  ;;  %v1625_v26 = vmul.f32 %v9180_v35, %v8843_v41  ;;  %v7066_v1 = vpop.xlane.xlu0 %2621 }
 0x216   :  { %v1626_v57 = vmul.f32 %v9180_v35, %v8844_v56  ;;  %v2321_v52 = vadd.f32 %v9211_v0, %v1969_v36  ;;  %v1161_v61 = vadd.f32 %v905_v48, %v441_v4  ;;  %v1162_v14 = vadd.f32 %v906_v12, %v442_v49  ;;  %9212 = vst [vmem:[#allocation119_spill] sm:$0xff] %v7066_v1  ;;  %v9222_v1 = vld [vmem:[#allocation141_spill] sm:$0xff] }
 0x217   :  { %v2731_v24 = vadd.f32 %v2430_v20, %v2429_v22  ;;  %v2322_v11 = vadd.f32 %v9211_v0, %v1970_v62  ;;  %v351_v37 = vmul.f32 %v9184_v51, %v4721_v46  ;;  %v352_v19 = vmul.f32 %v9184_v51, %v8903_v23  ;;  %v7078_v0 = vpop.xlane.xlu1 %2936 }
 0x218   :  { %v815_v30 = vmul.f32 %v9187_v7, %v8940_v16  ;;  %v2577_v50 = vmax.f32 %v2321_v52, 0.0  ;;  %v1881_v20 = vadd.f32 %v1625_v26, %v1161_v61  ;;  %v816_v36 = vmul.f32 %v9187_v7, %v8941_v63  ;;  %9213 = vst [vmem:[#allocation26_spill] sm:$0xff] %v7078_v0  ;;  %v9214_v52 = vld [vmem:[#allocation46_spill] sm:$0xff]  ;;  %v9221_v0 = vld [vmem:[#allocation27_spill] sm:$0xff] }
 0x219   :  { %2732 = vadd.xlane.f32.xlu0 %v2731_v24  ;;  %v2578_v22 = vmax.f32 %v2322_v11, 0.0  ;;  %v1882_v48 = vadd.f32 %v1626_v57, %v1162_v14  ;;  %v1535_v46 = vmul.f32 %v9191_v15, %v8942_v2  ;;  %v1536_v23 = vmul.f32 %v9191_v15, %v8943_v43  ;;  %v9215_v11 = vld [vmem:[#allocation41_spill] sm:$0xff]  ;;  %v9216_v14 = vld [vmem:[#allocation42_spill] sm:$0xff] }
 0x21a   :  { %v1071_v4 = vadd.f32 %v815_v30, %v351_v37  ;;  %v2233_v16 = vadd.f32 %v9193_v44, %v1881_v20  ;;  %v1072_v49 = vadd.f32 %v816_v36, %v352_v19  ;;  %v501_v26 = vmul.f32 %v9196_v45, %v8944_v21  ;;  %v9217_v19 = vld [vmem:[#allocation43_spill] sm:$0xff] }
 0x21b   :  { %v2953_v62 = vadd.f32 %v2578_v22, %v2577_v50  ;;  %v2234_v12 = vadd.f32 %v9193_v44, %v1882_v48  ;;  %v502_v2 = vmul.f32 %v9196_v45, %v9214_v52  ;;  %v965_v43 = vmul.f32 %v9198_v31, %v9215_v11  ;;  %v7089_v22 = vpop.xlane.xlu0 %2714  ;;  %v9224_v45 = vld [vmem:[#allocation12_spill] sm:$0xff]  ;;  %v9225_v44 = vld [vmem:[#allocation110_spill] sm:$0xff] }
 0x21c   :  { %v1791_v24 = vadd.f32 %v1535_v46, %v1071_v4  ;;  %v2489_v63 = vmax.f32 %v2233_v16, 0.0  ;;  %v1792_v57 = vadd.f32 %v1536_v23, %v1072_v49  ;;  %v966_v37 = vmul.f32 %v9198_v31, %v9216_v14  ;;  %9218 = vst [vmem:[#allocation10_spill] sm:$0xff] %v7089_v22  ;;  %v9220_v46 = vld [vmem:[#allocation44_spill] sm:$0xff] }
 0x21d   :  { %2954 = vadd.xlane.f32.xlu1 %v2953_v62  ;;  %v2490_v50 = vmax.f32 %v2234_v12, 0.0  ;;  %v1685_v30 = vmul.f32 %v9200_v55, %v9217_v19  ;;  %v9219_v20 = vlaneseq  ;;  %v1221_v4 = vadd.f32 %v965_v43, %v501_v26  ;;  %v9223_v22 = vld [vmem:[#allocation28_spill] sm:$0xff]  ;;  %v9226_v26 = vld [vmem:[#allocation13_spill] sm:$0xff] }
 0x21e   :  { %v2143_v61 = vadd.f32 %v9201_v18, %v1791_v24  ;;  %v2144_v48 = vadd.f32 %v9201_v18, %v1792_v57  ;;  %v1686_v23 = vmul.f32 %v9200_v55, %v9220_v46  ;;  %v1222_v49 = vadd.f32 %v966_v37, %v502_v2  ;;  %v7105_v55 = vpop.xlane.xlu1 %2669  ;;  %v9229_v37 = vld [vmem:[#allocation20_spill] sm:$0xff] }
 0x21f   :  { %v7092_v36 = vand.u32 127, %v9219_v20  ;;  %v2821_v62 = vadd.f32 %v2490_v50, %v2489_v63  ;;  %v1941_v24 = vadd.f32 %v1685_v30, %v1221_v4  ;;  %v411_v33 = vmul.f32 %v9222_v1, %v9221_v0  ;;  %9227 = vst [vmem:[#allocation19_spill] sm:$0xff] %v7105_v55  ;;  %v9228_v63 = vld [vmem:[#allocation5_spill] sm:$0xff]  ;;  %v7117_v47 = vpop.xlane.xlu0 %2804 }
 0x220   :  { %v2399_v16 = vmax.f32 %v2143_v61, 0.0  ;;  %v2400_v12 = vmax.f32 %v2144_v48, 0.0  ;;  %v1942_v31 = vadd.f32 %v1686_v23, %v1222_v49  ;;  %v412_v20 = vmul.f32 %v9222_v1, %v9223_v22  ;;  %v9230_v30 = vld [vmem:[#allocation73_spill] sm:$0xff]  ;;  %9232 = vst [vmem:[#allocation50_spill] sm:$0xff] %v7117_v47 }
 0x221   :  { %2822 = vadd.xlane.f32.xlu0 %v2821_v62  ;;  %v875_v57 = vmul.f32 %v9225_v44, %v9224_v45  ;;  %v876_v43 = vmul.f32 %v9225_v44, %v9226_v26  ;;  %v7109_v2 = vsub.s32 %v7092_v36, %v9228_v63  ;;  %v2293_v61 = vadd.f32 %v9204_v10, %v1941_v24  ;;  %v9231_v49 = vld [vmem:[#allocation21_spill] sm:$0xff] }
 0x222   :  { %v2686_v50 = vadd.f32 %v2400_v12, %v2399_v16  ;;  %v1595_v48 = vmul.f32 %v9230_v30, %v9229_v37  ;;  %v2294_v4 = vadd.f32 %v9204_v10, %v1942_v31  ;;  %v1596_v35 = vmul.f32 %v9230_v30, %v9231_v49 }
 0x223   :  { %v1131_v23 = vadd.f32 %v875_v57, %v411_v33  ;;  %v1132_v62 = vadd.f32 %v876_v43, %v412_v20  ;;  %v3134_v55 = vadd.s32 4294967288, %v7092_v36  ;;  %v2549_v28 = vmax.f32 %v2293_v61, 0.0  ;;  %v9233_v33 = vld [vmem:[#allocation145_spill] sm:$0xff]  ;;  %v9234_v61 = vld [vmem:[#allocation147_spill] sm:$0xff] }
 0x224   :  { %2687 = vadd.xlane.f32.xlu1 %v2686_v50  ;;  %v383_v16 = vmul.f32 %v9184_v51, %v8972_v42  ;;  %v2550_v12 = vmax.f32 %v2294_v4, 0.0  ;;  %v384_v31 = vmul.f32 %v9184_v51, %v8865_v60  ;;  %v3133_v20 = vrot.slane %v9233_v33, %v7109_v2  ;;  %v7136_v4 = vpop.xlane.xlu1 %2759 }
 0x225   :  { %v1851_v24 = vadd.f32 %v1595_v48, %v1131_v23  ;;  %v1852_v25 = vadd.f32 %v1596_v35, %v1132_v62  ;;  %v847_v57 = vmul.f32 %v9187_v7, %v8866_v38  ;;  %v848_v43 = vmul.f32 %v9187_v7, %v9013_v59  ;;  %9235 = vst [vmem:[#allocation51_spill] sm:$0xff] %v7136_v4  ;;  %v9236_v59 = vld [vmem:[#allocation101_spill] sm:$0xff] }
 0x226   :  { %v1567_v50 = vmul.f32 %v9191_v15, %v9015_v40  ;;  %v2911_v42 = vadd.f32 %v2550_v12, %v2549_v28  ;;  %v1568_v60 = vmul.f32 %v9191_v15, %v8871_v54  ;;  %v7139_v23 = vsub.s32 %v3134_v55, %v9228_v63  ;;  %v7147_v54 = vpop.xlane.xlu0 %2894 }
 0x227   :  { %v2203_v48 = vadd.f32 %v9234_v61, %v1851_v24  ;;  %v2204_v35 = vadd.f32 %v9234_v61, %v1852_v25  ;;  %v1103_v38 = vadd.f32 %v847_v57, %v383_v16  ;;  %v1104_v62 = vadd.f32 %v848_v43, %v384_v31  ;;  %v9237_v25 = vld [vmem:[#allocation35_spill] sm:$0xff]  ;;  %v9238_v24 = vld [vmem:[#allocation97_spill] sm:$0xff]  ;;  %9239 = vst [vmem:[#allocation52_spill] sm:$0xff] %v7147_v54  ;;  %v9240_v43 = vld [vmem:[#allocation164_spill] sm:$0xff] }
 0x228   :  { %v471_v33 = vmul.f32 %v9236_v59, %v9195_v17  ;;  %2912 = vadd.xlane.f32.xlu0 %v2911_v42  ;;  %v472_v12 = vmul.f32 %v9236_v59, %v9199_v27  ;;  %v935_v47 = vmul.f32 %v9238_v24, %v9237_v25  ;;  %v3141_v4 = vadd.s32 4294967280, %v7092_v36  ;;  %v9242_v27 = vld [vmem:[#allocation77_spill] sm:$0xff] }
 0x229   :  { %v2459_v40 = vmax.f32 %v2203_v48, 0.0  ;;  %v2460_v28 = vmax.f32 %v2204_v35, 0.0  ;;  %v1823_v55 = vadd.f32 %v1567_v50, %v1103_v38  ;;  %v1824_v10 = vadd.f32 %v1568_v60, %v1104_v62  ;;  %v9241_v48 = vld [vmem:[#allocation40_spill] sm:$0xff] }
 0x22a   :  { %v936_v16 = vmul.f32 %v9238_v24, %v9150_v3  ;;  %v1191_v57 = vadd.f32 %v935_v47, %v471_v33  ;;  %v1655_v42 = vmul.f32 %v9240_v43, %v9152_v32  ;;  %v1656_v35 = vmul.f32 %v9240_v43, %v9241_v48  ;;  %v7166_v33 = vpop.xlane.xlu1 %2849 }
 0x22b   :  { %v2776_v31 = vadd.f32 %v2460_v28, %v2459_v40  ;;  %v3138_v25 = vrot.slane %v9242_v27, %v7139_v23  ;;  %v2175_v54 = vadd.f32 %v9201_v18, %v1823_v55  ;;  %v2176_v17 = vadd.f32 %v9201_v18, %v1824_v10  ;;  %9243 = vst [vmem:[#allocation129_spill] sm:$0xff] %v7166_v33 }
 0x22c   :  { %v1192_v50 = vadd.f32 %v936_v16, %v472_v12  ;;  %v1911_v60 = vadd.f32 %v1655_v42, %v1191_v57  ;;  %v443_v38 = vmul.f32 %v9222_v1, %v8834_v34  ;;  %v444_v47 = vmul.f32 %v9222_v1, %v8838_v39  ;;  %v9244_v12 = vld [vmem:[#allocation137_spill] sm:$0xff]  ;;  %v7176_v42 = vpop.xlane.xlu0 %2624 }
 0x22d   :  { %2777 = vadd.xlane.f32.xlu1 %v2776_v31  ;;  %v907_v62 = vmul.f32 %v9225_v44, %v8900_v5  ;;  %v7169_v27 = vsub.s32 %v3141_v4, %v9228_v63  ;;  %v2431_v40 = vmax.f32 %v2175_v54, 0.0  ;;  %v2432_v28 = vmax.f32 %v2176_v17, 0.0  ;;  %9245 = vst [vmem:[#allocation53_spill] sm:$0xff] %v7176_v42 }
 0x22e   :  { %v1912_v10 = vadd.f32 %v1656_v35, %v1192_v50  ;;  %v2263_v55 = vadd.f32 %v9244_v12, %v1911_v60  ;;  %v908_v16 = vmul.f32 %v9225_v44, %v8902_v13  ;;  %v1627_v57 = vmul.f32 %v9230_v30, %v8843_v41  ;;  %v9246_v60 = vld [vmem:[#allocation71_spill] sm:$0xff] }
 0x22f   :  { %v1163_v31 = vadd.f32 %v907_v62, %v443_v38  ;;  %v3140_v33 = vsel %vm3139_vm0, %v3138_v25, %v3133_v20  ;;  %v2734_v5 = vadd.f32 %v2432_v28, %v2431_v40  ;;  %v1628_v17 = vmul.f32 %v9230_v30, %v8844_v56  ;;  %v9247_v20 = vld [vmem:[#allocation79_spill] sm:$0xff] }
 0x230   :  { %v2264_v4 = vadd.f32 %v9244_v12, %v1912_v10  ;;  %v2519_v54 = vmax.f32 %v2263_v55, 0.0  ;;  %v1164_v35 = vadd.f32 %v908_v16, %v444_v47  ;;  %v531_v13 = vmul.f32 %v9246_v60, %v8872_v8  ;;  %v9248_v10 = vld [vmem:[#allocation102_spill] sm:$0xff]  ;;  %v7194_v16 = vpop.xlane.xlu1 %2939  ;;  %v7203_v56 = vpop.xlane.xlu0 %2717 }
 0x231   :  { %v1883_v50 = vadd.f32 %v1627_v57, %v1163_v31  ;;  %v3148_v38 = vadd.s32 4294967272, %v7092_v36  ;;  %2735 = vadd.xlane.f32.xlu0 %v2734_v5  ;;  %v532_v42 = vmul.f32 %v9246_v60, %v8873_v29  ;;  %v995_v25 = vmul.f32 %v9247_v20, %v8895_v9  ;;  %9249 = vst [vmem:[#allocation130_spill] sm:$0xff] %v7194_v16  ;;  %v9250_v5 = vld [vmem:[#allocation92_spill] sm:$0xff] }
 0x232   :  { %v2520_v62 = vmax.f32 %v2264_v4, 0.0  ;;  %v1884_v40 = vadd.f32 %v1628_v17, %v1164_v35  ;;  %v996_v47 = vmul.f32 %v9247_v20, %v8897_v6  ;;  %v1715_v55 = vmul.f32 %v9248_v10, %v8874_v58  ;;  %9251 = vst [vmem:[#allocation132_spill] sm:$0xff] %v7203_v56 }
 0x233   :  { %v2235_v28 = vadd.f32 %v9234_v61, %v1883_v50  ;;  %v3145_v31 = vrot.slane %v9250_v5, %v7169_v27  ;;  %v1251_v4 = vadd.f32 %v995_v25, %v531_v13  ;;  %v1716_v60 = vmul.f32 %v9248_v10, %v8876_v53 }
 0x234   :  { %v2866_v57 = vadd.f32 %v2520_v62, %v2519_v54  ;;  %v2236_v17 = vadd.f32 %v9234_v61, %v1884_v40  ;;  %v1252_v50 = vadd.f32 %v996_v47, %v532_v42  ;;  %v503_v20 = vmul.f32 %v9236_v59, %v8944_v21 }
 0x235   :  { %v2491_v35 = vmax.f32 %v2235_v28, 0.0  ;;  %v7206_v41 = vsub.s32 %v3148_v38, %v9228_v63  ;;  %v1971_v16 = vadd.f32 %v1715_v55, %v1251_v4  ;;  %v504_v13 = vmul.f32 %v9236_v59, %v9214_v52  ;;  %v9253_v38 = vld [vmem:[#allocation120_spill] sm:$0xff] }
 0x236   :  { %2867 = vadd.xlane.f32.xlu1 %v2866_v57  ;;  %v967_v54 = vmul.f32 %v9238_v24, %v9215_v11  ;;  %v2492_v62 = vmax.f32 %v2236_v17, 0.0  ;;  %v1972_v25 = vadd.f32 %v1716_v60, %v1252_v50  ;;  %v968_v42 = vmul.f32 %v9238_v24, %v9216_v14  ;;  %v7224_v17 = vpop.xlane.xlu1 %2672 }
 0x237   :  { %9252 = vst [vmem:[#allocation133_spill] sm:$0xff] %v7206_v41  ;;  %v1687_v40 = vmul.f32 %v9240_v43, %v9217_v19  ;;  %v7217_v28 = vsel %vm3146_vm1, %v3145_v31, %v3140_v33  ;;  %v2323_v47 = vadd.f32 %v9253_v38, %v1971_v16  ;;  %v1688_v55 = vmul.f32 %v9240_v43, %v9220_v46  ;;  %v9255_v19 = vld [vmem:[#allocation62_spill] sm:$0xff]  ;;  %v9256_v31 = vld [vmem:[#allocation72_spill] sm:$0xff] }
 0x238   :  { %v1223_v10 = vadd.f32 %v967_v54, %v503_v20  ;;  %v3155_v5 = vadd.s32 4294967264, %v7092_v36  ;;  %v2824_v57 = vadd.f32 %v2492_v62, %v2491_v35  ;;  %v2324_v4 = vadd.f32 %v9253_v38, %v1972_v25  ;;  %9254 = vst [vmem:[#allocation56_spill] sm:$0xff] %v7224_v17 }
 0x239   :  { %v1224_v60 = vadd.f32 %v968_v42, %v504_v13  ;;  %v2579_v50 = vmax.f32 %v2323_v47, 0.0  ;;  %v413_v33 = vmul.f32 %v9255_v19, %v9221_v0  ;;  %v877_v16 = vmul.f32 %v9256_v31, %v9224_v45  ;;  %v7234_v13 = vpop.xlane.xlu0 %2807  ;;  %v9258_v42 = vld [vmem:[#allocation154_spill] sm:$0xff] }
 0x23a   :  { %v1943_v56 = vadd.f32 %v1687_v40, %v1223_v10  ;;  %2825 = vadd.xlane.f32.xlu0 %v2824_v57  ;;  %v2580_v20 = vmax.f32 %v2324_v4, 0.0  ;;  %v414_v46 = vmul.f32 %v9255_v19, %v9223_v22  ;;  %v878_v35 = vmul.f32 %v9256_v31, %v9226_v26  ;;  %9257 = vst [vmem:[#allocation134_spill] sm:$0xff] %v7234_v13 }
 0x23b   :  { %v1944_v54 = vadd.f32 %v1688_v55, %v1224_v60  ;;  %v1133_v25 = vadd.f32 %v877_v16, %v413_v33  ;;  %v1597_v40 = vmul.f32 %v9258_v42, %v9229_v37  ;;  %v1598_v38 = vmul.f32 %v9258_v42, %v9231_v49 }
 0x23c   :  { %v2295_v62 = vadd.f32 %v9244_v12, %v1943_v56  ;;  %v2956_v47 = vadd.f32 %v2580_v20, %v2579_v50  ;;  %v1134_v55 = vadd.f32 %v878_v35, %v414_v46  ;;  %v415_v57 = vmul.f32 %v9184_v51, %v9221_v0  ;;  %v7253_v20 = vpop.xlane.xlu1 %2762  ;;  %v9261_v0 = vld [vmem:[#allocation82_spill] sm:$0xff] }
 0x23d   :  { %v2296_v10 = vadd.f32 %v9244_v12, %v1944_v54  ;;  %v7245_v4 = vsub.s32 %v3155_v5, %v9228_v63  ;;  %v1853_v56 = vadd.f32 %v1597_v40, %v1133_v25  ;;  %v416_v33 = vmul.f32 %v9184_v51, %v9223_v22  ;;  %9260 = vst [vmem:[#allocation54_spill] sm:$0xff] %v7253_v20  ;;  %v9262_v54 = vld [vmem:[#allocation90_spill] sm:$0xff] }
 0x23e   :  { %v2551_v60 = vmax.f32 %v2295_v62, 0.0  ;;  %2957 = vadd.xlane.f32.xlu1 %v2956_v47  ;;  %v1854_v13 = vadd.f32 %v1598_v38, %v1134_v55  ;;  %v879_v50 = vmul.f32 %v9187_v7, %v9224_v45  ;;  %v880_v46 = vmul.f32 %v9187_v7, %v9226_v26  ;;  %v7263_v47 = vpop.xlane.xlu0 %2897  ;;  %v9264_v26 = vld [vmem:[#allocation104_spill] sm:$0xff]  ;;  %v9265_v55 = vld [vmem:[#allocation150_spill] sm:$0xff] }
 0x23f   :  { %9259 = vst [vmem:[#allocation135_spill] sm:$0xff] %v7245_v4  ;;  %v2552_v16 = vmax.f32 %v2296_v10, 0.0  ;;  %v3400_v5 = vrot.slane %v9261_v0, %v7109_v2  ;;  %v2205_v35 = vadd.f32 %v9262_v54, %v1853_v56  ;;  %v1599_v62 = vmul.f32 %v9191_v15, %v9229_v37  ;;  %9263 = vst [vmem:[#allocation47_spill] sm:$0xff] %v7263_v47  ;;  %v9266_v56 = vld [vmem:[#allocation125_spill] sm:$0xff]  ;;  %v9271_v47 = vld [vmem:[#allocation88_spill] sm:$0xff] }
 0x240   :  { %v1600_v22 = vmul.f32 %v9191_v15, %v9231_v49  ;;  %v2206_v40 = vadd.f32 %v9262_v54, %v1854_v13  ;;  %v1135_v45 = vadd.f32 %v879_v50, %v415_v57  ;;  %v1136_v38 = vadd.f32 %v880_v46, %v416_v33  ;;  %v9268_v13 = vld [vmem:[#allocation87_spill] sm:$0xff]  ;;  %v9269_v33 = vld [vmem:[#allocation38_spill] sm:$0xff] }
 0x241   :  { %v2914_v25 = vadd.f32 %v2552_v16, %v2551_v60  ;;  %v3159_v10 = vrot.slane %v9264_v26, %v7245_v4  ;;  %v3152_v0 = vrot.slane %v9265_v55, %v7206_v41  ;;  %v3404_v17 = vrot.slane %v9266_v56, %v7139_v23  ;;  %v9267_v16 = vld [vmem:[#allocation37_spill] sm:$0xff]  ;;  %v9270_v46 = vld [vmem:[#allocation35_spill] sm:$0xff] }
 0x242   :  { %v2461_v37 = vmax.f32 %v2205_v35, 0.0  ;;  %v2462_v20 = vmax.f32 %v2206_v40, 0.0  ;;  %v1855_v49 = vadd.f32 %v1599_v62, %v1135_v45  ;;  %v1856_v60 = vadd.f32 %v1600_v22, %v1136_v38  ;;  %v9272_v15 = vld [vmem:[#allocation143_spill] sm:$0xff]  ;;  %v7285_v40 = vpop.xlane.xlu1 %2852 }
 0x243   :  { %2915 = vadd.xlane.f32.xlu0 %v2914_v25  ;;  %v473_v57 = vmul.f32 %v9268_v13, %v9267_v16  ;;  %v474_v50 = vmul.f32 %v9268_v13, %v9269_v33  ;;  %v937_v26 = vmul.f32 %v9271_v47, %v9270_v46  ;;  %v938_v55 = vmul.f32 %v9271_v47, %v9150_v3 }
 0x244   :  { %v1657_v56 = vmul.f32 %v9272_v15, %v9152_v32  ;;  %v2779_v35 = vadd.f32 %v2462_v20, %v2461_v37  ;;  %v2207_v25 = vadd.f32 %v9201_v18, %v1855_v49  ;;  %v2208_v62 = vadd.f32 %v9201_v18, %v1856_v60  ;;  %9273 = vst [vmem:[#allocation64_spill] sm:$0xff] %v7285_v40  ;;  %v7296_v60 = vpop.xlane.xlu0 %2627 }
 0x245   :  { %v1658_v22 = vmul.f32 %v9272_v15, %v9241_v48  ;;  %v3154_v45 = vsel %vm3153_vm2, %v3152_v0, %v7217_v28  ;;  %v7290_v38 = vsel %vm3139_vm0, %v3404_v17, %v3400_v5  ;;  %v1193_v7 = vadd.f32 %v937_v26, %v473_v57  ;;  %9274 = vst [vmem:[#allocation48_spill] sm:$0xff] %v7296_v60  ;;  %v9275_v26 = vld [vmem:[#allocation91_spill] sm:$0xff] }
 0x246   :  { %v1194_v51 = vadd.f32 %v938_v55, %v474_v50  ;;  %2780 = vadd.xlane.f32.xlu1 %v2779_v35  ;;  %v2463_v4 = vmax.f32 %v2207_v25, 0.0  ;;  %v2464_v20 = vmax.f32 %v2208_v62, 0.0  ;;  %v475_v37 = vmul.f32 %v9222_v1, %v9267_v16  ;;  %v9276_v35 = vld [vmem:[#allocation68_spill] sm:$0xff]  ;;  %v9277_v62 = vld [vmem:[#allocation86_spill] sm:$0xff] }
 0x247   :  { %v476_v49 = vmul.f32 %v9222_v1, %v9269_v33  ;;  %v1913_v40 = vadd.f32 %v1657_v56, %v1193_v7  ;;  %v939_v28 = vmul.f32 %v9225_v44, %v9270_v46  ;;  %v940_v5 = vmul.f32 %v9225_v44, %v9150_v3 }
 0x248   :  { %v1914_v18 = vadd.f32 %v1658_v22, %v1194_v51  ;;  %v2782_v17 = vadd.f32 %v2464_v20, %v2463_v4  ;;  %v1659_v0 = vmul.f32 %v9230_v30, %v9152_v32  ;;  %v1660_v57 = vmul.f32 %v9230_v30, %v9241_v48  ;;  %v7314_v20 = vpop.xlane.xlu1 %2942 }
 0x249   :  { %v3162_v50 = vadd.s32 4294967256, %v7092_v36  ;;  %v2265_v55 = vadd.f32 %v9275_v26, %v1913_v40  ;;  %v1195_v51 = vadd.f32 %v939_v28, %v475_v37  ;;  %v3161_v56 = vsel %vm3160_vm3, %v3159_v10, %v3154_v45  ;;  %9278 = vst [vmem:[#allocation115_spill] sm:$0xff] %v7314_v20  ;;  %v9279_v37 = vld [vmem:[#allocation89_spill] sm:$0xff]  ;;  %v7322_v28 = vpop.xlane.xlu0 %2720 }
 0x24a   :  { %v2266_v7 = vadd.f32 %v9275_v26, %v1914_v18  ;;  %2783 = vadd.xlane.f32.xlu0 %v2782_v17  ;;  %v1196_v4 = vadd.f32 %v940_v5, %v476_v49  ;;  %v533_v25 = vmul.f32 %v9276_v35, %v8872_v8  ;;  %v997_v22 = vmul.f32 %v9277_v62, %v8895_v9 }
 0x24b   :  { %v2521_v60 = vmax.f32 %v2265_v55, 0.0  ;;  %v1915_v44 = vadd.f32 %v1659_v0, %v1195_v51  ;;  %v534_v40 = vmul.f32 %v9276_v35, %v8873_v29  ;;  %v998_v10 = vmul.f32 %v9277_v62, %v8897_v6  ;;  %9280 = vst [vmem:[#allocation24_spill] sm:$0xff] %v7322_v28 }
 0x24c   :  { %v2522_v30 = vmax.f32 %v2266_v7, 0.0  ;;  %v1916_v18 = vadd.f32 %v1660_v57, %v1196_v4  ;;  %v1253_v45 = vadd.f32 %v997_v22, %v533_v25  ;;  %v1717_v49 = vmul.f32 %v9279_v37, %v8874_v58  ;;  %v9282_v25 = vld [vmem:[#allocation121_spill] sm:$0xff] }
 0x24d   :  { %v7325_v17 = vsub.s32 %v3162_v50, %v9228_v63  ;;  %v2267_v55 = vadd.f32 %v9234_v61, %v1915_v44  ;;  %v1718_v0 = vmul.f32 %v9279_v37, %v8876_v53  ;;  %v1254_v7 = vadd.f32 %v998_v10, %v534_v40  ;;  %v7340_v40 = vpop.xlane.xlu1 %2675 }
 0x24e   :  { %v2869_v5 = vadd.f32 %v2522_v30, %v2521_v60  ;;  %v2268_v57 = vadd.f32 %v9234_v61, %v1916_v18  ;;  %v1973_v51 = vadd.f32 %v1717_v49, %v1253_v45  ;;  %v535_v4 = vmul.f32 %v9236_v59, %v8872_v8  ;;  %9283 = vst [vmem:[#allocation139_spill] sm:$0xff] %v7340_v40  ;;  %v9284_v18 = vld [vmem:[#allocation155_spill] sm:$0xff] }
 0x24f   :  { %9281 = vst [vmem:[#allocation78_spill] sm:$0xff] %v7325_v17  ;;  %v2523_v35 = vmax.f32 %v2267_v55, 0.0  ;;  %v536_v50 = vmul.f32 %v9236_v59, %v8873_v29  ;;  %v999_v30 = vmul.f32 %v9238_v24, %v8895_v9  ;;  %v1974_v60 = vadd.f32 %v1718_v0, %v1254_v7 }
 0x250   :  { %2870 = vadd.xlane.f32.xlu1 %v2869_v5  ;;  %v2524_v44 = vmax.f32 %v2268_v57, 0.0  ;;  %v2325_v62 = vadd.f32 %v9282_v25, %v1973_v51  ;;  %v1000_v22 = vmul.f32 %v9238_v24, %v8897_v6  ;;  %v3166_v10 = vrot.slane %v9284_v18, %v7325_v17  ;;  %v7349_v57 = vpop.xlane.xlu0 %2810  ;;  %v9286_v24 = vld [vmem:[#allocation95_spill] sm:$0xff] }
 0x251   :  { %v1255_v45 = vadd.f32 %v999_v30, %v535_v4  ;;  %v1719_v37 = vmul.f32 %v9240_v43, %v8874_v58  ;;  %v1720_v59 = vmul.f32 %v9240_v43, %v8876_v53  ;;  %v2326_v5 = vadd.f32 %v9282_v25, %v1974_v60  ;;  %9285 = vst [vmem:[#allocation8_spill] sm:$0xff] %v7349_v57  ;;  %v9288_v60 = vld [vmem:[#allocation32_spill] sm:$0xff]  ;;  %v7370_v57 = vpop.xlane.xlu1 %2765 }
 0x252   :  { %v2872_v49 = vadd.f32 %v2524_v44, %v2523_v35  ;;  %v2581_v55 = vmax.f32 %v2325_v62, 0.0  ;;  %v1256_v0 = vadd.f32 %v1000_v22, %v536_v50  ;;  %v3409_v7 = vrot.slane %v9286_v24, %v7169_v27  ;;  %v9287_v35 = vld [vmem:[#allocation31_spill] sm:$0xff]  ;;  %v9289_v22 = vld [vmem:[#allocation33_spill] sm:$0xff]  ;;  %9291 = vst [vmem:[#allocation9_spill] sm:$0xff] %v7370_v57 }
 0x253   :  { %v1975_v51 = vadd.f32 %v1719_v37, %v1255_v45  ;;  %v445_v4 = vmul.f32 %v9255_v19, %v8834_v34  ;;  %v446_v30 = vmul.f32 %v9255_v19, %v8838_v39  ;;  %v2582_v18 = vmax.f32 %v2326_v5, 0.0  ;;  %v9290_v37 = vld [vmem:[#allocation34_spill] sm:$0xff] }
 0x254   :  { %2873 = vadd.xlane.f32.xlu0 %v2872_v49  ;;  %v1976_v43 = vadd.f32 %v1720_v59, %v1256_v0  ;;  %v909_v44 = vmul.f32 %v9256_v31, %v9287_v35  ;;  %v910_v50 = vmul.f32 %v9256_v31, %v9288_v60  ;;  %v7362_v25 = vsel %vm3167_vm4, %v3166_v10, %v3161_v56  ;;  %v9292_v56 = vld [vmem:[#allocation162_spill] sm:$0xff] }
 0x255   :  { %v2327_v62 = vadd.f32 %v9244_v12, %v1975_v51  ;;  %v1629_v45 = vmul.f32 %v9258_v42, %v9289_v22  ;;  %v1630_v24 = vmul.f32 %v9258_v42, %v9290_v37  ;;  %v2959_v49 = vadd.f32 %v2582_v18, %v2581_v55 }
 0x256   :  { %v2328_v59 = vadd.f32 %v9244_v12, %v1976_v43  ;;  %v1165_v5 = vadd.f32 %v909_v44, %v445_v4  ;;  %v1166_v0 = vadd.f32 %v910_v50, %v446_v30  ;;  %v3410_v28 = vsel %vm3146_vm1, %v3409_v7, %v7290_v38  ;;  %v7380_v4 = vpop.xlane.xlu0 %2900  ;;  %v9294_v30 = vld [vmem:[#allocation161_spill] sm:$0xff] }
 0x257   :  { %v2583_v51 = vmax.f32 %v2327_v62, 0.0  ;;  %v477_v40 = vmul.f32 %v9255_v19, %v9267_v16  ;;  %2960 = vadd.xlane.f32.xlu1 %v2959_v49  ;;  %v941_v12 = vmul.f32 %v9256_v31, %v9270_v46  ;;  %9293 = vst [vmem:[#allocation16_spill] sm:$0xff] %v7380_v4  ;;  %v3414_v18 = vrot.slane %v9294_v30, %v7206_v41 }
 0x258   :  { %v2584_v20 = vmax.f32 %v2328_v59, 0.0  ;;  %v1885_v17 = vadd.f32 %v1629_v45, %v1165_v5  ;;  %v1886_v55 = vadd.f32 %v1630_v24, %v1166_v0  ;;  %v478_v38 = vmul.f32 %v9255_v19, %v9269_v33 }
 0x259   :  { %v942_v7 = vmul.f32 %v9256_v31, %v9150_v3  ;;  %v1661_v43 = vmul.f32 %v9258_v42, %v9152_v32  ;;  %v1197_v45 = vadd.f32 %v941_v12, %v477_v40  ;;  %v1662_v49 = vmul.f32 %v9258_v42, %v9241_v48 }
 0x25a   :  { %v2962_v44 = vadd.f32 %v2584_v20, %v2583_v51  ;;  %v2237_v50 = vadd.f32 %v9262_v54, %v1885_v17  ;;  %v2238_v62 = vadd.f32 %v9262_v54, %v1886_v55  ;;  %v505_v59 = vmul.f32 %v9268_v13, %v8944_v21  ;;  %v7400_v17 = vpop.xlane.xlu1 %2855  ;;  %v9296_v55 = vld [vmem:[#allocation43_spill] sm:$0xff] }
 0x25b   :  { %v1198_v24 = vadd.f32 %v942_v7, %v478_v38  ;;  %v506_v5 = vmul.f32 %v9268_v13, %v9214_v52  ;;  %v1917_v10 = vadd.f32 %v1661_v43, %v1197_v45  ;;  %v969_v20 = vmul.f32 %v9271_v47, %v9215_v11  ;;  %9295 = vst [vmem:[#allocation17_spill] sm:$0xff] %v7400_v17  ;;  %v9297_v38 = vld [vmem:[#allocation44_spill] sm:$0xff]  ;;  %v7410_v45 = vpop.xlane.xlu0 %2630 }
 0x25c   :  { %2963 = vadd.xlane.f32.xlu0 %v2962_v44  ;;  %v2493_v0 = vmax.f32 %v2237_v50, 0.0  ;;  %v2494_v30 = vmax.f32 %v2238_v62, 0.0  ;;  %v970_v51 = vmul.f32 %v9271_v47, %v9216_v14  ;;  %v1689_v12 = vmul.f32 %v9272_v15, %v9296_v55  ;;  %9298 = vst [vmem:[#allocation45_spill] sm:$0xff] %v7410_v45 }
 0x25d   :  { %v1918_v40 = vadd.f32 %v1662_v49, %v1198_v24  ;;  %v1690_v7 = vmul.f32 %v9272_v15, %v9297_v38  ;;  %v3169_v44 = vadd.s32 4294967248, %v7092_v36  ;;  %v2269_v43 = vadd.f32 %v9262_v54, %v1917_v10 }
 0x25e   :  { %v2827_v50 = vadd.f32 %v2494_v30, %v2493_v0  ;;  %v1225_v62 = vadd.f32 %v969_v20, %v505_v59  ;;  %v3415_v17 = vsel %vm3153_vm2, %v3414_v18, %v3410_v28  ;;  %v1226_v49 = vadd.f32 %v970_v51, %v506_v5  ;;  %v9299_v51 = vld [vmem:[#allocation163_spill] sm:$0xff] }
 0x25f   :  { %v2270_v24 = vadd.f32 %v9262_v54, %v1918_v40  ;;  %v537_v57 = vmul.f32 %v9268_v13, %v8872_v8  ;;  %v2525_v4 = vmax.f32 %v2269_v43, 0.0  ;;  %v538_v48 = vmul.f32 %v9268_v13, %v8873_v29  ;;  %v7430_v40 = vpop.xlane.xlu1 %2945  ;;  %v9300_v43 = vld [vmem:[#allocation135_spill] sm:$0xff] }
 0x260   :  { %2828 = vadd.xlane.f32.xlu1 %v2827_v50  ;;  %v1945_v41 = vadd.f32 %v1689_v12, %v1225_v62  ;;  %v1001_v10 = vmul.f32 %v9271_v47, %v8895_v9  ;;  %v1946_v0 = vadd.f32 %v1690_v7, %v1226_v49  ;;  %v1002_v28 = vmul.f32 %v9271_v47, %v8897_v6  ;;  %v9301_v62 = vld [vmem:[#allocation75_spill] sm:$0xff] }
 0x261   :  { %v2526_v59 = vmax.f32 %v2270_v24, 0.0  ;;  %v1721_v18 = vmul.f32 %v9272_v15, %v8874_v58  ;;  %v7425_v5 = vsub.s32 %v3169_v44, %v9228_v63  ;;  %v1722_v13 = vmul.f32 %v9272_v15, %v8876_v53 }
 0x262   :  { %v2297_v30 = vadd.f32 %v9275_v26, %v1945_v41  ;;  %v1257_v20 = vadd.f32 %v1001_v10, %v537_v57  ;;  %v3558_v12 = vrot.slane %v9299_v51, %v7109_v2  ;;  %v2298_v47 = vadd.f32 %v9275_v26, %v1946_v0  ;;  %v9302_v41 = vld [vmem:[#allocation144_spill] sm:$0xff]  ;;  %v7439_v10 = vpop.xlane.xlu0 %2723 }
 0x263   :  { %v2875_v7 = vadd.f32 %v2526_v59, %v2525_v4  ;;  %v1258_v50 = vadd.f32 %v1002_v28, %v538_v48  ;;  %v3419_v24 = vrot.slane %v9301_v62, %v9300_v43  ;;  %v447_v57 = vmul.f32 %v9302_v41, %v8834_v34  ;;  %v9303_v4 = vld [vmem:[#allocation122_spill] sm:$0xff] }
 0x264   :  { %v2553_v44 = vmax.f32 %v2297_v30, 0.0  ;;  %v1977_v49 = vadd.f32 %v1721_v18, %v1257_v20  ;;  %v2554_v15 = vmax.f32 %v2298_v47, 0.0  ;;  %v448_v51 = vmul.f32 %v9302_v41, %v8838_v39  ;;  %v9304_v28 = vld [vmem:[#allocation138_spill] sm:$0xff] }
 0x265   :  { %2876 = vadd.xlane.f32.xlu0 %v2875_v7  ;;  %v1978_v45 = vadd.f32 %v1722_v13, %v1258_v50  ;;  %v911_v59 = vmul.f32 %v9303_v4, %v9287_v35  ;;  %v912_v0 = vmul.f32 %v9303_v4, %v9288_v60  ;;  %v1631_v34 = vmul.f32 %v9304_v28, %v9289_v22  ;;  %v7460_v50 = vpop.xlane.xlu1 %2678  ;;  %v9306_v22 = vld [vmem:[#allocation106_spill] sm:$0xff] }
 0x266   :  { %v2329_v48 = vadd.f32 %v9275_v26, %v1977_v49  ;;  %v2917_v18 = vadd.f32 %v2554_v15, %v2553_v44  ;;  %v1632_v13 = vmul.f32 %v9304_v28, %v9290_v37  ;;  %v9305_v39 = vrot.slane %v9292_v56, %v7139_v23  ;;  %v9308_v49 = vld [vmem:[#allocation98_spill] sm:$0xff] }
 0x267   :  { %v2330_v30 = vadd.f32 %v9275_v26, %v1978_v45  ;;  %v1167_v20 = vadd.f32 %v911_v59, %v447_v57  ;;  %v7458_v7 = vsel %vm3160_vm3, %v3419_v24, %v3415_v17  ;;  %v1168_v60 = vadd.f32 %v912_v0, %v448_v51  ;;  %v7472_v24 = vpop.xlane.xlu0 %2813  ;;  %v9309_v51 = vld [vmem:[#allocation146_spill] sm:$0xff] }
 0x268   :  { %v3563_v35 = vsel %vm3139_vm0, %v9305_v39, %v3558_v12  ;;  %v2585_v47 = vmax.f32 %v2329_v48, 0.0  ;;  %v3173_v62 = vrot.slane %v9306_v22, %v7425_v5  ;;  %2918 = vadd.xlane.f32.xlu1 %v2917_v18  ;;  %v509_v37 = vmul.f32 %v9255_v19, %v8944_v21  ;;  %9307 = vst [vmem:[#allocation25_spill] sm:$0xff] %v7472_v24 }
 0x269   :  { %v2586_v26 = vmax.f32 %v2330_v30, 0.0  ;;  %v1887_v45 = vadd.f32 %v1631_v34, %v1167_v20  ;;  %v1888_v44 = vadd.f32 %v1632_v13, %v1168_v60  ;;  %v510_v56 = vmul.f32 %v9255_v19, %v9214_v52 }
 0x26a   :  { %v973_v17 = vmul.f32 %v9256_v31, %v9215_v11  ;;  %v974_v12 = vmul.f32 %v9256_v31, %v9216_v14  ;;  %v3567_v57 = vrot.slane %v9308_v49, %v7169_v27  ;;  %v1693_v48 = vmul.f32 %v9258_v42, %v9296_v55 }
 0x26b   :  { %v2965_v15 = vadd.f32 %v2586_v26, %v2585_v47  ;;  %v2239_v59 = vadd.f32 %v9309_v51, %v1887_v45  ;;  %v2240_v0 = vadd.f32 %v9309_v51, %v1888_v44  ;;  %v1694_v30 = vmul.f32 %v9258_v42, %v9297_v38  ;;  %v9310_v47 = vld [vmem:[#allocation110_spill] sm:$0xff]  ;;  %v7492_v44 = vpop.xlane.xlu1 %2768 }
 0x26c   :  { %v1229_v34 = vadd.f32 %v973_v17, %v509_v37  ;;  %v1230_v18 = vadd.f32 %v974_v12, %v510_v56  ;;  %v507_v13 = vmul.f32 %v9222_v1, %v8944_v21  ;;  %v508_v39 = vmul.f32 %v9222_v1, %v9214_v52  ;;  %v9311_v12 = vld [vmem:[#allocation73_spill] sm:$0xff] }
 0x26d   :  { %2966 = vadd.xlane.f32.xlu0 %v2965_v15  ;;  %v2495_v20 = vmax.f32 %v2239_v59, 0.0  ;;  %v971_v60 = vmul.f32 %v9310_v47, %v9215_v11  ;;  %v7490_v22 = vsel %vm3174_vm5, %v3173_v62, %v7362_v25  ;;  %v2496_v26 = vmax.f32 %v2240_v0, 0.0  ;;  %v7505_v0 = vpop.xlane.xlu0 %2903 }
 0x26e   :  { %v1949_v45 = vadd.f32 %v1693_v48, %v1229_v34  ;;  %v1950_v37 = vadd.f32 %v1694_v30, %v1230_v18  ;;  %v972_v56 = vmul.f32 %v9310_v47, %v9216_v14  ;;  %v1691_v49 = vmul.f32 %v9311_v12, %v9296_v55 }
 0x26f   :  { %v1227_v17 = vadd.f32 %v971_v60, %v507_v13  ;;  %v1692_v15 = vmul.f32 %v9311_v12, %v9297_v38  ;;  %v7501_v59 = vsel %vm3146_vm1, %v3567_v57, %v3563_v35  ;;  %v2830_v25 = vadd.f32 %v2496_v26, %v2495_v20  ;;  %v9312_v60 = vld [vmem:[#allocation80_spill] sm:$0xff] }
 0x270   :  { %v2301_v62 = vadd.f32 %v9262_v54, %v1949_v45  ;;  %v2302_v48 = vadd.f32 %v9262_v54, %v1950_v37  ;;  %v1228_v34 = vadd.f32 %v972_v56, %v508_v39  ;;  %v511_v30 = vmul.f32 %v9302_v41, %v8944_v21 }
 0x271   :  { %v1947_v18 = vadd.f32 %v1691_v49, %v1227_v17  ;;  %v512_v13 = vmul.f32 %v9302_v41, %v9214_v52  ;;  %v3641_v24 = vrot.slane %v9312_v60, %v7139_v23  ;;  %2831 = vadd.xlane.f32.xlu1 %v2830_v25  ;;  %v975_v20 = vmul.f32 %v9303_v4, %v9215_v11  ;;  %v7523_v49 = vpop.xlane.xlu1 %2858 }
 0x272   :  { %v2557_v35 = vmax.f32 %v2301_v62, 0.0  ;;  %v2558_v57 = vmax.f32 %v2302_v48, 0.0  ;;  %v1948_v26 = vadd.f32 %v1692_v15, %v1228_v34  ;;  %v976_v39 = vmul.f32 %v9303_v4, %v9216_v14  ;;  %v9313_v14 = vld [vmem:[#allocation81_spill] sm:$0xff] }
 0x273   :  { %v2299_v45 = vadd.f32 %v9234_v61, %v1947_v18  ;;  %v1695_v21 = vmul.f32 %v9304_v28, %v9296_v55  ;;  %v3176_v52 = vadd.s32 4294967240, %v7092_v36  ;;  %v1231_v56 = vadd.f32 %v975_v20, %v511_v30  ;;  %v7534_v18 = vpop.xlane.xlu0 %2633 }
 0x274   :  { %v2923_v37 = vadd.f32 %v2558_v57, %v2557_v35  ;;  %v1696_v17 = vmul.f32 %v9304_v28, %v9297_v38  ;;  %v2300_v11 = vadd.f32 %v9234_v61, %v1948_v26  ;;  %v1232_v25 = vadd.f32 %v976_v39, %v512_v13 }
 0x275   :  { %v2555_v15 = vmax.f32 %v2299_v45, 0.0  ;;  %v479_v62 = vmul.f32 %v9302_v41, %v9267_v16  ;;  %v3637_v48 = vrot.slane %v9313_v14, %v7109_v2  ;;  %v1951_v55 = vadd.f32 %v1695_v21, %v1231_v56  ;;  %v7554_v56 = vpop.xlane.xlu1 %2948  ;;  %v9316_v14 = vld [vmem:[#allocation29_spill] sm:$0xff] }
 0x276   :  { %2924 = vadd.xlane.f32.xlu0 %v2923_v37  ;;  %v480_v34 = vmul.f32 %v9302_v41, %v9269_v33  ;;  %v943_v38 = vmul.f32 %v9303_v4, %v9270_v46  ;;  %v2556_v30 = vmax.f32 %v2300_v11, 0.0  ;;  %v1952_v60 = vadd.f32 %v1696_v17, %v1232_v25  ;;  %v9314_v33 = vld [vmem:[#allocation40_spill] sm:$0xff] }
 0x277   :  { %v944_v13 = vmul.f32 %v9303_v4, %v9150_v3  ;;  %v1663_v16 = vmul.f32 %v9304_v28, %v9152_v32  ;;  %v7541_v35 = vsub.s32 %v3176_v52, %v9228_v63  ;;  %v2303_v57 = vadd.f32 %v9309_v51, %v1951_v55 }
 0x278   :  { %v1199_v20 = vadd.f32 %v943_v38, %v479_v62  ;;  %v1664_v26 = vmul.f32 %v9304_v28, %v9314_v33  ;;  %v2920_v46 = vadd.f32 %v2556_v30, %v2555_v15  ;;  %v2304_v45 = vadd.f32 %v9309_v51, %v1952_v60  ;;  %v9315_v62 = vld [vmem:[#allocation78_spill] sm:$0xff] }
 0x279   :  { %v1200_v39 = vadd.f32 %v944_v13, %v480_v34  ;;  %v543_v3 = vmul.f32 %v9302_v41, %v8872_v8  ;;  %v7550_v21 = vsel %vm3139_vm0, %v3641_v24, %v3637_v48  ;;  %v2559_v32 = vmax.f32 %v2303_v57, 0.0  ;;  %v7567_v34 = vpop.xlane.xlu0 %2726 }
 0x27a   :  { %v1919_v52 = vadd.f32 %v1663_v16, %v1199_v20  ;;  %v544_v37 = vmul.f32 %v9302_v41, %v8873_v29  ;;  %2921 = vadd.xlane.f32.xlu1 %v2920_v46  ;;  %v2560_v17 = vmax.f32 %v2304_v45, 0.0  ;;  %v1007_v15 = vmul.f32 %v9303_v4, %v8895_v9 }
 0x27b   :  { %v1920_v11 = vadd.f32 %v1664_v26, %v1200_v39  ;;  %v1008_v25 = vmul.f32 %v9303_v4, %v8897_v6  ;;  %v3424_v24 = vrot.slane %v9316_v14, %v9315_v62  ;;  %v1727_v55 = vmul.f32 %v9304_v28, %v8874_v58  ;;  %v9317_v4 = vld [vmem:[#allocation158_spill] sm:$0xff]  ;;  %v9318_v14 = vld [vmem:[#allocation133_spill] sm:$0xff] }
 0x27c   :  { %v2271_v48 = vadd.f32 %v9309_v51, %v1919_v52  ;;  %v1728_v41 = vmul.f32 %v9304_v28, %v8876_v53  ;;  %v2926_v38 = vadd.f32 %v2560_v17, %v2559_v32  ;;  %v1263_v60 = vadd.f32 %v1007_v15, %v543_v3 }
 0x27d   :  { %v2272_v30 = vadd.f32 %v9309_v51, %v1920_v11  ;;  %v1264_v13 = vadd.f32 %v1008_v25, %v544_v37  ;;  %v3180_v16 = vrot.slane %v9317_v4, %v7541_v35  ;;  %v539_v20 = vmul.f32 %v9222_v1, %v8872_v8  ;;  %v7585_v37 = vpop.xlane.xlu1 %2681 }
 0x27e   :  { %v2527_v57 = vmax.f32 %v2271_v48, 0.0  ;;  %v540_v33 = vmul.f32 %v9222_v1, %v8873_v29  ;;  %2927 = vadd.xlane.f32.xlu0 %v2926_v38  ;;  %v1983_v28 = vadd.f32 %v1727_v55, %v1263_v60  ;;  %v1003_v45 = vmul.f32 %v9310_v47, %v8895_v9  ;;  %v9319_v48 = vld [vmem:[#allocation109_spill] sm:$0xff]  ;;  %v7595_v38 = vpop.xlane.xlu0 %2816 }
 0x27f   :  { %v2528_v26 = vmax.f32 %v2272_v30, 0.0  ;;  %v1984_v46 = vadd.f32 %v1728_v41, %v1264_v13  ;;  %v3183_v39 = vadd.s32 4294967232, %v7092_v36  ;;  %v1004_v3 = vmul.f32 %v9310_v47, %v8897_v6 }
 0x280   :  { %v1723_v32 = vmul.f32 %v9311_v12, %v8874_v58  ;;  %v1724_v52 = vmul.f32 %v9311_v12, %v8876_v53  ;;  %v2335_v17 = vadd.f32 %v9309_v51, %v1983_v28  ;;  %v1259_v15 = vadd.f32 %v1003_v45, %v539_v20 }
 0x281   :  { %v2878_v1 = vadd.f32 %v2528_v26, %v2527_v57  ;;  %v2336_v11 = vadd.f32 %v9309_v51, %v1984_v46  ;;  %v3425_v25 = vsel %vm3167_vm4, %v3424_v24, %v7458_v7  ;;  %v3182_v47 = vsel %vm3181_vm6, %v3180_v16, %v7490_v22  ;;  %v7615_v45 = vpop.xlane.xlu1 %2771 }
 0x282   :  { %v3572_v55 = vrot.slane %v9319_v48, %v9318_v14  ;;  %v1260_v41 = vadd.f32 %v1004_v3, %v540_v33  ;;  %v3190_v12 = vadd.s32 4294967224, %v7092_v36  ;;  %v2591_v30 = vmax.f32 %v2335_v17, 0.0  ;;  %v9320_v33 = vld [vmem:[#allocation127_spill] sm:$0xff] }
 0x283   :  { %2879 = vadd.xlane.f32.xlu1 %v2878_v1  ;;  %v2592_v60 = vmax.f32 %v2336_v11, 0.0  ;;  %v1979_v13 = vadd.f32 %v1723_v32, %v1259_v15  ;;  %v7599_v51 = vsub.s32 %v3183_v39, %v9228_v63  ;;  %v541_v7 = vmul.f32 %v9255_v19, %v8872_v8  ;;  %v7625_v32 = vpop.xlane.xlu0 %2906  ;;  %v9322_v1 = vld [vmem:[#allocation112_spill] sm:$0xff]  ;;  %v9323_v11 = vld [vmem:[#allocation117_spill] sm:$0xff] }
 0x284   :  { %v1980_v4 = vadd.f32 %v1724_v52, %v1260_v41  ;;  %v1005_v22 = vmul.f32 %v9256_v31, %v8895_v9  ;;  %v542_v57 = vmul.f32 %v9255_v19, %v8873_v29  ;;  %v1006_v20 = vmul.f32 %v9256_v31, %v8897_v6  ;;  %v9325_v41 = vld [vmem:[#allocation111_spill] sm:$0xff] }
 0x285   :  { %v2974_v24 = vadd.f32 %v2592_v60, %v2591_v30  ;;  %v2331_v16 = vadd.f32 %v9234_v61, %v1979_v13  ;;  %v3646_v26 = vrot.slane %v9320_v33, %v7169_v27  ;;  %v1725_v8 = vmul.f32 %v9258_v42, %v8874_v58  ;;  %v9321_v58 = vld [vmem:[#allocation128_spill] sm:$0xff]  ;;  %v9326_v60 = vld [vmem:[#allocation119_spill] sm:$0xff] }
 0x286   :  { %v2332_v28 = vadd.f32 %v9234_v61, %v1980_v4  ;;  %v1261_v46 = vadd.f32 %v1005_v22, %v541_v7  ;;  %v7618_v9 = vsub.s32 %v3190_v12, %v9228_v63  ;;  %v1262_v29 = vadd.f32 %v1006_v20, %v542_v57 }
 0x287   :  { %2975 = vadd.xlane.f32.xlu0 %v2974_v24  ;;  %v2587_v39 = vmax.f32 %v2331_v16, 0.0  ;;  %v1726_v6 = vmul.f32 %v9258_v42, %v8876_v53  ;;  %v3573_v19 = vsel %vm3153_vm2, %v3572_v55, %v7501_v59  ;;  %v3197_v61 = vadd.s32 4294967216, %v7092_v36  ;;  %v9324_v53 = vld [vmem:[#allocation116_spill] sm:$0xff]  ;;  %v7647_v16 = vpop.xlane.xlu1 %2861 }
 0x288   :  { %v2588_v31 = vmax.f32 %v2332_v28, 0.0  ;;  %v1981_v3 = vadd.f32 %v1725_v8, %v1261_v46  ;;  %v3187_v52 = vrot.slane %v9321_v58, %v7599_v51  ;;  %v3720_v17 = vrot.slane %v9322_v1, %v7139_v23  ;;  %v9328_v46 = vld [vmem:[#allocation26_spill] sm:$0xff]  ;;  %v9332_v1 = vld [vmem:[#allocation129_spill] sm:$0xff] }
 0x289   :  { %v3651_v15 = vrot.slane %v9323_v11, %v9318_v14  ;;  %v1982_v48 = vadd.f32 %v1726_v6, %v1262_v29  ;;  %v3429_v42 = vrot.slane %v9324_v53, %v7425_v5  ;;  %v3716_v12 = vrot.slane %v9325_v41, %v7109_v2  ;;  %v7659_v6 = vpop.xlane.xlu0 %2636  ;;  %v9333_v11 = vld [vmem:[#allocation130_spill] sm:$0xff] }
 0x28a   :  { %v2968_v59 = vadd.f32 %v2588_v31, %v2587_v39  ;;  %v2333_v55 = vadd.f32 %v9262_v54, %v1981_v3  ;;  %v3647_v30 = vsel %vm3146_vm1, %v3646_v26, %v7550_v21  ;;  %v3194_v13 = vrot.slane %v9326_v60, %v7618_v9  ;;  %v9329_v39 = vld [vmem:[#allocation52_spill] sm:$0xff]  ;;  %v9330_v31 = vld [vmem:[#allocation51_spill] sm:$0xff] }
 0x28b   :  { %v2334_v4 = vadd.f32 %v9262_v54, %v1982_v48  ;;  %v7644_v7 = vsub.s32 %v3197_v61, %v9228_v63  ;;  %v3204_v24 = vadd.s32 4294967208, %v7092_v36  ;;  %v3189_v57 = vsel %vm3188_vm7, %v3187_v52, %v3182_v47  ;;  %v9327_v54 = vld [vmem:[#allocation118_spill] sm:$0xff]  ;;  %v9334_v48 = vld [vmem:[#allocation47_spill] sm:$0xff] }
 0x28c   :  { %2969 = vadd.xlane.f32.xlu1 %v2968_v59  ;;  %v2589_v22 = vmax.f32 %v2333_v55, 0.0  ;;  %v3721_v20 = vsel %vm3139_vm0, %v3720_v17, %v3716_v12  ;;  %v3652_v21 = vsel %vm3153_vm2, %v3651_v15, %v3647_v30  ;;  %v3430_v26 = vsel %vm3174_vm5, %v3429_v42, %v3425_v25  ;;  %v9331_v25 = vld [vmem:[#allocation53_spill] sm:$0xff]  ;;  %v9335_v42 = vld [vmem:[#allocation54_spill] sm:$0xff]  ;;  %v9336_v55 = vld [vmem:[#allocation64_spill] sm:$0xff] }
 0x28d   :  { %v2590_v33 = vmax.f32 %v2334_v4, 0.0  ;;  %v3577_v28 = vrot.slane %v9327_v54, %v9300_v43  ;;  %v3725_v8 = vrot.slane %v9328_v46, %v7169_v27  ;;  %v3656_v29 = vrot.slane %v9329_v39, %v9300_v43  ;;  %v9337_v4 = vld [vmem:[#allocation115_spill] sm:$0xff]  ;;  %v9339_v46 = vld [vmem:[#allocation16_spill] sm:$0xff] }
 0x28e   :  { %v3196_v47 = vsel %vm3195_vm8, %v3194_v13, %v3189_v57  ;;  %v3434_v61 = vrot.slane %v9330_v31, %v7541_v35  ;;  %v7665_v58 = vsub.s32 %v3204_v24, %v9228_v63  ;;  %v3201_v52 = vrot.slane %v9331_v25, %v7644_v7  ;;  %v2952_v24 = vpop.xlane.xlu1 %2951  ;;  %v9340_v31 = vld [vmem:[#allocation9_spill] sm:$0xff] }
 0x28f   :  { %v2971_v3 = vadd.f32 %v2590_v33, %v2589_v22  ;;  %v3582_v17 = vrot.slane %v9332_v1, %v9315_v62  ;;  %v3730_v15 = vrot.slane %v9333_v11, %v9318_v14  ;;  %v3661_v53 = vrot.slane %v9334_v48, %v9315_v62  ;;  %v9338_v33 = vld [vmem:[#allocation48_spill] sm:$0xff]  ;;  %v9341_v48 = vld [vmem:[#allocation17_spill] sm:$0xff] }
 0x290   :  { %v3439_v59 = vrot.slane %v9335_v42, %v7599_v51  ;;  %v3587_v41 = vrot.slane %v9336_v55, %v7425_v5  ;;  %v3211_v12 = vadd.s32 4294967200, %v7092_v36  ;;  %v3578_v30 = vsel %vm3160_vm3, %v3577_v28, %v3573_v19  ;;  %v7695_v28 = vpop.xlane.xlu0 %2729  ;;  %v9342_v55 = vld [vmem:[#allocation45_spill] sm:$0xff] }
 0x291   :  { %2972 = vadd.xlane.f32.xlu1 %v2971_v3  ;;  %v3726_v60 = vsel %vm3146_vm1, %v3725_v8, %v3721_v20  ;;  %v3657_v13 = vsel %vm3160_vm3, %v3656_v29, %v3652_v21  ;;  %v3735_v22 = vrot.slane %v9337_v4, %v9300_v43  ;;  %v3435_v57 = vsel %vm3181_vm6, %v3434_v61, %v3430_v26 }
 0x292   :  { %v3208_v54 = vrot.slane %v9338_v33, %v7665_v58  ;;  %v3666_v39 = vrot.slane %v9339_v46, %v7425_v5  ;;  %v3444_v3 = vrot.slane %v9340_v31, %v7618_v9  ;;  %v3203_v19 = vsel %vm3202_vm9, %v3201_v52, %v3196_v47 }
 0x293   :  { %v3583_v20 = vsel %vm3167_vm4, %v3582_v17, %v3578_v30  ;;  %v3731_v21 = vsel %vm3153_vm2, %v3730_v15, %v3726_v60  ;;  %v3662_v26 = vsel %vm3167_vm4, %v3661_v53, %v3657_v13  ;;  %v3440_v8 = vsel %vm3188_vm7, %v3439_v59, %v3435_v57  ;;  %v7721_v59 = vpop.xlane.xlu1 %2684 }
 0x294   :  { %v3588_v29 = vsel %vm3174_vm5, %v3587_v41, %v3583_v20  ;;  %v7701_v61 = vsub.s32 %v3211_v12, %v9228_v63  ;;  %v3736_v25 = vsel %vm3160_vm3, %v3735_v22, %v3731_v21  ;;  %v3671_v47 = vrot.slane %v7505_v0, %v7541_v35  ;;  %v7736_v22 = vpop.xlane.xlu0 %2819 }
 0x295   :  { %v3449_v52 = vrot.slane %v7492_v44, %v7644_v7  ;;  %v3218_v1 = vadd.s32 4294967192, %v7092_v36  ;;  %v3210_v17 = vsel %vm3209_vm10, %v3208_v54, %v3203_v19  ;;  %v3667_v11 = vsel %vm3174_vm5, %v3666_v39, %v3662_v26 }
 0x296   :  { %v3445_v15 = vsel %vm3195_vm8, %v3444_v3, %v3440_v8  ;;  %v3592_v53 = vrot.slane %v9341_v48, %v7541_v35  ;;  %v3740_v42 = vrot.slane %v7430_v40, %v9315_v62  ;;  %v3676_v44 = vrot.slane %v7625_v32, %v7599_v51 }
 0x297   :  { %v7717_v0 = vsub.s32 %v3218_v1, %v9228_v63  ;;  %v3215_v41 = vrot.slane %v9342_v55, %v7701_v61  ;;  %v3597_v12 = vrot.slane %v7523_v49, %v7599_v51  ;;  %v3454_v30 = vrot.slane %v7615_v45, %v7665_v58  ;;  %v9344_v1 = vld [vmem:[#allocation123_spill] sm:$0xff]  ;;  %v9347_v55 = vld [vmem:[#allocation105_spill] sm:$0xff] }
 0x298   :  { %v3225_v60 = vadd.s32 4294967184, %v7092_v36  ;;  %v3672_v40 = vsel %vm3181_vm6, %v3671_v47, %v3667_v11  ;;  %v3450_v13 = vsel %vm3202_vm9, %v3449_v52, %v3445_v15  ;;  %v3745_v4 = vrot.slane %v7554_v56, %v7425_v5  ;;  %v7775_v8 = vpop.xlane.xlu0 %2909  ;;  %v2979_v47 = vld [vmem:[%s8203_s3 + $0x10] sm:$0xff]  ;;  %v2980_v52 = vld [vmem:[%s8203_s3 + $0x18] sm:$0xff]  ;;  %v9345_v15 = vld [vmem:[#allocation148_spill] sm:$0xff] }
 0x299   :  { %v3222_v32 = vrot.slane %v7534_v18, %v7717_v0  ;;  %v7739_v49 = vsel %vm3188_vm7, %v3676_v44, %v3672_v40  ;;  %v7742_v45 = vsel %vm3209_vm10, %v3454_v30, %v3450_v13  ;;  %v3593_v33 = vsel %vm3181_vm6, %v3592_v53, %v3588_v29  ;;  %v9343_v29 = vld [vmem:[#allocation76_spill] sm:$0xff]  ;;  %v9346_v53 = vld [vmem:[#allocation149_spill] sm:$0xff] }
 0x29a   :  { %v7745_v57 = vsub.s32 %v3225_v60, %v9228_v63  ;;  %v3741_v54 = vsel %vm3167_vm4, %v3740_v42, %v3736_v25  ;;  %v3602_v18 = vrot.slane %v7647_v16, %v7618_v9  ;;  %v3217_v56 = vsel %vm3216_vm11, %v3215_v41, %v3210_v17  ;;  %v3878_v60 = vld [vmem:[%s8205_s5] sm:$0xff]  ;;  %v3879_v40 = vld [vmem:[%s8205_s5 + $0x8] sm:$0xff] }
 0x29b   :  { %v3598_v46 = vsel %vm3188_vm7, %v3597_v12, %v3593_v33  ;;  %v3750_v31 = vrot.slane %v2952_v24, %v7541_v35  ;;  %v3224_v3 = vsel %vm3223_vm12, %v3222_v32, %v3217_v56  ;;  %v3746_v19 = vsel %vm3174_vm5, %v3745_v4, %v3741_v54  ;;  %v7761_v21 = vpop.xlane.xlu1 %2774  ;;  %v2978_v24 = vld [vmem:[%s8203_s3 + $0x8] sm:$0xff]  ;;  %v2981_v33 = vld [vmem:[%s8203_s3 + $0x20] sm:$0xff]  ;;  %v9349_v56 = vld [vmem:[#allocation74_spill] sm:$0xff] }
 0x29c   :  { %v3229_v39 = vrot.slane %v7659_v6, %v7745_v57  ;;  %v7759_v20 = vsel %vm3195_vm8, %v3602_v18, %v3598_v46  ;;  %v2977_v6 = vld [vmem:[%s8203_s3] sm:$0xff]  ;;  %v3246_v25 = vrot.slane %v9343_v29, %v7139_v23  ;;  %v3251_v17 = vrot.slane %v9344_v1, %v7169_v27  ;;  %v9348_v32 = vld [vmem:[#allocation153_spill] sm:$0xff] }
 0x29d   :  { %v7767_v26 = vsel %vm3181_vm6, %v3750_v31, %v3746_v19  ;;  %v4240_v11 = vpack.c.bf16 %v2978_v24, %v2977_v6  ;;  %v3242_v48 = vrot.slane %v9345_v15, %v7109_v2  ;;  %v3256_v42 = vrot.slane %v9346_v53, %v9318_v14  ;;  %v2982_v54 = vld [vmem:[%s8203_s3 + $0x28] sm:$0xff]  ;;  %v3881_v19 = vld [vmem:[%s8205_s5 + $0x18] sm:$0xff] }
 0x29e   :  { %v7764_v16 = vsel %vm3230_vm13, %v3229_v39, %v3224_v3  ;;  %v4380_v44 = vmov 0.0|0.0   ;;  %v3261_v41 = vrot.slane %v9347_v55, %v9300_v43  ;;  %v4243_v30 = vpack.c.bf16 %v2980_v52, %v2979_v47  ;;  %v3880_v3 = vld [vmem:[%s8205_s5 + $0x10] sm:$0xff]  ;;  %v9350_v24 = vld [vmem:[#allocation157_spill] sm:$0xff] }
 0x29f   :  { %4239 = vmatprep.subr.bf16.mxu0 %v4380_v44  ;;  %4263 = vmatprep.subr.bf16.mxu1 %v4380_v44  ;;  %v3247_v13 = vsel %vm3139_vm0, %v3246_v25, %v3242_v48  ;;  %v3266_v4 = vrot.slane %v9348_v32, %v9315_v62  ;;  %v3271_v46 = vrot.slane %v9349_v56, %v7425_v5  ;;  %v7816_v39 = vpop.xlane.xlu0 %2639  ;;  %v4382_v31 = vmov 0.0   ;;  %v9351_v1 = vld [vmem:[#allocation113_spill] sm:$0xff]  ;;  %v9352_v48 = vld [vmem:[#allocation19_spill] sm:$0xff] }
 0x2a0   :  { %4241 = vmatpush3.bf16.msra.mxu0 %v4240_v11  ;;  %v3252_v18 = vsel %vm3146_vm1, %v3251_v17, %v3247_v13  ;;  %4166 = vmatprep.mubr.msk.f32.mxu0 %vm8543_vm14, %v4382_v31  ;;  %v3276_v29 = vrot.slane %v9350_v24, %v7541_v35  ;;  %v3232_v25 = vadd.s32 4294967176, %v7092_v36  ;;  %v4264_v47 = vpack.c.bf16 %v3879_v40, %v3878_v60  ;;  %v2984_v36 = vld [vmem:[%s8203_s3 + $0x38] sm:$0xff]  ;;  %v3882_v13 = vld [vmem:[%s8205_s5 + $0x20] sm:$0xff]  ;;  %v3883_v32 = vld [vmem:[%s8205_s5 + $0x28] sm:$0xff] }
 0x2a1   :  { %4242 = vmatprep.subr.bf16.mxu0 %v4380_v44  ;;  %4201 = vmatprep.mubr.msk.f32.mxu1 %vm8543_vm14, %v4382_v31  ;;  %v3257_v6 = vsel %vm3153_vm2, %v3256_v42, %v3252_v18  ;;  %v3281_v17 = vrot.slane %v9351_v1, %v7599_v51  ;;  %v4246_v11 = vpack.c.bf16 %v2982_v54, %v2981_v33  ;;  %v2983_v42 = vld [vmem:[%s8203_s3 + $0x30] sm:$0xff]  ;;  %v9354_v33 = vld [vmem:[#allocation139_spill] sm:$0xff]  ;;  %v9355_v56 = vld [vmem:[#allocation93_spill] sm:$0xff]  ;;  %vm3792_vm14 = vcmask 1041409  }
 0x2a2   :  { %v7795_v12 = vpop.xlane.xlu1 %2864  ;;  %v3262_v52 = vsel %vm3160_vm3, %v3261_v41, %v3257_v6  ;;  %v3286_v53 = vrot.slane %v9352_v48, %v7618_v9  ;;  %4265 = vmatpush3.bf16.msra.mxu1 %v4264_v47  ;;  %v4267_v55 = vpack.c.bf16 %v3881_v19, %v3880_v3  ;;  %v3296_v54 = vrot.slane %v9354_v33, %v7665_v58  ;;  %v3884_v48 = vld [vmem:[%s8205_s5 + $0x30] sm:$0xff] }
 0x2a3   :  { %v3267_v15 = vsel %vm3167_vm4, %v3266_v4, %v3262_v52  ;;  %4266 = vmatprep.subr.bf16.mxu1 %v4380_v44  ;;  %v7861_v18 = vsub.s32 %v3232_v25, %v9228_v63  ;;  %v3301_v19 = vrot.slane %v7460_v50, %v7701_v61  ;;  %v4249_v24 = vpack.c.bf16 %v2984_v36, %v2983_v42  ;;  %v2985_v63 = vld [vmem:[%s8203_s3 + $0x40] sm:$0xff]  ;;  %v2986_v25 = vld [vmem:[%s8203_s3 + $0x48] sm:$0xff] }
 0x2a4   :  { %4244 = vmatpush3.bf16.msra.mxu0 %v4243_v30  ;;  %v3272_v41 = vsel %vm3174_vm5, %v3271_v46, %v3267_v15  ;;  %v9353_v30 = vld [vmem:[#allocation56_spill] sm:$0xff]  ;;  %v3321_v46 = vrot.slane %v9355_v56, %v7109_v2  ;;  %v3306_v47 = vrot.slane %v7585_v37, %v7717_v0  ;;  %v4270_v50 = vpack.c.bf16 %v3883_v32, %v3882_v13  ;;  %v2987_v32 = vld [vmem:[%s8203_s3 + $0x50] sm:$0xff] }
 0x2a5   :  { %4245 = vmatprep.subr.bf16.mxu0 %v4380_v44  ;;  %v3291_v60 = vrot.slane %v9353_v30, %v7644_v7  ;;  %v3277_v4 = vsel %vm3181_vm6, %v3276_v29, %v3272_v41  ;;  %v9356_v52 = vld [vmem:[#allocation124_spill] sm:$0xff]  ;;  %v3311_v15 = vrot.slane %v7721_v59, %v7745_v57  ;;  %v3236_v36 = vrot.slane %v7816_v39, %v7861_v18  ;;  %v2988_v39 = vld [vmem:[%s8203_s3 + $0x58] sm:$0xff] }
 0x2a6   :  { %v3282_v3 = vsel %vm3188_vm7, %v3281_v17, %v3277_v4  ;;  %v7868_v6 = vpop.xlane.xlu0 %2732  ;;  %4268 = vmatpush3.bf16.msra.mxu1 %v4267_v55  ;;  %v3325_v1 = vrot.slane %v9356_v52, %v7139_v23  ;;  %v9357_v17 = vld [vmem:[#allocation83_spill] sm:$0xff]  ;;  %v4252_v30 = vpack.c.bf16 %v2986_v25, %v2985_v63 }
 0x2a7   :  { %v3287_v29 = vsel %vm3195_vm8, %v3286_v53, %v3282_v3  ;;  %4269 = vmatprep.subr.bf16.mxu1 %v4380_v44  ;;  %v3885_v53 = vld [vmem:[%s8205_s5 + $0x38] sm:$0xff] }
 0x2a8   :  { %4247 = vmatpush3.bf16.msra.mxu0 %v4246_v11  ;;  %v3330_v11 = vrot.slane %v9357_v17, %v7169_v27  ;;  %v3292_v37 = vsel %vm3202_vm9, %v3291_v60, %v3287_v29  ;;  %v3326_v55 = vsel %vm3139_vm0, %v3325_v1, %v3321_v46  ;;  %v4273_v4 = vpack.c.bf16 %v3885_v53, %v3884_v48  ;;  %v9359_v29 = vld [vmem:[#allocation126_spill] sm:$0xff]  ;;  %v9360_v63 = vld [vmem:[#allocation107_spill] sm:$0xff]  ;;  %v9361_v1 = vld [vmem:[#allocation108_spill] sm:$0xff] }
 0x2a9   :  { %4248 = vmatprep.subr.bf16.mxu0 %v4380_v44  ;;  %v3297_v42 = vsel %vm3209_vm10, %v3296_v54, %v3292_v37  ;;  %v9358_v54 = vld [vmem:[#allocation152_spill] sm:$0xff]  ;;  %v3345_v25 = vrot.slane %v9360_v63, %v9315_v62  ;;  %v3350_v17 = vrot.slane %v9361_v1, %v7425_v5  ;;  %v4255_v37 = vpack.c.bf16 %v2988_v39, %v2987_v32 }
 0x2aa   :  { %v7848_v40 = vpop.xlane.xlu1 %2954  ;;  %v3302_v41 = vsel %vm3216_vm11, %v3301_v19, %v3297_v42  ;;  %4271 = vmatpush3.bf16.msra.mxu1 %v4270_v50  ;;  %v3331_v33 = vsel %vm3146_vm1, %v3330_v11, %v3326_v55  ;;  %v3340_v56 = vrot.slane %v9358_v54, %v9300_v43  ;;  %v3886_v19 = vld [vmem:[%s8205_s5 + $0x40] sm:$0xff]  ;;  %v3238_v50 = vsel %vm3237_vm15, %v3236_v36, %v7764_v16  ;;  %v2990_v42 = vld [vmem:[%s8203_s3 + $0x68] sm:$0xff] }
 0x2ab   :  { %v3307_v60 = vsel %vm3223_vm12, %v3306_v47, %v3302_v41  ;;  %4272 = vmatprep.subr.bf16.mxu1 %v4380_v44  ;;  %v3335_v47 = vrot.slane %v9359_v29, %v9318_v14  ;;  %v9362_v48 = vld [vmem:[#allocation136_spill] sm:$0xff]  ;;  %v9363_v41 = vld [vmem:[#allocation10_spill] sm:$0xff] }
 0x2ac   :  { %4250 = vmatpush3.bf16.msra.mxu0 %v4249_v24  ;;  %v3312_v46 = vsel %vm3230_vm13, %v3311_v15, %v3307_v60  ;;  %v3887_v24 = vld [vmem:[%s8205_s5 + $0x48] sm:$0xff]  ;;  %v3355_v53 = vrot.slane %v9362_v48, %v7541_v35  ;;  %v2989_v16 = vld [vmem:[%s8203_s3 + $0x60] sm:$0xff]  ;;  %v3889_v60 = vld [vmem:[%s8205_s5 + $0x58] sm:$0xff] }
 0x2ad   :  { %4251 = vmatprep.subr.bf16.mxu0 %v4380_v44  ;;  %v3336_v15 = vsel %vm3153_vm2, %v3335_v47, %v3331_v33  ;;  %v4276_v36 = vpack.c.bf16 %v3887_v24, %v3886_v19  ;;  %v9364_v32 = vld [vmem:[#allocation132_spill] sm:$0xff]  ;;  %v3375_v24 = vrot.slane %v7439_v10, %v7665_v58  ;;  %v2991_v29 = vld [vmem:[%s8203_s3 + $0x70] sm:$0xff]  ;;  %v2992_v47 = vld [vmem:[%s8203_s3 + $0x78] sm:$0xff] }
 0x2ae   :  { %v7912_v3 = vpop.xlane.xlu0 %2822  ;;  %4274 = vmatpush3.bf16.msra.mxu1 %v4273_v4  ;;  %v3341_v55 = vsel %vm3160_vm3, %v3340_v56, %v3336_v15  ;;  %v3365_v39 = vrot.slane %v9364_v32, %v7618_v9  ;;  %v9365_v33 = vld [vmem:[#allocation24_spill] sm:$0xff]  ;;  %v4261_v15 = vpack.c.bf16 %v2992_v47, %v2991_v29  ;;  %v3459_v32 = vrot.slane %v7761_v21, %v7701_v61 }
 0x2af   :  { %4275 = vmatprep.subr.bf16.mxu1 %v4380_v44  ;;  %v3370_v54 = vrot.slane %v9365_v33, %v7644_v7  ;;  %v3890_v10 = vld [vmem:[%s8205_s5 + $0x60] sm:$0xff] }
 0x2b0   :  { %4253 = vmatpush3.bf16.msra.mxu0 %v4252_v30  ;;  %v3888_v30 = vld [vmem:[%s8205_s5 + $0x50] sm:$0xff] }
 0x2b1   :  { %v2688_v59 = vpop.xlane.xlu1 %2687  ;;  %4254 = vmatprep.subr.bf16.mxu0 %v4380_v44  ;;  %v4279_v63 = vpack.c.bf16 %v3889_v60, %v3888_v30 }
 0x2b2   :  { %v3316_v13 = vrot.slane %v2688_v59, %v7861_v18  ;;  %v3360_v59 = vrot.slane %v9363_v41, %v7599_v51  ;;  %4277 = vmatpush3.bf16.msra.mxu1 %v4276_v36 }
 0x2b3   :  { %4278 = vmatprep.subr.bf16.mxu1 %v4380_v44 }
 0x2b4   :  { %v3317_v52 = vsel %vm3237_vm15, %v3316_v13, %v3312_v46  ;;  %v3346_v13 = vsel %vm3167_vm4, %v3345_v25, %v3341_v55  ;;  %4256 = vmatpush3.bf16.msra.mxu0 %v4255_v37  ;;  %v4258_v46 = vpack.c.bf16 %v2990_v42, %v2989_v16 }
 0x2b5   :  { %v3793_v11 = vsel %vm3792_vm14, %v3317_v52, %v3238_v50  ;;  %v3351_v4 = vsel %vm3174_vm5, %v3350_v17, %v3346_v13  ;;  %v7957_v56 = vpop.xlane.xlu0 %2912  ;;  %4257 = vmatprep.subr.bf16.mxu0 %v4380_v44  ;;  %v3380_v50 = vrot.slane %v7567_v34, %v7701_v61  ;;  %v3891_v52 = vld [vmem:[%s8205_s5 + $0x68] sm:$0xff]  ;;  %v3385_v17 = vrot.slane %v7695_v28, %v7717_v0 }
 0x2b6   :  { %v3356_v19 = vsel %vm3181_vm6, %v3355_v53, %v3351_v4  ;;  %v3390_v34 = vrot.slane %v7868_v6, %v7745_v57  ;;  %4280 = vmatpush3.bf16.msra.mxu1 %v4279_v63  ;;  %v4282_v53 = vpack.c.bf16 %v3891_v52, %v3890_v10  ;;  %vm3794_vm14 = vcmask 1042434  }
 0x2b7   :  { %v3361_v25 = vsel %vm3188_vm7, %v3360_v59, %v3356_v19  ;;  %4281 = vmatprep.subr.bf16.mxu1 %v4380_v44 }
 0x2b8   :  { %v3366_v1 = vsel %vm3195_vm8, %v3365_v39, %v3361_v25  ;;  %4259 = vmatpush3.bf16.msra.mxu0 %v4258_v46 }
 0x2b9   :  { %v3371_v37 = vsel %vm3202_vm9, %v3370_v54, %v3366_v1  ;;  %4260 = vmatprep.subr.bf16.mxu0 %v4380_v44 }
 0x2ba   :  { %v3376_v48 = vsel %vm3209_vm10, %v3375_v24, %v3371_v37  ;;  %v2778_v55 = vpop.xlane.xlu1 %2777  ;;  %4283 = vmatpush3.bf16.msra.mxu1 %v4282_v53  ;;  %v9370_v53 = vld [vmem:[#allocation30_spill] sm:$0xff] }
 0x2bb   :  { %v3381_v16 = vsel %vm3216_vm11, %v3380_v50, %v3376_v48  ;;  %4284 = vmatprep.subr.bf16.mxu1 %v4380_v44  ;;  %v3464_v4 = vrot.slane %v2778_v55, %v7717_v0  ;;  %v9366_v50 = vld [vmem:[#allocation156_spill] sm:$0xff] }
 0x2bc   :  { %v3386_v28 = vsel %vm3223_vm12, %v3385_v17, %v3381_v16  ;;  %4262 = vmatpush3.bf16.msra.mxu0 %v4261_v15  ;;  %v3483_v10 = vrot.slane %v9366_v50, %v7139_v23  ;;  %v9368_v17 = vld [vmem:[#allocation160_spill] sm:$0xff]  ;;  %v9369_v15 = vld [vmem:[#allocation99_spill] sm:$0xff]  ;;  %v3498_v16 = vrot.slane %v9370_v53, %v9300_v43  ;;  %v3686_v53 = vrot.slane %v7957_v56, %v7644_v7 }
 0x2bd   :  { %v3391_v6 = vsel %vm3230_vm13, %v3390_v34, %v3386_v28  ;;  %4287 = vmatprep.subr.bf16.mxu0 %v4380_v44  ;;  %v3488_v37 = vrot.slane %v9368_v17, %v7169_v27  ;;  %v3493_v48 = vrot.slane %v9369_v15, %v9318_v14  ;;  %v9371_v28 = vld [vmem:[#allocation114_spill] sm:$0xff]  ;;  %v9374_v43 = vld [vmem:[#allocation8_spill] sm:$0xff] }
 0x2be   :  { %v2736_v42 = vpop.xlane.xlu0 %2735  ;;  %v3503_v23 = vrot.slane %v9371_v28, %v9315_v62  ;;  %v9375_v62 = vld [vmem:[#allocation25_spill] sm:$0xff] }
 0x2bf   :  { %v3395_v36 = vrot.slane %v2736_v42, %v7861_v18 }
 0x2c1   :  { %v3396_v41 = vsel %vm3237_vm15, %v3395_v36, %v3391_v6  ;;  %v9372_v6 = vld [vmem:[#allocation50_spill] sm:$0xff] }
 0x2c2   :  { %v3795_v59 = vsel %vm3794_vm14, %v3396_v41, %v3793_v11  ;;  %v3460_v11 = vsel %vm3216_vm11, %v3459_v32, %v7742_v45  ;;  %vm3796_vm14 = vcmask 1043459   ;;  %v9367_v45 = vld [vmem:[#allocation94_spill] sm:$0xff]  ;;  %v3518_v32 = vrot.slane %v9374_v43, %v7599_v51 }
 0x2c3   :  { %v7995_v30 = vpop.xlane.xlu1 %2867  ;;  %v3465_v46 = vsel %vm3223_vm12, %v3464_v4, %v3460_v11  ;;  %v3479_v1 = vrot.slane %v9367_v45, %v7109_v2  ;;  %v3508_v2 = vrot.slane %v9372_v6, %v7425_v5  ;;  %v9373_v41 = vld [vmem:[#allocation134_spill] sm:$0xff]  ;;  %v3528_v5 = vrot.slane %v7595_v38, %v7644_v7 }
 0x2c5   :  { %v3484_v34 = vsel %vm3139_vm0, %v3483_v10, %v3479_v1  ;;  %vm3798_vm0 = vcmask 1044484  }
 0x2c6   :  { %v3489_v36 = vsel %vm3146_vm1, %v3488_v37, %v3484_v34  ;;  %vm3800_vm1 = vcmask 1045509  }
 0x2c7   :  { %v2826_v60 = vpop.xlane.xlu0 %2825  ;;  %v3494_v27 = vsel %vm3153_vm2, %v3493_v48, %v3489_v36  ;;  %v3681_v48 = vrot.slane %v7775_v8, %v7618_v9  ;;  %v3612_v36 = vrot.slane %v7995_v30, %v7665_v58  ;;  %vm3802_vm2 = vcmask 1046534  }
 0x2c8   :  { %v3499_v14 = vsel %vm3160_vm3, %v3498_v16, %v3494_v27  ;;  %v3543_v50 = vrot.slane %v2826_v60, %v7717_v0  ;;  %vm3804_vm3 = vcmask 1047559  }
 0x2c9   :  { %v3504_v4 = vsel %vm3167_vm4, %v3503_v23, %v3499_v14  ;;  %vm9376_vm4 = vmmov 0  }
 0x2cb   :  { %v7997_v13 = vpop.xlane.xlu1 %2957 }
 0x2d0   :  { %v8001_v39 = vpop.xlane.xlu0 %2915 }
 0x2d1   :  { %v3691_v28 = vrot.slane %v8001_v39, %v7665_v58 }
 0x2d3   :  { %v2781_v33 = vpop.xlane.xlu1 %2780 }
 0x2d4   :  { %v3469_v54 = vrot.slane %v2781_v33, %v7745_v57  ;;  %v3523_v33 = vrot.slane %v9375_v62, %v7618_v9 }
 0x2d6   :  { %v3470_v19 = vsel %vm3230_vm13, %v3469_v54, %v3465_v46  ;;  %v3509_v54 = vsel %vm3174_vm5, %v3508_v2, %v3504_v4 }
 0x2d7   :  { %v2784_v24 = vpop.xlane.xlu0 %2783 }
 0x2d8   :  { %v3474_v29 = vrot.slane %v2784_v24, %v7861_v18  ;;  %v3538_v24 = vrot.slane %v7912_v3, %v7701_v61 }
 0x2da   :  { %v3475_v21 = vsel %vm3237_vm15, %v3474_v29, %v3470_v19 }
 0x2db   :  { %v3797_v47 = vsel %vm3796_vm14, %v3475_v21, %v3795_v59  ;;  %v3513_v59 = vrot.slane %v9373_v41, %v7541_v35  ;;  %v3533_v35 = vrot.slane %v7736_v22, %v7665_v58 }
 0x2dd   :  { %v2871_v63 = vpop.xlane.xlu1 %2870  ;;  %v3514_v46 = vsel %vm3181_vm6, %v3513_v59, %v3509_v54 }
 0x2de   :  { %v3519_v19 = vsel %vm3188_vm7, %v3518_v32, %v3514_v46  ;;  %v3617_v8 = vrot.slane %v2871_v63, %v7701_v61  ;;  %v3755_v46 = vrot.slane %v7848_v40, %v7599_v51 }
 0x2df   :  { %v3524_v21 = vsel %vm3195_vm8, %v3523_v33, %v3519_v19  ;;  %v3760_v19 = vrot.slane %v7997_v13, %v7618_v9 }
 0x2e0   :  { %v3529_v10 = vsel %vm3202_vm9, %v3528_v5, %v3524_v21 }
 0x2e1   :  { %v8015_v52 = vpop.xlane.xlu0 %2873  ;;  %v3534_v45 = vsel %vm3209_vm10, %v3533_v35, %v3529_v10 }
 0x2e2   :  { %v3539_v1 = vsel %vm3216_vm11, %v3538_v24, %v3534_v45  ;;  %v3622_v30 = vrot.slane %v8015_v52, %v7717_v0 }
 0x2e3   :  { %v3544_v22 = vsel %vm3223_vm12, %v3543_v50, %v3539_v1 }
 0x2e4   :  { %v8011_v25 = vpop.xlane.xlu1 %2960 }
 0x2e5   :  { %v3765_v24 = vrot.slane %v8011_v25, %v7644_v7 }
 0x2e9   :  { %v8031_v55 = vpop.xlane.xlu0 %2963 }
 0x2ea   :  { %v3770_v10 = vrot.slane %v8031_v55, %v7665_v58 }
 0x2ed   :  { %v2829_v42 = vpop.xlane.xlu1 %2828 }
 0x2ee   :  { %v3548_v38 = vrot.slane %v2829_v42, %v7745_v57  ;;  %v3607_v42 = vrot.slane %v7795_v12, %v7644_v7 }
 0x2f0   :  { %v3549_v3 = vsel %vm3230_vm13, %v3548_v38, %v3544_v22  ;;  %v3608_v12 = vsel %vm3202_vm9, %v3607_v42, %v7759_v20  ;;  %v3973_v22 = vld [vmem:[%s8207_s7 + $0x8] sm:$0xff] }
 0x2f1   :  { %v3613_v27 = vsel %vm3209_vm10, %v3612_v36, %v3608_v12 }
 0x2f2   :  { %v2877_v29 = vpop.xlane.xlu0 %2876 }
 0x2f3   :  { %v3627_v63 = vrot.slane %v2877_v29, %v7745_v57  ;;  %v3756_v29 = vsel %vm3188_vm7, %v3755_v46, %v7767_v26 }
 0x2f4   :  { %v3761_v50 = vsel %vm3195_vm8, %v3760_v19, %v3756_v29 }
 0x2f5   :  { %v2919_v11 = vpop.xlane.xlu1 %2918  ;;  %v3766_v38 = vsel %vm3202_vm9, %v3765_v24, %v3761_v50 }
 0x2f6   :  { %v3696_v6 = vrot.slane %v2919_v11, %v7701_v61  ;;  %v3771_v9 = vsel %vm3209_vm10, %v3770_v10, %v3766_v38 }
 0x2fa   :  { %v2967_v34 = vpop.xlane.xlu0 %2966 }
 0x2fb   :  { %v3775_v51 = vrot.slane %v2967_v34, %v7701_v61 }
 0x2fd   :  { %v3776_v7 = vsel %vm3216_vm11, %v3775_v51, %v3771_v9 }
 0x2fe   :  { %v2832_v17 = vpop.xlane.xlu1 %2831 }
 0x2ff   :  { %v3553_v37 = vrot.slane %v2832_v17, %v7861_v18  ;;  %v3972_v17 = vld [vmem:[%s8207_s7] sm:$0xff] }
 0x301   :  { %v3554_v15 = vsel %vm3237_vm15, %v3553_v37, %v3549_v3  ;;  %v4288_v37 = vpack.c.bf16 %v3973_v22, %v3972_v17  ;;  %v3975_v3 = vld [vmem:[%s8207_s7 + $0x18] sm:$0xff] }
 0x302   :  { %v3799_v60 = vsel %vm3798_vm0, %v3554_v15, %v3797_v47  ;;  %v3682_v47 = vsel %vm3195_vm8, %v3681_v48, %v7739_v49  ;;  %v3618_v49 = vsel %vm3216_vm11, %v3617_v8, %v3613_v27  ;;  %v3976_v15 = vld [vmem:[%s8207_s7 + $0x20] sm:$0xff] }
 0x303   :  { %v2925_v16 = vpop.xlane.xlu0 %2924  ;;  %v3687_v2 = vsel %vm3202_vm9, %v3686_v53, %v3682_v47  ;;  %v3623_v4 = vsel %vm3223_vm12, %v3622_v30, %v3618_v49  ;;  %v3978_v53 = vld [vmem:[%s8207_s7 + $0x30] sm:$0xff]  ;;  %v3983_v47 = vld [vmem:[%s8207_s7 + $0x58] sm:$0xff] }
 0x304   :  { %v3692_v39 = vsel %vm3209_vm10, %v3691_v28, %v3687_v2  ;;  %v3706_v43 = vrot.slane %v2925_v16, %v7745_v57  ;;  %v3628_v33 = vsel %vm3230_vm13, %v3627_v63, %v3623_v4  ;;  %v3979_v16 = vld [vmem:[%s8207_s7 + $0x38] sm:$0xff]  ;;  %v3980_v28 = vld [vmem:[%s8207_s7 + $0x40] sm:$0xff]  ;;  %v3985_v2 = vld [vmem:[%s8207_s7 + $0x68] sm:$0xff] }
 0x305   :  { %v3697_v41 = vsel %vm3216_vm11, %v3696_v6, %v3692_v39  ;;  %v4297_v42 = vpack.c.bf16 %v3979_v16, %v3978_v53  ;;  %v3982_v6 = vld [vmem:[%s8207_s7 + $0x50] sm:$0xff]  ;;  %v4080_v39 = vld [vmem:[%s8204_s4] ss:$0 sm:$0xff]  ;;  %v3987_v63 = vld [vmem:[%s8207_s7 + $0x78] sm:$0xff] }
 0x306   :  { %v4303_v8 = vpack.c.bf16 %v3983_v47, %v3982_v6  ;;  %v3986_v49 = vld [vmem:[%s8207_s7 + $0x70] sm:$0xff] }
 0x307   :  { %v2922_v23 = vpop.xlane.xlu1 %2921 }
 0x308   :  { %v3701_v56 = vrot.slane %v2922_v23, %v7717_v0  ;;  %v3981_v23 = vld [vmem:[%s8207_s7 + $0x48] sm:$0xff] }
 0x309   :  { %v4300_v36 = vpack.c.bf16 %v3981_v23, %v3980_v28 }
 0x30a   :  { %v3702_v14 = vsel %vm3223_vm12, %v3701_v56, %v3697_v41  ;;  %v3984_v56 = vld [vmem:[%s8207_s7 + $0x60] sm:$0xff] }
 0x30b   :  { %v2928_v59 = vpop.xlane.xlu0 %2927  ;;  %v3707_v62 = vsel %vm3230_vm13, %v3706_v43, %v3702_v14  ;;  %v4306_v12 = vpack.c.bf16 %v3985_v2, %v3984_v56  ;;  %v4309_v14 = vpack.c.bf16 %v3987_v63, %v3986_v49 }
 0x30c   :  { %v3711_v20 = vrot.slane %v2928_v59, %v7861_v18 }
 0x30e   :  { %v3712_v5 = vsel %vm3237_vm15, %v3711_v20, %v3707_v62  ;;  %v4082_v62 = vld [vmem:[%s8208_s8] ss:$0 sm:$0xff] }
 0x310   :  { %v2880_v32 = vpop.xlane.xlu1 %2879 }
 0x311   :  { %v3632_v52 = vrot.slane %v2880_v32, %v7861_v18 }
 0x313   :  { %v3633_v54 = vsel %vm3237_vm15, %v3632_v52, %v3628_v33 }
 0x314   :  { %v3801_v11 = vsel %vm3800_vm1, %v3633_v54, %v3799_v60  ;;  %v2976_v45 = vpop.xlane.xlu0 %2975  ;;  %v3977_v60 = vld [vmem:[%s8207_s7 + $0x28] sm:$0xff] }
 0x315   :  { %v3803_v35 = vsel %vm3802_vm2, %v3712_v5, %v3801_v11  ;;  %v3790_v25 = vrot.slane %v2976_v45, %v7861_v18  ;;  %v4294_v48 = vpack.c.bf16 %v3977_v60, %v3976_v15 }
 0x319   :  { %v2970_v21 = vpop.xlane.xlu1 %2969 }
 0x31a   :  { %v3780_v40 = vrot.slane %v2970_v21, %v7717_v0  ;;  %v3892_v0 = vld [vmem:[%s8205_s5 + $0x70] sm:$0xff] }
 0x31c   :  { %v3781_v1 = vsel %vm3223_vm12, %v3780_v40, %v3776_v7 }
 0x31e   :  { %v2973_v13 = vpop.xlane.xlu1 %2972 }
 0x31f   :  { %v3785_v26 = vrot.slane %v2973_v13, %v7745_v57  ;;  %v3893_v57 = vld [vmem:[%s8205_s5 + $0x78] sm:$0xff] }
 0x320   :  { %v4285_v18 = vpack.c.bf16 %v3893_v57, %v3892_v0 }
 0x321   :  { %v3786_v58 = vsel %vm3230_vm13, %v3785_v26, %v3781_v1 }
 0x322   :  { %v3791_v55 = vsel %vm3237_vm15, %v3790_v25, %v3786_v58  ;;  %4286 = vmatpush3.bf16.msra.mxu1 %v4285_v18 }
 0x323   :  { %v3805_v61 = vsel %vm3804_vm3, %v3791_v55, %v3803_v35 }
 0x324   :  { %4167 = vmatmul.mubr.f32.vlgmr.msra.gmra.mrb[0].mxu0 %v3805_v61 }
 0x325   :  { %4236 = vmatprep.mubr.msk.f32.mxu0 %vm9376_vm4, %v4382_v31  ;;  %v3974_v31 = vld [vmem:[%s8207_s7 + $0x10] sm:$0xff]  ;;  %4289 = vmatpush3.bf16.msra.mxu0 %v4288_v37  ;;  %s4353_s7 = scalar_lea.vmem %s4073_s24, 128 }
 0x326   :  { %v4291_v34 = vpack.c.bf16 %v3975_v3, %v3974_v31  ;;  %4290 = vmatprep.subr.bf16.mxu0 %v4380_v44  ;;  %p4354_p0 = scmp.ne.s32.totalorder %s4073_s24, %s4353_s7  ;;  %p4359_p2 = scmp.lt.s32.totalorder %s4353_s7, %s4353_s7 }
 0x328   :  { %p4360_p3 = por %p4359_p2, %p4358_p1 }
 0x329   :  { %4292 = vmatpush3.bf16.msra.mxu0 %v4291_v34 }
 0x32a   :  { %4293 = vmatprep.subr.bf16.mxu0 %v4380_v44  ;;  %p4361_p4 = pnand %p4360_p3, %p4354_p0 }
 0x32d   :  { %4295 = vmatpush3.bf16.msra.mxu0 %v4294_v48 }
 0x32e   :  { %4296 = vmatprep.subr.bf16.mxu0 %v4380_v44 }
 0x331   :  { %4298 = vmatpush3.bf16.msra.mxu0 %v4297_v42 }
 0x332   :  { %4299 = vmatprep.subr.bf16.mxu0 %v4380_v44 }
 0x335   :  { %4301 = vmatpush3.bf16.msra.mxu0 %v4300_v36 }
 0x336   :  { %4302 = vmatprep.subr.bf16.mxu0 %v4380_v44 }
 0x339   :  { %4304 = vmatpush3.bf16.msra.mxu0 %v4303_v8 }
 0x33a   :  { %4305 = vmatprep.subr.bf16.mxu0 %v4380_v44 }
 0x33d   :  { %4307 = vmatpush3.bf16.msra.mxu0 %v4306_v12 }
 0x33e   :  { %4308 = vmatprep.subr.bf16.mxu0 %v4380_v44  ;;  %v4081_v44 = vld [vmem:[%s8206_s6] ss:$0 sm:$0xff] }
 0x341   :  { %4310 = vmatpush3.bf16.msra.mxu0 %v4309_v14 }
 0x3f7   :  { %v3873_v27 = vpop.f32.mrb[0].mxu0 }
 0x3f8   :  { %v3874_v30 = vadd.f32 %v4080_v39, %v3873_v27  ;;  %v4168_v41 = vpop.f32.mrb[1].mxu0 }
 0x3fa   :  { %v3877_v59 = vmax.f32 %v3874_v30, 0.0 }
 0x3fc   :  { %4202 = vmatmul.mubr.f32.vlgmr.msra.gmra.mrb[0].mxu1 %v3877_v59 }
 0x4cf   :  { %v3967_v43 = vpop.f32.mrb[0].mxu1 }
 0x4d0   :  { %v3968_v20 = vadd.f32 %v4081_v44, %v3967_v43  ;;  %v4203_v32 = vpop.f32.mrb[1].mxu1 }
 0x4d2   :  { %v3971_v4 = vmax.f32 %v3968_v20, 0.0 }
 0x4d4   :  { %4237 = vmatmul.mubr.f32.vlgmr.msra.gmra.mrb[2].mxu0 %v3971_v4 }
 0x5a7   :  { %v4061_v52 = vpop.f32.mrb[2].mxu0 }
 0x5a8   :  { %v4062_v33 = vadd.f32 %v4082_v62, %v4061_v52  ;;  %v4238_v54 = vpop.f32.mrb[3].mxu0 }
 0x5aa   :  { %4065 = vst [vmem:[#allocation2] sm:$0xff] %v4062_v33 }
 0x5ab   :  { %4364 = shalt.err (!%p4361_p4)
}
 0x5ac   :  { %s4365_s26 = scalar_lea.hbm %s8209_s9, 128 }
 0x5ad   :  { %p4366_p5 = scmp.ne.s32.totalorder %s8209_s9, %s4365_s26  ;;  %p4369_p6 = scmp.lt.u32.totalorder %s4365_s26, %s8209_s9 }
 0x5af   :  { %p4371_p7 = pnand %p4369_p6, %p4366_p5 }
 0x5b1   :  { %4374 = shalt.err (!%p4371_p7)
}
 0x5b2   :  { %4075 = dma.vmem_to_hbm [thread:$0]  %s4073_s24, 128, %s8209_s9, [#allocation3]  }
 0x5b3   :  { %4375 = dma.done.wait [#allocation3], 128  }
 0x5b4   :  { %4376 = vsyncadd [#allocation3], 4294967168 }
 0x5b5   :  { %4079 = vsyncpa [#allocation3], 1 }

</bundles_post_ra>
